<compile_context>
chip_gen: v7x
topology: tpu7x:2x2x1
jax: 0.10.0
libtpu: 0.0.40
codegen_flags: <defaults>
</compile_context>

<pallas_src>
import functools

import jax
import jax.numpy as jnp
from jax.experimental import pallas as pl
from jax.experimental.pallas import tpu as pltpu

LANE = 128   # vreg lane width; each gate gets its own 128-lane group
SUB = 8      # f32 sublane multiple


def _round_up(x, m):
    return (x + m - 1) // m * m


def _gate_group_pad(w, hidden):
    """(rows, 4H) -> (rows, 4*LANE); gate k's H real columns land at lanes
    [k*LANE, k*LANE+H) of its own 128-lane group, zeros elsewhere.  Every
    per-gate slice in the kernel is then a whole, lane-aligned vreg."""
    blocks = [jnp.pad(w[:, k * hidden:(k + 1) * hidden],
                      ((0, 0), (0, LANE - hidden))) for k in range(4)]
    return jnp.concatenate(blocks, axis=1)


def _pad_rows(w, rows):
    return jnp.pad(w, ((0, rows - w.shape[0]), (0, 0)))


def prepare_params(params, *, input_size, hidden_size, batch_size):
    """One-time weight preparation (hoisted out of the per-call path)."""
    H, I = hidden_size, input_size
    assert H <= LANE, "gate-group layout assumes hidden_size <= 128"
    Ip = _round_up(I, LANE)
    Bp = _round_up(batch_size, SUB)

    # Layer-1 input projection weight + folded bias (stays f32, off the chain).
    wih1 = _pad_rows(_gate_group_pad(params["w_ih1"].T, H), Ip)             # (Ip, 4*LANE)
    b1 = _gate_group_pad((params["b_ih1"] + params["b_hh1"]).reshape(1, 4 * H), H)
    # Recurrent weights feed the serial per-step matmuls -> bf16 (MXU native).
    # Rows H:128 are zero so the junk lanes of the 128-wide h state are inert.
    whh1 = _pad_rows(_gate_group_pad(params["w_hh1"].T, H), LANE).astype(jnp.bfloat16)
    wih2 = _pad_rows(_gate_group_pad(params["w_ih2"].T, H), LANE).astype(jnp.bfloat16)
    whh2 = _pad_rows(_gate_group_pad(params["w_hh2"].T, H), LANE).astype(jnp.bfloat16)
    b2 = jnp.asarray(jnp.broadcast_to(
        _gate_group_pad((params["b_ih2"] + params["b_hh2"]).reshape(1, 4 * H), H),
        (Bp, 4 * LANE)))
    # Deferred output projection (f32).
    wlin = jnp.pad(params["w_lin"].T, ((0, LANE - H), (0, Ip - I)))         # (LANE, Ip)
    blin = jnp.pad(params["b_lin"], (0, Ip - I)).reshape(1, Ip)
    return dict(wih1=wih1, b1=b1, whh1=whh1, wih2=wih2, whh2=whh2, b2=b2,
                wlin=wlin, blin=blin)


def _flow_lstm_kernel(x_ref, wih1_ref, b1_ref, whh1_ref, wih2_ref, whh2_ref,
                      b2_ref, wlin_ref, blin_ref, out_ref, p1_ref, h2_ref,
                      *, seq_len, batch_pad):
    T, Bp = seq_len, batch_pad
    G = wih1_ref.shape[1]            # 4 * LANE
    LB = G // 4                      # 128-lane group per gate
    Ip = out_ref.shape[1] // T

    # ---- Layer-1 input projection for ALL steps: one batched MXU matmul
    # (bias folded), staged in VMEM scratch so it never bloats vreg pressure.
    p1_ref[...] = (jnp.dot(x_ref[...], wih1_ref[...],
                           preferred_element_type=jnp.float32) + b1_ref[...])

    def gate_update(gates, c_prev):
        # Each gate sits in its own 128-lane group -> every slice is a whole
        # vreg and every combine with c/h is lane-aligned (no XLU relayouts).
        i_g = jax.nn.sigmoid(gates[:, 0 * LB:1 * LB])
        f_g = jax.nn.sigmoid(gates[:, 1 * LB:2 * LB])
        g_g = jnp.tanh(gates[:, 2 * LB:3 * LB])
        o_g = jax.nn.sigmoid(gates[:, 3 * LB:4 * LB])
        c_new = f_g * c_prev + i_g * g_g
        h_new = o_g * jnp.tanh(c_new)
        return h_new, c_new

    # States are 128-lane vregs; real data at lanes 0:H, other lanes stay 0
    # exactly (zero-padded weights/biases), so they are inert everywhere.
    h1 = jnp.zeros((Bp, LB), jnp.float32)
    c1 = jnp.zeros((Bp, LB), jnp.float32)
    h2 = jnp.zeros((Bp, LB), jnp.float32)
    c2 = jnp.zeros((Bp, LB), jnp.float32)

    # T is small & static -> fully unrolled (static slices, full LLO visibility).
    # TODO(synk): for large T switch to lax.fori_loop(..., unroll=4..8).
    for t in range(T):
        # Layer 1: only the recurrent matmul sits on the serial chain (bf16 MXU).
        gates1 = (p1_ref[pl.ds(t * Bp, Bp), :]
                  + jnp.dot(h1.astype(jnp.bfloat16), whh1_ref[...],
                            preferred_element_type=jnp.float32))
        h1, c1 = gate_update(gates1, c1)

        # Layer 2: split matmuls (no lane concat); the h2-part depends only on
        # the previous step, so the scheduler may issue it early.
        gates2 = (jnp.dot(h2.astype(jnp.bfloat16), whh2_ref[...],
                          preferred_element_type=jnp.float32)
                  + jnp.dot(h1.astype(jnp.bfloat16), wih2_ref[...],
                            preferred_element_type=jnp.float32)
                  + b2_ref[...])
        h2, c2 = gate_update(gates2, c2)

        # Stash h2 in VMEM scratch (vst slot, off the chain) for the deferred
        # output projection; replaces the old h2_steps list + concat epilogue.
        h2_ref[pl.ds(t * Bp, Bp), :] = h2

    # ---- Deferred output projection: one (T*Bp, LANE) @ (LANE, Ip) matmul, then
    # lane-aligned (128-wide) stores that land already in batch-major order.
    out_all = (jnp.dot(h2_ref[...], wlin_ref[...],
                       preferred_element_type=jnp.float32) + blin_ref[...])
    for t in range(T):
        out_ref[:, t * Ip:(t + 1) * Ip] = out_all[t * Bp:(t + 1) * Bp, :]


@jax.jit
def flow_lstm_forward(x, prepped):
    """x: (B, T, I) f32 -> (B, T, I) f32 (PyTorch FlowLSTM.forward, 2 layers)."""
    B, T, I = x.shape
    Bp = prepped["b2"].shape[0]
    Ip = prepped["wlin"].shape[1]
    G = prepped["wih1"].shape[1]
    assert B <= Bp and I <= Ip

    # Time-major padded rows (T*Bp, Ip); zero padding is inert for real rows/lanes.
    x_tm = jnp.transpose(x, (1, 0, 2))
    x_tm = jnp.pad(x_tm, ((0, 0), (0, Bp - B), (0, Ip - I))).reshape(T * Bp, Ip)

    vmem = pl.BlockSpec(memory_space=pltpu.MemorySpace.VMEM)
    out = pl.pallas_call(
        functools.partial(_flow_lstm_kernel, seq_len=T, batch_pad=Bp),
        out_shape=jax.ShapeDtypeStruct((Bp, T * Ip), jnp.float32),
        in_specs=[vmem] * 9,
        out_specs=vmem,
        scratch_shapes=[pltpu.VMEM((T * Bp, G), jnp.float32),      # p1, all steps
                        pltpu.VMEM((T * Bp, LANE), jnp.float32)],  # h2, all steps
    )(x_tm, prepped["wih1"], prepped["b1"], prepped["whh1"], prepped["wih2"],
      prepped["whh2"], prepped["b2"], prepped["wlin"], prepped["blin"])

    # Kernel output is (Bp, T*Ip) batch-major: reshape is layout-free, then slice.
    return out.reshape(Bp, T, Ip)[:B, :, :I]


def init_params(key, input_size, hidden_size):
    """Deterministic init mirroring PyTorch's uniform(-1/sqrt(H), 1/sqrt(H))."""
    H, I = hidden_size, input_size
    k = 1.0 / jnp.sqrt(jnp.float32(H))
    names_shapes = [
        ("w_ih1", (4 * H, I)), ("w_hh1", (4 * H, H)),
        ("b_ih1", (4 * H,)), ("b_hh1", (4 * H,)),
        ("w_ih2", (4 * H, H)), ("w_hh2", (4 * H, H)),
        ("b_ih2", (4 * H,)), ("b_hh2", (4 * H,)),
        ("w_lin", (I, H)), ("b_lin", (I,)),
    ]
    keys = jax.random.split(key, len(names_shapes))
    return {n: jax.random.uniform(kk, s, jnp.float32, -k, k)
            for kk, (n, s) in zip(keys, names_shapes)}


def flow_lstm_reference(x, params, hidden_size):
    """Pure-JAX f32 reference of the PyTorch forward (num_layers=2)."""
    def cell(x_in, h, c, w_ih_t, w_hh_t, b):
        gates = x_in @ w_ih_t + h @ w_hh_t + b
        H = h.shape[-1]
        i = jax.nn.sigmoid(gates[:, 0 * H:1 * H])
        f = jax.nn.sigmoid(gates[:, 1 * H:2 * H])
        g = jnp.tanh(gates[:, 2 * H:3 * H])
        o = jax.nn.sigmoid(gates[:, 3 * H:4 * H])
        c_new = f * c + i * g
        return o * jnp.tanh(c_new), c_new

    B, T, I = x.shape
    H = hidden_size
    h1 = jnp.zeros((B, H), jnp.float32); c1 = jnp.zeros((B, H), jnp.float32)
    h2 = jnp.zeros((B, H), jnp.float32); c2 = jnp.zeros((B, H), jnp.float32)
    b1 = (params["b_ih1"] + params["b_hh1"])[None, :]
    b2 = (params["b_ih2"] + params["b_hh2"])[None, :]
    outs = []
    for t in range(T):
        h1, c1 = cell(x[:, t, :], h1, c1, params["w_ih1"].T, params["w_hh1"].T, b1)
        h2, c2 = cell(h1, h2, c2, params["w_ih2"].T, params["w_hh2"].T, b2)
        outs.append(h2 @ params["w_lin"].T + params["b_lin"][None, :])
    return jnp.stack(outs, axis=1)


if __name__ == "__main__":
    # Small shapes consistent with the module docstring: batch=2, seq=8, input=17, hidden=32.
    B, T, I, H = 2, 8, 17, 32
    key = jax.random.PRNGKey(0)
    kx, kp = jax.random.split(key)
    x = jax.random.normal(kx, (B, T, I), jnp.float32)
    params = init_params(kp, I, H)

    prepped = prepare_params(params, input_size=I, hidden_size=H, batch_size=B)
    out = flow_lstm_forward(x, prepped)
    out = jax.block_until_ready(out)

    ref = flow_lstm_reference(x, params, H)
    assert out.shape == (B, T, I)
    # bf16 recurrent-matmul weights (per perf review) -> tolerance loosened vs f32 ref.
    assert jnp.allclose(out, ref, atol=3e-2, rtol=3e-2), "mismatch vs reference"

    # TODO(synk): the PyTorch ctor's `dropout` arg and the (unreachable) num_layers==1
    # branch are unused by the 2-layer forward; only the 2-layer path is ported.
    print("KERNEL_OK")
</pallas_src>

<mosaic_0001>
module attributes {stable_mosaic.version = 11 : i64} {
  func.func @_flow_lstm_kernel(%arg0: memref<64x128xf32, #tpu.memory_space<vmem>>, %arg1: memref<128x512xf32, #tpu.memory_space<vmem>>, %arg2: memref<1x512xf32, #tpu.memory_space<vmem>>, %arg3: memref<128x512xbf16, #tpu.memory_space<vmem>>, %arg4: memref<128x512xbf16, #tpu.memory_space<vmem>>, %arg5: memref<128x512xbf16, #tpu.memory_space<vmem>>, %arg6: memref<8x512xf32, #tpu.memory_space<vmem>>, %arg7: memref<128x128xf32, #tpu.memory_space<vmem>>, %arg8: memref<1x128xf32, #tpu.memory_space<vmem>>, %arg9: memref<8x1024xf32, #tpu.memory_space<vmem>>, %arg10: memref<64x512xf32, #tpu.memory_space<vmem>>, %arg11: memref<64x128xf32, #tpu.memory_space<vmem>>) attributes {dimension_semantics = [], scalar_prefetch = 0 : i64, scratch_operands = 2 : i64, tpu.core_type = #tpu.core_type<tc>} {
    %c0 = arith.constant 0 : index
    %c0_0 = arith.constant 0 : index
    %0 = vector.load %arg0[%c0, %c0_0] : memref<64x128xf32, #tpu.memory_space<vmem>>, vector<64x128xf32>
    %c0_1 = arith.constant 0 : index
    %c0_2 = arith.constant 0 : index
    %1 = vector.load %arg1[%c0_1, %c0_2] : memref<128x512xf32, #tpu.memory_space<vmem>>, vector<128x512xf32>
    %cst = arith.constant dense<0.000000e+00> : vector<64x512xf32>
    %2 = tpu.matmul %0, %1, %cst {dimension_numbers = #tpu.dot_dimension_numbers<[1], [0], [0], [1], [0, 0, 1, 1], [], []>} : vector<64x128xf32>, vector<128x512xf32>, vector<64x512xf32> -> vector<64x512xf32>
    %c0_3 = arith.constant 0 : index
    %c0_4 = arith.constant 0 : index
    %3 = vector.load %arg2[%c0_3, %c0_4] : memref<1x512xf32, #tpu.memory_space<vmem>>, vector<1x512xf32>
    %4 = vector.broadcast %3 : vector<1x512xf32> to vector<64x512xf32>
    %5 = arith.addf %2, %4 : vector<64x512xf32>
    %c0_5 = arith.constant 0 : index
    %c0_6 = arith.constant 0 : index
    %6 = vector.load %arg10[%c0_5, %c0_6] : memref<64x512xf32, #tpu.memory_space<vmem>>, vector<64x512xf32>
    tpu.vector_store %arg10[%c0_5, %c0_6], %5 {strides = array<i32>} : memref<64x512xf32, #tpu.memory_space<vmem>>, vector<64x512xf32>,
    %cst_7 = arith.constant 0.000000e+00 : f32
    %7 = vector.broadcast %cst_7 : f32 to vector<8x128xf32>
    %cst_8 = arith.constant 0.000000e+00 : f32
    %8 = vector.broadcast %cst_8 : f32 to vector<8x128xf32>
    %cst_9 = arith.constant 0.000000e+00 : f32
    %9 = vector.broadcast %cst_9 : f32 to vector<8x128xf32>
    %cst_10 = arith.constant 0.000000e+00 : f32
    %10 = vector.broadcast %cst_10 : f32 to vector<8x128xf32>
    %c0_11 = arith.constant 0 : index
    %c0_12 = arith.constant 0 : index
    %11 = vector.load %arg10[%c0_11, %c0_12] : memref<64x512xf32, #tpu.memory_space<vmem>>, vector<8x512xf32>
    %12 = arith.truncf %7 : vector<8x128xf32> to vector<8x128xbf16>
    %c0_13 = arith.constant 0 : index
    %c0_14 = arith.constant 0 : index
    %13 = vector.load %arg3[%c0_13, %c0_14] : memref<128x512xbf16, #tpu.memory_space<vmem>>, vector<128x512xbf16>
    %cst_15 = arith.constant dense<0.000000e+00> : vector<8x512xf32>
    %14 = tpu.matmul %12, %13, %cst_15 {dimension_numbers = #tpu.dot_dimension_numbers<[1], [0], [0], [1], [0, 0, 1, 1], [], []>} : vector<8x128xbf16>, vector<128x512xbf16>, vector<8x512xf32> -> vector<8x512xf32>
    %15 = arith.addf %11, %14 : vector<8x512xf32>
    %16 = vector.extract_strided_slice %15 {offsets = [0, 0], sizes = [8, 128], strides = [1, 1]} : vector<8x512xf32> to vector<8x128xf32>
    %17 = arith.negf %16 : vector<8x128xf32>
    %18 = math.exp %17 : vector<8x128xf32>
    %cst_16 = arith.constant 1.000000e+00 : f32
    %19 = vector.broadcast %cst_16 : f32 to vector<8x128xf32>
    %20 = arith.addf %19, %18 : vector<8x128xf32>
    %21 = arith.divf %19, %20 : vector<8x128xf32>
    %22 = vector.extract_strided_slice %15 {offsets = [0, 128], sizes = [8, 128], strides = [1, 1]} : vector<8x512xf32> to vector<8x128xf32>
    %23 = arith.negf %22 : vector<8x128xf32>
    %24 = math.exp %23 : vector<8x128xf32>
    %cst_17 = arith.constant 1.000000e+00 : f32
    %25 = vector.broadcast %cst_17 : f32 to vector<8x128xf32>
    %26 = arith.addf %25, %24 : vector<8x128xf32>
    %27 = arith.divf %25, %26 : vector<8x128xf32>
    %28 = vector.extract_strided_slice %15 {offsets = [0, 256], sizes = [8, 128], strides = [1, 1]} : vector<8x512xf32> to vector<8x128xf32>
    %29 = math.tanh %28 : vector<8x128xf32>
    %30 = vector.extract_strided_slice %15 {offsets = [0, 384], sizes = [8, 128], strides = [1, 1]} : vector<8x512xf32> to vector<8x128xf32>
    %31 = arith.negf %30 : vector<8x128xf32>
    %32 = math.exp %31 : vector<8x128xf32>
    %cst_18 = arith.constant 1.000000e+00 : f32
    %33 = vector.broadcast %cst_18 : f32 to vector<8x128xf32>
    %34 = arith.addf %33, %32 : vector<8x128xf32>
    %35 = arith.divf %33, %34 : vector<8x128xf32>
    %36 = arith.mulf %27, %8 : vector<8x128xf32>
    %37 = arith.mulf %21, %29 : vector<8x128xf32>
    %38 = arith.addf %36, %37 : vector<8x128xf32>
    %39 = math.tanh %38 : vector<8x128xf32>
    %40 = arith.mulf %35, %39 : vector<8x128xf32>
    %41 = arith.truncf %9 : vector<8x128xf32> to vector<8x128xbf16>
    %c0_19 = arith.constant 0 : index
    %c0_20 = arith.constant 0 : index
    %42 = vector.load %arg5[%c0_19, %c0_20] : memref<128x512xbf16, #tpu.memory_space<vmem>>, vector<128x512xbf16>
    %cst_21 = arith.constant dense<0.000000e+00> : vector<8x512xf32>
    %43 = tpu.matmul %41, %42, %cst_21 {dimension_numbers = #tpu.dot_dimension_numbers<[1], [0], [0], [1], [0, 0, 1, 1], [], []>} : vector<8x128xbf16>, vector<128x512xbf16>, vector<8x512xf32> -> vector<8x512xf32>
    %44 = arith.truncf %40 : vector<8x128xf32> to vector<8x128xbf16>
    %c0_22 = arith.constant 0 : index
    %c0_23 = arith.constant 0 : index
    %45 = vector.load %arg4[%c0_22, %c0_23] : memref<128x512xbf16, #tpu.memory_space<vmem>>, vector<128x512xbf16>
    %cst_24 = arith.constant dense<0.000000e+00> : vector<8x512xf32>
    %46 = tpu.matmul %44, %45, %cst_24 {dimension_numbers = #tpu.dot_dimension_numbers<[1], [0], [0], [1], [0, 0, 1, 1], [], []>} : vector<8x128xbf16>, vector<128x512xbf16>, vector<8x512xf32> -> vector<8x512xf32>
    %47 = arith.addf %43, %46 : vector<8x512xf32>
    %c0_25 = arith.constant 0 : index
    %c0_26 = arith.constant 0 : index
    %48 = vector.load %arg6[%c0_25, %c0_26] : memref<8x512xf32, #tpu.memory_space<vmem>>, vector<8x512xf32>
    %49 = arith.addf %47, %48 : vector<8x512xf32>
    %50 = vector.extract_strided_slice %49 {offsets = [0, 0], sizes = [8, 128], strides = [1, 1]} : vector<8x512xf32> to vector<8x128xf32>
    %51 = arith.negf %50 : vector<8x128xf32>
    %52 = math.exp %51 : vector<8x128xf32>
    %cst_27 = arith.constant 1.000000e+00 : f32
    %53 = vector.broadcast %cst_27 : f32 to vector<8x128xf32>
    %54 = arith.addf %53, %52 : vector<8x128xf32>
    %55 = arith.divf %53, %54 : vector<8x128xf32>
    %56 = vector.extract_strided_slice %49 {offsets = [0, 128], sizes = [8, 128], strides = [1, 1]} : vector<8x512xf32> to vector<8x128xf32>
    %57 = arith.negf %56 : vector<8x128xf32>
    %58 = math.exp %57 : vector<8x128xf32>
    %cst_28 = arith.constant 1.000000e+00 : f32
    %59 = vector.broadcast %cst_28 : f32 to vector<8x128xf32>
    %60 = arith.addf %59, %58 : vector<8x128xf32>
    %61 = arith.divf %59, %60 : vector<8x128xf32>
    %62 = vector.extract_strided_slice %49 {offsets = [0, 256], sizes = [8, 128], strides = [1, 1]} : vector<8x512xf32> to vector<8x128xf32>
    %63 = math.tanh %62 : vector<8x128xf32>
    %64 = vector.extract_strided_slice %49 {offsets = [0, 384], sizes = [8, 128], strides = [1, 1]} : vector<8x512xf32> to vector<8x128xf32>
    %65 = arith.negf %64 : vector<8x128xf32>
    %66 = math.exp %65 : vector<8x128xf32>
    %cst_29 = arith.constant 1.000000e+00 : f32
    %67 = vector.broadcast %cst_29 : f32 to vector<8x128xf32>
    %68 = arith.addf %67, %66 : vector<8x128xf32>
    %69 = arith.divf %67, %68 : vector<8x128xf32>
    %70 = arith.mulf %61, %10 : vector<8x128xf32>
    %71 = arith.mulf %55, %63 : vector<8x128xf32>
    %72 = arith.addf %70, %71 : vector<8x128xf32>
    %73 = math.tanh %72 : vector<8x128xf32>
    %74 = arith.mulf %69, %73 : vector<8x128xf32>
    %c0_30 = arith.constant 0 : index
    %c0_31 = arith.constant 0 : index
    %75 = vector.load %arg11[%c0_30, %c0_31] : memref<64x128xf32, #tpu.memory_space<vmem>>, vector<8x128xf32>
    tpu.vector_store %arg11[%c0_30, %c0_31], %74 {strides = array<i32>} : memref<64x128xf32, #tpu.memory_space<vmem>>, vector<8x128xf32>,
    %c8 = arith.constant 8 : index
    %c0_32 = arith.constant 0 : index
    %76 = vector.load %arg10[%c8, %c0_32] : memref<64x512xf32, #tpu.memory_space<vmem>>, vector<8x512xf32>
    %77 = arith.truncf %40 : vector<8x128xf32> to vector<8x128xbf16>
    %c0_33 = arith.constant 0 : index
    %c0_34 = arith.constant 0 : index
    %78 = vector.load %arg3[%c0_33, %c0_34] : memref<128x512xbf16, #tpu.memory_space<vmem>>, vector<128x512xbf16>
    %cst_35 = arith.constant dense<0.000000e+00> : vector<8x512xf32>
    %79 = tpu.matmul %77, %78, %cst_35 {dimension_numbers = #tpu.dot_dimension_numbers<[1], [0], [0], [1], [0, 0, 1, 1], [], []>} : vector<8x128xbf16>, vector<128x512xbf16>, vector<8x512xf32> -> vector<8x512xf32>
    %80 = arith.addf %76, %79 : vector<8x512xf32>
    %81 = vector.extract_strided_slice %80 {offsets = [0, 0], sizes = [8, 128], strides = [1, 1]} : vector<8x512xf32> to vector<8x128xf32>
    %82 = arith.negf %81 : vector<8x128xf32>
    %83 = math.exp %82 : vector<8x128xf32>
    %cst_36 = arith.constant 1.000000e+00 : f32
    %84 = vector.broadcast %cst_36 : f32 to vector<8x128xf32>
    %85 = arith.addf %84, %83 : vector<8x128xf32>
    %86 = arith.divf %84, %85 : vector<8x128xf32>
    %87 = vector.extract_strided_slice %80 {offsets = [0, 128], sizes = [8, 128], strides = [1, 1]} : vector<8x512xf32> to vector<8x128xf32>
    %88 = arith.negf %87 : vector<8x128xf32>
    %89 = math.exp %88 : vector<8x128xf32>
    %cst_37 = arith.constant 1.000000e+00 : f32
    %90 = vector.broadcast %cst_37 : f32 to vector<8x128xf32>
    %91 = arith.addf %90, %89 : vector<8x128xf32>
    %92 = arith.divf %90, %91 : vector<8x128xf32>
    %93 = vector.extract_strided_slice %80 {offsets = [0, 256], sizes = [8, 128], strides = [1, 1]} : vector<8x512xf32> to vector<8x128xf32>
    %94 = math.tanh %93 : vector<8x128xf32>
    %95 = vector.extract_strided_slice %80 {offsets = [0, 384], sizes = [8, 128], strides = [1, 1]} : vector<8x512xf32> to vector<8x128xf32>
    %96 = arith.negf %95 : vector<8x128xf32>
    %97 = math.exp %96 : vector<8x128xf32>
    %cst_38 = arith.constant 1.000000e+00 : f32
    %98 = vector.broadcast %cst_38 : f32 to vector<8x128xf32>
    %99 = arith.addf %98, %97 : vector<8x128xf32>
    %100 = arith.divf %98, %99 : vector<8x128xf32>
    %101 = arith.mulf %92, %38 : vector<8x128xf32>
    %102 = arith.mulf %86, %94 : vector<8x128xf32>
    %103 = arith.addf %101, %102 : vector<8x128xf32>
    %104 = math.tanh %103 : vector<8x128xf32>
    %105 = arith.mulf %100, %104 : vector<8x128xf32>
    %106 = arith.truncf %74 : vector<8x128xf32> to vector<8x128xbf16>
    %c0_39 = arith.constant 0 : index
    %c0_40 = arith.constant 0 : index
    %107 = vector.load %arg5[%c0_39, %c0_40] : memref<128x512xbf16, #tpu.memory_space<vmem>>, vector<128x512xbf16>
    %cst_41 = arith.constant dense<0.000000e+00> : vector<8x512xf32>
    %108 = tpu.matmul %106, %107, %cst_41 {dimension_numbers = #tpu.dot_dimension_numbers<[1], [0], [0], [1], [0, 0, 1, 1], [], []>} : vector<8x128xbf16>, vector<128x512xbf16>, vector<8x512xf32> -> vector<8x512xf32>
    %109 = arith.truncf %105 : vector<8x128xf32> to vector<8x128xbf16>
    %c0_42 = arith.constant 0 : index
    %c0_43 = arith.constant 0 : index
    %110 = vector.load %arg4[%c0_42, %c0_43] : memref<128x512xbf16, #tpu.memory_space<vmem>>, vector<128x512xbf16>
    %cst_44 = arith.constant dense<0.000000e+00> : vector<8x512xf32>
    %111 = tpu.matmul %109, %110, %cst_44 {dimension_numbers = #tpu.dot_dimension_numbers<[1], [0], [0], [1], [0, 0, 1, 1], [], []>} : vector<8x128xbf16>, vector<128x512xbf16>, vector<8x512xf32> -> vector<8x512xf32>
    %112 = arith.addf %108, %111 : vector<8x512xf32>
    %c0_45 = arith.constant 0 : index
    %c0_46 = arith.constant 0 : index
    %113 = vector.load %arg6[%c0_45, %c0_46] : memref<8x512xf32, #tpu.memory_space<vmem>>, vector<8x512xf32>
    %114 = arith.addf %112, %113 : vector<8x512xf32>
    %115 = vector.extract_strided_slice %114 {offsets = [0, 0], sizes = [8, 128], strides = [1, 1]} : vector<8x512xf32> to vector<8x128xf32>
    %116 = arith.negf %115 : vector<8x128xf32>
    %117 = math.exp %116 : vector<8x128xf32>
    %cst_47 = arith.constant 1.000000e+00 : f32
    %118 = vector.broadcast %cst_47 : f32 to vector<8x128xf32>
    %119 = arith.addf %118, %117 : vector<8x128xf32>
    %120 = arith.divf %118, %119 : vector<8x128xf32>
    %121 = vector.extract_strided_slice %114 {offsets = [0, 128], sizes = [8, 128], strides = [1, 1]} : vector<8x512xf32> to vector<8x128xf32>
    %122 = arith.negf %121 : vector<8x128xf32>
    %123 = math.exp %122 : vector<8x128xf32>
    %cst_48 = arith.constant 1.000000e+00 : f32
    %124 = vector.broadcast %cst_48 : f32 to vector<8x128xf32>
    %125 = arith.addf %124, %123 : vector<8x128xf32>
    %126 = arith.divf %124, %125 : vector<8x128xf32>
    %127 = vector.extract_strided_slice %114 {offsets = [0, 256], sizes = [8, 128], strides = [1, 1]} : vector<8x512xf32> to vector<8x128xf32>
    %128 = math.tanh %127 : vector<8x128xf32>
    %129 = vector.extract_strided_slice %114 {offsets = [0, 384], sizes = [8, 128], strides = [1, 1]} : vector<8x512xf32> to vector<8x128xf32>
    %130 = arith.negf %129 : vector<8x128xf32>
    %131 = math.exp %130 : vector<8x128xf32>
    %cst_49 = arith.constant 1.000000e+00 : f32
    %132 = vector.broadcast %cst_49 : f32 to vector<8x128xf32>
    %133 = arith.addf %132, %131 : vector<8x128xf32>
    %134 = arith.divf %132, %133 : vector<8x128xf32>
    %135 = arith.mulf %126, %72 : vector<8x128xf32>
    %136 = arith.mulf %120, %128 : vector<8x128xf32>
    %137 = arith.addf %135, %136 : vector<8x128xf32>
    %138 = math.tanh %137 : vector<8x128xf32>
    %139 = arith.mulf %134, %138 : vector<8x128xf32>
    %c8_50 = arith.constant 8 : index
    %c0_51 = arith.constant 0 : index
    %140 = vector.load %arg11[%c8_50, %c0_51] : memref<64x128xf32, #tpu.memory_space<vmem>>, vector<8x128xf32>
    tpu.vector_store %arg11[%c8_50, %c0_51], %139 {strides = array<i32>} : memref<64x128xf32, #tpu.memory_space<vmem>>, vector<8x128xf32>,
    %c16 = arith.constant 16 : index
    %c0_52 = arith.constant 0 : index
    %141 = vector.load %arg10[%c16, %c0_52] : memref<64x512xf32, #tpu.memory_space<vmem>>, vector<8x512xf32>
    %142 = arith.truncf %105 : vector<8x128xf32> to vector<8x128xbf16>
    %c0_53 = arith.constant 0 : index
    %c0_54 = arith.constant 0 : index
    %143 = vector.load %arg3[%c0_53, %c0_54] : memref<128x512xbf16, #tpu.memory_space<vmem>>, vector<128x512xbf16>
    %cst_55 = arith.constant dense<0.000000e+00> : vector<8x512xf32>
    %144 = tpu.matmul %142, %143, %cst_55 {dimension_numbers = #tpu.dot_dimension_numbers<[1], [0], [0], [1], [0, 0, 1, 1], [], []>} : vector<8x128xbf16>, vector<128x512xbf16>, vector<8x512xf32> -> vector<8x512xf32>
    %145 = arith.addf %141, %144 : vector<8x512xf32>
    %146 = vector.extract_strided_slice %145 {offsets = [0, 0], sizes = [8, 128], strides = [1, 1]} : vector<8x512xf32> to vector<8x128xf32>
    %147 = arith.negf %146 : vector<8x128xf32>
    %148 = math.exp %147 : vector<8x128xf32>
    %cst_56 = arith.constant 1.000000e+00 : f32
    %149 = vector.broadcast %cst_56 : f32 to vector<8x128xf32>
    %150 = arith.addf %149, %148 : vector<8x128xf32>
    %151 = arith.divf %149, %150 : vector<8x128xf32>
    %152 = vector.extract_strided_slice %145 {offsets = [0, 128], sizes = [8, 128], strides = [1, 1]} : vector<8x512xf32> to vector<8x128xf32>
    %153 = arith.negf %152 : vector<8x128xf32>
    %154 = math.exp %153 : vector<8x128xf32>
    %cst_57 = arith.constant 1.000000e+00 : f32
    %155 = vector.broadcast %cst_57 : f32 to vector<8x128xf32>
    %156 = arith.addf %155, %154 : vector<8x128xf32>
    %157 = arith.divf %155, %156 : vector<8x128xf32>
    %158 = vector.extract_strided_slice %145 {offsets = [0, 256], sizes = [8, 128], strides = [1, 1]} : vector<8x512xf32> to vector<8x128xf32>
    %159 = math.tanh %158 : vector<8x128xf32>
    %160 = vector.extract_strided_slice %145 {offsets = [0, 384], sizes = [8, 128], strides = [1, 1]} : vector<8x512xf32> to vector<8x128xf32>
    %161 = arith.negf %160 : vector<8x128xf32>
    %162 = math.exp %161 : vector<8x128xf32>
    %cst_58 = arith.constant 1.000000e+00 : f32
    %163 = vector.broadcast %cst_58 : f32 to vector<8x128xf32>
    %164 = arith.addf %163, %162 : vector<8x128xf32>
    %165 = arith.divf %163, %164 : vector<8x128xf32>
    %166 = arith.mulf %157, %103 : vector<8x128xf32>
    %167 = arith.mulf %151, %159 : vector<8x128xf32>
    %168 = arith.addf %166, %167 : vector<8x128xf32>
    %169 = math.tanh %168 : vector<8x128xf32>
    %170 = arith.mulf %165, %169 : vector<8x128xf32>
    %171 = arith.truncf %139 : vector<8x128xf32> to vector<8x128xbf16>
    %c0_59 = arith.constant 0 : index
    %c0_60 = arith.constant 0 : index
    %172 = vector.load %arg5[%c0_59, %c0_60] : memref<128x512xbf16, #tpu.memory_space<vmem>>, vector<128x512xbf16>
    %cst_61 = arith.constant dense<0.000000e+00> : vector<8x512xf32>
    %173 = tpu.matmul %171, %172, %cst_61 {dimension_numbers = #tpu.dot_dimension_numbers<[1], [0], [0], [1], [0, 0, 1, 1], [], []>} : vector<8x128xbf16>, vector<128x512xbf16>, vector<8x512xf32> -> vector<8x512xf32>
    %174 = arith.truncf %170 : vector<8x128xf32> to vector<8x128xbf16>
    %c0_62 = arith.constant 0 : index
    %c0_63 = arith.constant 0 : index
    %175 = vector.load %arg4[%c0_62, %c0_63] : memref<128x512xbf16, #tpu.memory_space<vmem>>, vector<128x512xbf16>
    %cst_64 = arith.constant dense<0.000000e+00> : vector<8x512xf32>
    %176 = tpu.matmul %174, %175, %cst_64 {dimension_numbers = #tpu.dot_dimension_numbers<[1], [0], [0], [1], [0, 0, 1, 1], [], []>} : vector<8x128xbf16>, vector<128x512xbf16>, vector<8x512xf32> -> vector<8x512xf32>
    %177 = arith.addf %173, %176 : vector<8x512xf32>
    %c0_65 = arith.constant 0 : index
    %c0_66 = arith.constant 0 : index
    %178 = vector.load %arg6[%c0_65, %c0_66] : memref<8x512xf32, #tpu.memory_space<vmem>>, vector<8x512xf32>
    %179 = arith.addf %177, %178 : vector<8x512xf32>
    %180 = vector.extract_strided_slice %179 {offsets = [0, 0], sizes = [8, 128], strides = [1, 1]} : vector<8x512xf32> to vector<8x128xf32>
    %181 = arith.negf %180 : vector<8x128xf32>
    %182 = math.exp %181 : vector<8x128xf32>
    %cst_67 = arith.constant 1.000000e+00 : f32
    %183 = vector.broadcast %cst_67 : f32 to vector<8x128xf32>
    %184 = arith.addf %183, %182 : vector<8x128xf32>
    %185 = arith.divf %183, %184 : vector<8x128xf32>
    %186 = vector.extract_strided_slice %179 {offsets = [0, 128], sizes = [8, 128], strides = [1, 1]} : vector<8x512xf32> to vector<8x128xf32>
    %187 = arith.negf %186 : vector<8x128xf32>
    %188 = math.exp %187 : vector<8x128xf32>
    %cst_68 = arith.constant 1.000000e+00 : f32
    %189 = vector.broadcast %cst_68 : f32 to vector<8x128xf32>
    %190 = arith.addf %189, %188 : vector<8x128xf32>
    %191 = arith.divf %189, %190 : vector<8x128xf32>
    %192 = vector.extract_strided_slice %179 {offsets = [0, 256], sizes = [8, 128], strides = [1, 1]} : vector<8x512xf32> to vector<8x128xf32>
    %193 = math.tanh %192 : vector<8x128xf32>
    %194 = vector.extract_strided_slice %179 {offsets = [0, 384], sizes = [8, 128], strides = [1, 1]} : vector<8x512xf32> to vector<8x128xf32>
    %195 = arith.negf %194 : vector<8x128xf32>
    %196 = math.exp %195 : vector<8x128xf32>
    %cst_69 = arith.constant 1.000000e+00 : f32
    %197 = vector.broadcast %cst_69 : f32 to vector<8x128xf32>
    %198 = arith.addf %197, %196 : vector<8x128xf32>
    %199 = arith.divf %197, %198 : vector<8x128xf32>
    %200 = arith.mulf %191, %137 : vector<8x128xf32>
    %201 = arith.mulf %185, %193 : vector<8x128xf32>
    %202 = arith.addf %200, %201 : vector<8x128xf32>
    %203 = math.tanh %202 : vector<8x128xf32>
    %204 = arith.mulf %199, %203 : vector<8x128xf32>
    %c16_70 = arith.constant 16 : index
    %c0_71 = arith.constant 0 : index
    %205 = vector.load %arg11[%c16_70, %c0_71] : memref<64x128xf32, #tpu.memory_space<vmem>>, vector<8x128xf32>
    tpu.vector_store %arg11[%c16_70, %c0_71], %204 {strides = array<i32>} : memref<64x128xf32, #tpu.memory_space<vmem>>, vector<8x128xf32>,
    %c24 = arith.constant 24 : index
    %c0_72 = arith.constant 0 : index
    %206 = vector.load %arg10[%c24, %c0_72] : memref<64x512xf32, #tpu.memory_space<vmem>>, vector<8x512xf32>
    %207 = arith.truncf %170 : vector<8x128xf32> to vector<8x128xbf16>
    %c0_73 = arith.constant 0 : index
    %c0_74 = arith.constant 0 : index
    %208 = vector.load %arg3[%c0_73, %c0_74] : memref<128x512xbf16, #tpu.memory_space<vmem>>, vector<128x512xbf16>
    %cst_75 = arith.constant dense<0.000000e+00> : vector<8x512xf32>
    %209 = tpu.matmul %207, %208, %cst_75 {dimension_numbers = #tpu.dot_dimension_numbers<[1], [0], [0], [1], [0, 0, 1, 1], [], []>} : vector<8x128xbf16>, vector<128x512xbf16>, vector<8x512xf32> -> vector<8x512xf32>
    %210 = arith.addf %206, %209 : vector<8x512xf32>
    %211 = vector.extract_strided_slice %210 {offsets = [0, 0], sizes = [8, 128], strides = [1, 1]} : vector<8x512xf32> to vector<8x128xf32>
    %212 = arith.negf %211 : vector<8x128xf32>
    %213 = math.exp %212 : vector<8x128xf32>
    %cst_76 = arith.constant 1.000000e+00 : f32
    %214 = vector.broadcast %cst_76 : f32 to vector<8x128xf32>
    %215 = arith.addf %214, %213 : vector<8x128xf32>
    %216 = arith.divf %214, %215 : vector<8x128xf32>
    %217 = vector.extract_strided_slice %210 {offsets = [0, 128], sizes = [8, 128], strides = [1, 1]} : vector<8x512xf32> to vector<8x128xf32>
    %218 = arith.negf %217 : vector<8x128xf32>
    %219 = math.exp %218 : vector<8x128xf32>
    %cst_77 = arith.constant 1.000000e+00 : f32
    %220 = vector.broadcast %cst_77 : f32 to vector<8x128xf32>
    %221 = arith.addf %220, %219 : vector<8x128xf32>
    %222 = arith.divf %220, %221 : vector<8x128xf32>
    %223 = vector.extract_strided_slice %210 {offsets = [0, 256], sizes = [8, 128], strides = [1, 1]} : vector<8x512xf32> to vector<8x128xf32>
    %224 = math.tanh %223 : vector<8x128xf32>
    %225 = vector.extract_strided_slice %210 {offsets = [0, 384], sizes = [8, 128], strides = [1, 1]} : vector<8x512xf32> to vector<8x128xf32>
    %226 = arith.negf %225 : vector<8x128xf32>
    %227 = math.exp %226 : vector<8x128xf32>
    %cst_78 = arith.constant 1.000000e+00 : f32
    %228 = vector.broadcast %cst_78 : f32 to vector<8x128xf32>
    %229 = arith.addf %228, %227 : vector<8x128xf32>
    %230 = arith.divf %228, %229 : vector<8x128xf32>
    %231 = arith.mulf %222, %168 : vector<8x128xf32>
    %232 = arith.mulf %216, %224 : vector<8x128xf32>
    %233 = arith.addf %231, %232 : vector<8x128xf32>
    %234 = math.tanh %233 : vector<8x128xf32>
    %235 = arith.mulf %230, %234 : vector<8x128xf32>
    %236 = arith.truncf %204 : vector<8x128xf32> to vector<8x128xbf16>
    %c0_79 = arith.constant 0 : index
    %c0_80 = arith.constant 0 : index
    %237 = vector.load %arg5[%c0_79, %c0_80] : memref<128x512xbf16, #tpu.memory_space<vmem>>, vector<128x512xbf16>
    %cst_81 = arith.constant dense<0.000000e+00> : vector<8x512xf32>
    %238 = tpu.matmul %236, %237, %cst_81 {dimension_numbers = #tpu.dot_dimension_numbers<[1], [0], [0], [1], [0, 0, 1, 1], [], []>} : vector<8x128xbf16>, vector<128x512xbf16>, vector<8x512xf32> -> vector<8x512xf32>
    %239 = arith.truncf %235 : vector<8x128xf32> to vector<8x128xbf16>
    %c0_82 = arith.constant 0 : index
    %c0_83 = arith.constant 0 : index
    %240 = vector.load %arg4[%c0_82, %c0_83] : memref<128x512xbf16, #tpu.memory_space<vmem>>, vector<128x512xbf16>
    %cst_84 = arith.constant dense<0.000000e+00> : vector<8x512xf32>
    %241 = tpu.matmul %239, %240, %cst_84 {dimension_numbers = #tpu.dot_dimension_numbers<[1], [0], [0], [1], [0, 0, 1, 1], [], []>} : vector<8x128xbf16>, vector<128x512xbf16>, vector<8x512xf32> -> vector<8x512xf32>
    %242 = arith.addf %238, %241 : vector<8x512xf32>
    %c0_85 = arith.constant 0 : index
    %c0_86 = arith.constant 0 : index
    %243 = vector.load %arg6[%c0_85, %c0_86] : memref<8x512xf32, #tpu.memory_space<vmem>>, vector<8x512xf32>
    %244 = arith.addf %242, %243 : vector<8x512xf32>
    %245 = vector.extract_strided_slice %244 {offsets = [0, 0], sizes = [8, 128], strides = [1, 1]} : vector<8x512xf32> to vector<8x128xf32>
    %246 = arith.negf %245 : vector<8x128xf32>
    %247 = math.exp %246 : vector<8x128xf32>
    %cst_87 = arith.constant 1.000000e+00 : f32
    %248 = vector.broadcast %cst_87 : f32 to vector<8x128xf32>
    %249 = arith.addf %248, %247 : vector<8x128xf32>
    %250 = arith.divf %248, %249 : vector<8x128xf32>
    %251 = vector.extract_strided_slice %244 {offsets = [0, 128], sizes = [8, 128], strides = [1, 1]} : vector<8x512xf32> to vector<8x128xf32>
    %252 = arith.negf %251 : vector<8x128xf32>
    %253 = math.exp %252 : vector<8x128xf32>
    %cst_88 = arith.constant 1.000000e+00 : f32
    %254 = vector.broadcast %cst_88 : f32 to vector<8x128xf32>
    %255 = arith.addf %254, %253 : vector<8x128xf32>
    %256 = arith.divf %254, %255 : vector<8x128xf32>
    %257 = vector.extract_strided_slice %244 {offsets = [0, 256], sizes = [8, 128], strides = [1, 1]} : vector<8x512xf32> to vector<8x128xf32>
    %258 = math.tanh %257 : vector<8x128xf32>
    %259 = vector.extract_strided_slice %244 {offsets = [0, 384], sizes = [8, 128], strides = [1, 1]} : vector<8x512xf32> to vector<8x128xf32>
    %260 = arith.negf %259 : vector<8x128xf32>
    %261 = math.exp %260 : vector<8x128xf32>
    %cst_89 = arith.constant 1.000000e+00 : f32
    %262 = vector.broadcast %cst_89 : f32 to vector<8x128xf32>
    %263 = arith.addf %262, %261 : vector<8x128xf32>
    %264 = arith.divf %262, %263 : vector<8x128xf32>
    %265 = arith.mulf %256, %202 : vector<8x128xf32>
    %266 = arith.mulf %250, %258 : vector<8x128xf32>
    %267 = arith.addf %265, %266 : vector<8x128xf32>
    %268 = math.tanh %267 : vector<8x128xf32>
    %269 = arith.mulf %264, %268 : vector<8x128xf32>
    %c24_90 = arith.constant 24 : index
    %c0_91 = arith.constant 0 : index
    %270 = vector.load %arg11[%c24_90, %c0_91] : memref<64x128xf32, #tpu.memory_space<vmem>>, vector<8x128xf32>
    tpu.vector_store %arg11[%c24_90, %c0_91], %269 {strides = array<i32>} : memref<64x128xf32, #tpu.memory_space<vmem>>, vector<8x128xf32>,
    %c32 = arith.constant 32 : index
    %c0_92 = arith.constant 0 : index
    %271 = vector.load %arg10[%c32, %c0_92] : memref<64x512xf32, #tpu.memory_space<vmem>>, vector<8x512xf32>
    %272 = arith.truncf %235 : vector<8x128xf32> to vector<8x128xbf16>
    %c0_93 = arith.constant 0 : index
    %c0_94 = arith.constant 0 : index
    %273 = vector.load %arg3[%c0_93, %c0_94] : memref<128x512xbf16, #tpu.memory_space<vmem>>, vector<128x512xbf16>
    %cst_95 = arith.constant dense<0.000000e+00> : vector<8x512xf32>
    %274 = tpu.matmul %272, %273, %cst_95 {dimension_numbers = #tpu.dot_dimension_numbers<[1], [0], [0], [1], [0, 0, 1, 1], [], []>} : vector<8x128xbf16>, vector<128x512xbf16>, vector<8x512xf32> -> vector<8x512xf32>
    %275 = arith.addf %271, %274 : vector<8x512xf32>
    %276 = vector.extract_strided_slice %275 {offsets = [0, 0], sizes = [8, 128], strides = [1, 1]} : vector<8x512xf32> to vector<8x128xf32>
    %277 = arith.negf %276 : vector<8x128xf32>
    %278 = math.exp %277 : vector<8x128xf32>
    %cst_96 = arith.constant 1.000000e+00 : f32
    %279 = vector.broadcast %cst_96 : f32 to vector<8x128xf32>
    %280 = arith.addf %279, %278 : vector<8x128xf32>
    %281 = arith.divf %279, %280 : vector<8x128xf32>
    %282 = vector.extract_strided_slice %275 {offsets = [0, 128], sizes = [8, 128], strides = [1, 1]} : vector<8x512xf32> to vector<8x128xf32>
    %283 = arith.negf %282 : vector<8x128xf32>
    %284 = math.exp %283 : vector<8x128xf32>
    %cst_97 = arith.constant 1.000000e+00 : f32
    %285 = vector.broadcast %cst_97 : f32 to vector<8x128xf32>
    %286 = arith.addf %285, %284 : vector<8x128xf32>
    %287 = arith.divf %285, %286 : vector<8x128xf32>
    %288 = vector.extract_strided_slice %275 {offsets = [0, 256], sizes = [8, 128], strides = [1, 1]} : vector<8x512xf32> to vector<8x128xf32>
    %289 = math.tanh %288 : vector<8x128xf32>
    %290 = vector.extract_strided_slice %275 {offsets = [0, 384], sizes = [8, 128], strides = [1, 1]} : vector<8x512xf32> to vector<8x128xf32>
    %291 = arith.negf %290 : vector<8x128xf32>
    %292 = math.exp %291 : vector<8x128xf32>
    %cst_98 = arith.constant 1.000000e+00 : f32
    %293 = vector.broadcast %cst_98 : f32 to vector<8x128xf32>
    %294 = arith.addf %293, %292 : vector<8x128xf32>
    %295 = arith.divf %293, %294 : vector<8x128xf32>
    %296 = arith.mulf %287, %233 : vector<8x128xf32>
    %297 = arith.mulf %281, %289 : vector<8x128xf32>
    %298 = arith.addf %296, %297 : vector<8x128xf32>
    %299 = math.tanh %298 : vector<8x128xf32>
    %300 = arith.mulf %295, %299 : vector<8x128xf32>
    %301 = arith.truncf %269 : vector<8x128xf32> to vector<8x128xbf16>
    %c0_99 = arith.constant 0 : index
    %c0_100 = arith.constant 0 : index
    %302 = vector.load %arg5[%c0_99, %c0_100] : memref<128x512xbf16, #tpu.memory_space<vmem>>, vector<128x512xbf16>
    %cst_101 = arith.constant dense<0.000000e+00> : vector<8x512xf32>
    %303 = tpu.matmul %301, %302, %cst_101 {dimension_numbers = #tpu.dot_dimension_numbers<[1], [0], [0], [1], [0, 0, 1, 1], [], []>} : vector<8x128xbf16>, vector<128x512xbf16>, vector<8x512xf32> -> vector<8x512xf32>
    %304 = arith.truncf %300 : vector<8x128xf32> to vector<8x128xbf16>
    %c0_102 = arith.constant 0 : index
    %c0_103 = arith.constant 0 : index
    %305 = vector.load %arg4[%c0_102, %c0_103] : memref<128x512xbf16, #tpu.memory_space<vmem>>, vector<128x512xbf16>
    %cst_104 = arith.constant dense<0.000000e+00> : vector<8x512xf32>
    %306 = tpu.matmul %304, %305, %cst_104 {dimension_numbers = #tpu.dot_dimension_numbers<[1], [0], [0], [1], [0, 0, 1, 1], [], []>} : vector<8x128xbf16>, vector<128x512xbf16>, vector<8x512xf32> -> vector<8x512xf32>
    %307 = arith.addf %303, %306 : vector<8x512xf32>
    %c0_105 = arith.constant 0 : index
    %c0_106 = arith.constant 0 : index
    %308 = vector.load %arg6[%c0_105, %c0_106] : memref<8x512xf32, #tpu.memory_space<vmem>>, vector<8x512xf32>
    %309 = arith.addf %307, %308 : vector<8x512xf32>
    %310 = vector.extract_strided_slice %309 {offsets = [0, 0], sizes = [8, 128], strides = [1, 1]} : vector<8x512xf32> to vector<8x128xf32>
    %311 = arith.negf %310 : vector<8x128xf32>
    %312 = math.exp %311 : vector<8x128xf32>
    %cst_107 = arith.constant 1.000000e+00 : f32
    %313 = vector.broadcast %cst_107 : f32 to vector<8x128xf32>
    %314 = arith.addf %313, %312 : vector<8x128xf32>
    %315 = arith.divf %313, %314 : vector<8x128xf32>
    %316 = vector.extract_strided_slice %309 {offsets = [0, 128], sizes = [8, 128], strides = [1, 1]} : vector<8x512xf32> to vector<8x128xf32>
    %317 = arith.negf %316 : vector<8x128xf32>
    %318 = math.exp %317 : vector<8x128xf32>
    %cst_108 = arith.constant 1.000000e+00 : f32
    %319 = vector.broadcast %cst_108 : f32 to vector<8x128xf32>
    %320 = arith.addf %319, %318 : vector<8x128xf32>
    %321 = arith.divf %319, %320 : vector<8x128xf32>
    %322 = vector.extract_strided_slice %309 {offsets = [0, 256], sizes = [8, 128], strides = [1, 1]} : vector<8x512xf32> to vector<8x128xf32>
    %323 = math.tanh %322 : vector<8x128xf32>
    %324 = vector.extract_strided_slice %309 {offsets = [0, 384], sizes = [8, 128], strides = [1, 1]} : vector<8x512xf32> to vector<8x128xf32>
    %325 = arith.negf %324 : vector<8x128xf32>
    %326 = math.exp %325 : vector<8x128xf32>
    %cst_109 = arith.constant 1.000000e+00 : f32
    %327 = vector.broadcast %cst_109 : f32 to vector<8x128xf32>
    %328 = arith.addf %327, %326 : vector<8x128xf32>
    %329 = arith.divf %327, %328 : vector<8x128xf32>
    %330 = arith.mulf %321, %267 : vector<8x128xf32>
    %331 = arith.mulf %315, %323 : vector<8x128xf32>
    %332 = arith.addf %330, %331 : vector<8x128xf32>
    %333 = math.tanh %332 : vector<8x128xf32>
    %334 = arith.mulf %329, %333 : vector<8x128xf32>
    %c32_110 = arith.constant 32 : index
    %c0_111 = arith.constant 0 : index
    %335 = vector.load %arg11[%c32_110, %c0_111] : memref<64x128xf32, #tpu.memory_space<vmem>>, vector<8x128xf32>
    tpu.vector_store %arg11[%c32_110, %c0_111], %334 {strides = array<i32>} : memref<64x128xf32, #tpu.memory_space<vmem>>, vector<8x128xf32>,
    %c40 = arith.constant 40 : index
    %c0_112 = arith.constant 0 : index
    %336 = vector.load %arg10[%c40, %c0_112] : memref<64x512xf32, #tpu.memory_space<vmem>>, vector<8x512xf32>
    %337 = arith.truncf %300 : vector<8x128xf32> to vector<8x128xbf16>
    %c0_113 = arith.constant 0 : index
    %c0_114 = arith.constant 0 : index
    %338 = vector.load %arg3[%c0_113, %c0_114] : memref<128x512xbf16, #tpu.memory_space<vmem>>, vector<128x512xbf16>
    %cst_115 = arith.constant dense<0.000000e+00> : vector<8x512xf32>
    %339 = tpu.matmul %337, %338, %cst_115 {dimension_numbers = #tpu.dot_dimension_numbers<[1], [0], [0], [1], [0, 0, 1, 1], [], []>} : vector<8x128xbf16>, vector<128x512xbf16>, vector<8x512xf32> -> vector<8x512xf32>
    %340 = arith.addf %336, %339 : vector<8x512xf32>
    %341 = vector.extract_strided_slice %340 {offsets = [0, 0], sizes = [8, 128], strides = [1, 1]} : vector<8x512xf32> to vector<8x128xf32>
    %342 = arith.negf %341 : vector<8x128xf32>
    %343 = math.exp %342 : vector<8x128xf32>
    %cst_116 = arith.constant 1.000000e+00 : f32
    %344 = vector.broadcast %cst_116 : f32 to vector<8x128xf32>
    %345 = arith.addf %344, %343 : vector<8x128xf32>
    %346 = arith.divf %344, %345 : vector<8x128xf32>
    %347 = vector.extract_strided_slice %340 {offsets = [0, 128], sizes = [8, 128], strides = [1, 1]} : vector<8x512xf32> to vector<8x128xf32>
    %348 = arith.negf %347 : vector<8x128xf32>
    %349 = math.exp %348 : vector<8x128xf32>
    %cst_117 = arith.constant 1.000000e+00 : f32
    %350 = vector.broadcast %cst_117 : f32 to vector<8x128xf32>
    %351 = arith.addf %350, %349 : vector<8x128xf32>
    %352 = arith.divf %350, %351 : vector<8x128xf32>
    %353 = vector.extract_strided_slice %340 {offsets = [0, 256], sizes = [8, 128], strides = [1, 1]} : vector<8x512xf32> to vector<8x128xf32>
    %354 = math.tanh %353 : vector<8x128xf32>
    %355 = vector.extract_strided_slice %340 {offsets = [0, 384], sizes = [8, 128], strides = [1, 1]} : vector<8x512xf32> to vector<8x128xf32>
    %356 = arith.negf %355 : vector<8x128xf32>
    %357 = math.exp %356 : vector<8x128xf32>
    %cst_118 = arith.constant 1.000000e+00 : f32
    %358 = vector.broadcast %cst_118 : f32 to vector<8x128xf32>
    %359 = arith.addf %358, %357 : vector<8x128xf32>
    %360 = arith.divf %358, %359 : vector<8x128xf32>
    %361 = arith.mulf %352, %298 : vector<8x128xf32>
    %362 = arith.mulf %346, %354 : vector<8x128xf32>
    %363 = arith.addf %361, %362 : vector<8x128xf32>
    %364 = math.tanh %363 : vector<8x128xf32>
    %365 = arith.mulf %360, %364 : vector<8x128xf32>
    %366 = arith.truncf %334 : vector<8x128xf32> to vector<8x128xbf16>
    %c0_119 = arith.constant 0 : index
    %c0_120 = arith.constant 0 : index
    %367 = vector.load %arg5[%c0_119, %c0_120] : memref<128x512xbf16, #tpu.memory_space<vmem>>, vector<128x512xbf16>
    %cst_121 = arith.constant dense<0.000000e+00> : vector<8x512xf32>
    %368 = tpu.matmul %366, %367, %cst_121 {dimension_numbers = #tpu.dot_dimension_numbers<[1], [0], [0], [1], [0, 0, 1, 1], [], []>} : vector<8x128xbf16>, vector<128x512xbf16>, vector<8x512xf32> -> vector<8x512xf32>
    %369 = arith.truncf %365 : vector<8x128xf32> to vector<8x128xbf16>
    %c0_122 = arith.constant 0 : index
    %c0_123 = arith.constant 0 : index
    %370 = vector.load %arg4[%c0_122, %c0_123] : memref<128x512xbf16, #tpu.memory_space<vmem>>, vector<128x512xbf16>
    %cst_124 = arith.constant dense<0.000000e+00> : vector<8x512xf32>
    %371 = tpu.matmul %369, %370, %cst_124 {dimension_numbers = #tpu.dot_dimension_numbers<[1], [0], [0], [1], [0, 0, 1, 1], [], []>} : vector<8x128xbf16>, vector<128x512xbf16>, vector<8x512xf32> -> vector<8x512xf32>
    %372 = arith.addf %368, %371 : vector<8x512xf32>
    %c0_125 = arith.constant 0 : index
    %c0_126 = arith.constant 0 : index
    %373 = vector.load %arg6[%c0_125, %c0_126] : memref<8x512xf32, #tpu.memory_space<vmem>>, vector<8x512xf32>
    %374 = arith.addf %372, %373 : vector<8x512xf32>
    %375 = vector.extract_strided_slice %374 {offsets = [0, 0], sizes = [8, 128], strides = [1, 1]} : vector<8x512xf32> to vector<8x128xf32>
    %376 = arith.negf %375 : vector<8x128xf32>
    %377 = math.exp %376 : vector<8x128xf32>
    %cst_127 = arith.constant 1.000000e+00 : f32
    %378 = vector.broadcast %cst_127 : f32 to vector<8x128xf32>
    %379 = arith.addf %378, %377 : vector<8x128xf32>
    %380 = arith.divf %378, %379 : vector<8x128xf32>
    %381 = vector.extract_strided_slice %374 {offsets = [0, 128], sizes = [8, 128], strides = [1, 1]} : vector<8x512xf32> to vector<8x128xf32>
    %382 = arith.negf %381 : vector<8x128xf32>
    %383 = math.exp %382 : vector<8x128xf32>
    %cst_128 = arith.constant 1.000000e+00 : f32
    %384 = vector.broadcast %cst_128 : f32 to vector<8x128xf32>
    %385 = arith.addf %384, %383 : vector<8x128xf32>
    %386 = arith.divf %384, %385 : vector<8x128xf32>
    %387 = vector.extract_strided_slice %374 {offsets = [0, 256], sizes = [8, 128], strides = [1, 1]} : vector<8x512xf32> to vector<8x128xf32>
    %388 = math.tanh %387 : vector<8x128xf32>
    %389 = vector.extract_strided_slice %374 {offsets = [0, 384], sizes = [8, 128], strides = [1, 1]} : vector<8x512xf32> to vector<8x128xf32>
    %390 = arith.negf %389 : vector<8x128xf32>
    %391 = math.exp %390 : vector<8x128xf32>
    %cst_129 = arith.constant 1.000000e+00 : f32
    %392 = vector.broadcast %cst_129 : f32 to vector<8x128xf32>
    %393 = arith.addf %392, %391 : vector<8x128xf32>
    %394 = arith.divf %392, %393 : vector<8x128xf32>
    %395 = arith.mulf %386, %332 : vector<8x128xf32>
    %396 = arith.mulf %380, %388 : vector<8x128xf32>
    %397 = arith.addf %395, %396 : vector<8x128xf32>
    %398 = math.tanh %397 : vector<8x128xf32>
    %399 = arith.mulf %394, %398 : vector<8x128xf32>
    %c40_130 = arith.constant 40 : index
    %c0_131 = arith.constant 0 : index
    %400 = vector.load %arg11[%c40_130, %c0_131] : memref<64x128xf32, #tpu.memory_space<vmem>>, vector<8x128xf32>
    tpu.vector_store %arg11[%c40_130, %c0_131], %399 {strides = array<i32>} : memref<64x128xf32, #tpu.memory_space<vmem>>, vector<8x128xf32>,
    %c48 = arith.constant 48 : index
    %c0_132 = arith.constant 0 : index
    %401 = vector.load %arg10[%c48, %c0_132] : memref<64x512xf32, #tpu.memory_space<vmem>>, vector<8x512xf32>
    %402 = arith.truncf %365 : vector<8x128xf32> to vector<8x128xbf16>
    %c0_133 = arith.constant 0 : index
    %c0_134 = arith.constant 0 : index
    %403 = vector.load %arg3[%c0_133, %c0_134] : memref<128x512xbf16, #tpu.memory_space<vmem>>, vector<128x512xbf16>
    %cst_135 = arith.constant dense<0.000000e+00> : vector<8x512xf32>
    %404 = tpu.matmul %402, %403, %cst_135 {dimension_numbers = #tpu.dot_dimension_numbers<[1], [0], [0], [1], [0, 0, 1, 1], [], []>} : vector<8x128xbf16>, vector<128x512xbf16>, vector<8x512xf32> -> vector<8x512xf32>
    %405 = arith.addf %401, %404 : vector<8x512xf32>
    %406 = vector.extract_strided_slice %405 {offsets = [0, 0], sizes = [8, 128], strides = [1, 1]} : vector<8x512xf32> to vector<8x128xf32>
    %407 = arith.negf %406 : vector<8x128xf32>
    %408 = math.exp %407 : vector<8x128xf32>
    %cst_136 = arith.constant 1.000000e+00 : f32
    %409 = vector.broadcast %cst_136 : f32 to vector<8x128xf32>
    %410 = arith.addf %409, %408 : vector<8x128xf32>
    %411 = arith.divf %409, %410 : vector<8x128xf32>
    %412 = vector.extract_strided_slice %405 {offsets = [0, 128], sizes = [8, 128], strides = [1, 1]} : vector<8x512xf32> to vector<8x128xf32>
    %413 = arith.negf %412 : vector<8x128xf32>
    %414 = math.exp %413 : vector<8x128xf32>
    %cst_137 = arith.constant 1.000000e+00 : f32
    %415 = vector.broadcast %cst_137 : f32 to vector<8x128xf32>
    %416 = arith.addf %415, %414 : vector<8x128xf32>
    %417 = arith.divf %415, %416 : vector<8x128xf32>
    %418 = vector.extract_strided_slice %405 {offsets = [0, 256], sizes = [8, 128], strides = [1, 1]} : vector<8x512xf32> to vector<8x128xf32>
    %419 = math.tanh %418 : vector<8x128xf32>
    %420 = vector.extract_strided_slice %405 {offsets = [0, 384], sizes = [8, 128], strides = [1, 1]} : vector<8x512xf32> to vector<8x128xf32>
    %421 = arith.negf %420 : vector<8x128xf32>
    %422 = math.exp %421 : vector<8x128xf32>
    %cst_138 = arith.constant 1.000000e+00 : f32
    %423 = vector.broadcast %cst_138 : f32 to vector<8x128xf32>
    %424 = arith.addf %423, %422 : vector<8x128xf32>
    %425 = arith.divf %423, %424 : vector<8x128xf32>
    %426 = arith.mulf %417, %363 : vector<8x128xf32>
    %427 = arith.mulf %411, %419 : vector<8x128xf32>
    %428 = arith.addf %426, %427 : vector<8x128xf32>
    %429 = math.tanh %428 : vector<8x128xf32>
    %430 = arith.mulf %425, %429 : vector<8x128xf32>
    %431 = arith.truncf %399 : vector<8x128xf32> to vector<8x128xbf16>
    %c0_139 = arith.constant 0 : index
    %c0_140 = arith.constant 0 : index
    %432 = vector.load %arg5[%c0_139, %c0_140] : memref<128x512xbf16, #tpu.memory_space<vmem>>, vector<128x512xbf16>
    %cst_141 = arith.constant dense<0.000000e+00> : vector<8x512xf32>
    %433 = tpu.matmul %431, %432, %cst_141 {dimension_numbers = #tpu.dot_dimension_numbers<[1], [0], [0], [1], [0, 0, 1, 1], [], []>} : vector<8x128xbf16>, vector<128x512xbf16>, vector<8x512xf32> -> vector<8x512xf32>
    %434 = arith.truncf %430 : vector<8x128xf32> to vector<8x128xbf16>
    %c0_142 = arith.constant 0 : index
    %c0_143 = arith.constant 0 : index
    %435 = vector.load %arg4[%c0_142, %c0_143] : memref<128x512xbf16, #tpu.memory_space<vmem>>, vector<128x512xbf16>
    %cst_144 = arith.constant dense<0.000000e+00> : vector<8x512xf32>
    %436 = tpu.matmul %434, %435, %cst_144 {dimension_numbers = #tpu.dot_dimension_numbers<[1], [0], [0], [1], [0, 0, 1, 1], [], []>} : vector<8x128xbf16>, vector<128x512xbf16>, vector<8x512xf32> -> vector<8x512xf32>
    %437 = arith.addf %433, %436 : vector<8x512xf32>
    %c0_145 = arith.constant 0 : index
    %c0_146 = arith.constant 0 : index
    %438 = vector.load %arg6[%c0_145, %c0_146] : memref<8x512xf32, #tpu.memory_space<vmem>>, vector<8x512xf32>
    %439 = arith.addf %437, %438 : vector<8x512xf32>
    %440 = vector.extract_strided_slice %439 {offsets = [0, 0], sizes = [8, 128], strides = [1, 1]} : vector<8x512xf32> to vector<8x128xf32>
    %441 = arith.negf %440 : vector<8x128xf32>
    %442 = math.exp %441 : vector<8x128xf32>
    %cst_147 = arith.constant 1.000000e+00 : f32
    %443 = vector.broadcast %cst_147 : f32 to vector<8x128xf32>
    %444 = arith.addf %443, %442 : vector<8x128xf32>
    %445 = arith.divf %443, %444 : vector<8x128xf32>
    %446 = vector.extract_strided_slice %439 {offsets = [0, 128], sizes = [8, 128], strides = [1, 1]} : vector<8x512xf32> to vector<8x128xf32>
    %447 = arith.negf %446 : vector<8x128xf32>
    %448 = math.exp %447 : vector<8x128xf32>
    %cst_148 = arith.constant 1.000000e+00 : f32
    %449 = vector.broadcast %cst_148 : f32 to vector<8x128xf32>
    %450 = arith.addf %449, %448 : vector<8x128xf32>
    %451 = arith.divf %449, %450 : vector<8x128xf32>
    %452 = vector.extract_strided_slice %439 {offsets = [0, 256], sizes = [8, 128], strides = [1, 1]} : vector<8x512xf32> to vector<8x128xf32>
    %453 = math.tanh %452 : vector<8x128xf32>
    %454 = vector.extract_strided_slice %439 {offsets = [0, 384], sizes = [8, 128], strides = [1, 1]} : vector<8x512xf32> to vector<8x128xf32>
    %455 = arith.negf %454 : vector<8x128xf32>
    %456 = math.exp %455 : vector<8x128xf32>
    %cst_149 = arith.constant 1.000000e+00 : f32
    %457 = vector.broadcast %cst_149 : f32 to vector<8x128xf32>
    %458 = arith.addf %457, %456 : vector<8x128xf32>
    %459 = arith.divf %457, %458 : vector<8x128xf32>
    %460 = arith.mulf %451, %397 : vector<8x128xf32>
    %461 = arith.mulf %445, %453 : vector<8x128xf32>
    %462 = arith.addf %460, %461 : vector<8x128xf32>
    %463 = math.tanh %462 : vector<8x128xf32>
    %464 = arith.mulf %459, %463 : vector<8x128xf32>
    %c48_150 = arith.constant 48 : index
    %c0_151 = arith.constant 0 : index
    %465 = vector.load %arg11[%c48_150, %c0_151] : memref<64x128xf32, #tpu.memory_space<vmem>>, vector<8x128xf32>
    tpu.vector_store %arg11[%c48_150, %c0_151], %464 {strides = array<i32>} : memref<64x128xf32, #tpu.memory_space<vmem>>, vector<8x128xf32>,
    %c56 = arith.constant 56 : index
    %c0_152 = arith.constant 0 : index
    %466 = vector.load %arg10[%c56, %c0_152] : memref<64x512xf32, #tpu.memory_space<vmem>>, vector<8x512xf32>
    %467 = arith.truncf %430 : vector<8x128xf32> to vector<8x128xbf16>
    %c0_153 = arith.constant 0 : index
    %c0_154 = arith.constant 0 : index
    %468 = vector.load %arg3[%c0_153, %c0_154] : memref<128x512xbf16, #tpu.memory_space<vmem>>, vector<128x512xbf16>
    %cst_155 = arith.constant dense<0.000000e+00> : vector<8x512xf32>
    %469 = tpu.matmul %467, %468, %cst_155 {dimension_numbers = #tpu.dot_dimension_numbers<[1], [0], [0], [1], [0, 0, 1, 1], [], []>} : vector<8x128xbf16>, vector<128x512xbf16>, vector<8x512xf32> -> vector<8x512xf32>
    %470 = arith.addf %466, %469 : vector<8x512xf32>
    %471 = vector.extract_strided_slice %470 {offsets = [0, 0], sizes = [8, 128], strides = [1, 1]} : vector<8x512xf32> to vector<8x128xf32>
    %472 = arith.negf %471 : vector<8x128xf32>
    %473 = math.exp %472 : vector<8x128xf32>
    %cst_156 = arith.constant 1.000000e+00 : f32
    %474 = vector.broadcast %cst_156 : f32 to vector<8x128xf32>
    %475 = arith.addf %474, %473 : vector<8x128xf32>
    %476 = arith.divf %474, %475 : vector<8x128xf32>
    %477 = vector.extract_strided_slice %470 {offsets = [0, 128], sizes = [8, 128], strides = [1, 1]} : vector<8x512xf32> to vector<8x128xf32>
    %478 = arith.negf %477 : vector<8x128xf32>
    %479 = math.exp %478 : vector<8x128xf32>
    %cst_157 = arith.constant 1.000000e+00 : f32
    %480 = vector.broadcast %cst_157 : f32 to vector<8x128xf32>
    %481 = arith.addf %480, %479 : vector<8x128xf32>
    %482 = arith.divf %480, %481 : vector<8x128xf32>
    %483 = vector.extract_strided_slice %470 {offsets = [0, 256], sizes = [8, 128], strides = [1, 1]} : vector<8x512xf32> to vector<8x128xf32>
    %484 = math.tanh %483 : vector<8x128xf32>
    %485 = vector.extract_strided_slice %470 {offsets = [0, 384], sizes = [8, 128], strides = [1, 1]} : vector<8x512xf32> to vector<8x128xf32>
    %486 = arith.negf %485 : vector<8x128xf32>
    %487 = math.exp %486 : vector<8x128xf32>
    %cst_158 = arith.constant 1.000000e+00 : f32
    %488 = vector.broadcast %cst_158 : f32 to vector<8x128xf32>
    %489 = arith.addf %488, %487 : vector<8x128xf32>
    %490 = arith.divf %488, %489 : vector<8x128xf32>
    %491 = arith.mulf %482, %428 : vector<8x128xf32>
    %492 = arith.mulf %476, %484 : vector<8x128xf32>
    %493 = arith.addf %491, %492 : vector<8x128xf32>
    %494 = math.tanh %493 : vector<8x128xf32>
    %495 = arith.mulf %490, %494 : vector<8x128xf32>
    %496 = arith.truncf %464 : vector<8x128xf32> to vector<8x128xbf16>
    %c0_159 = arith.constant 0 : index
    %c0_160 = arith.constant 0 : index
    %497 = vector.load %arg5[%c0_159, %c0_160] : memref<128x512xbf16, #tpu.memory_space<vmem>>, vector<128x512xbf16>
    %cst_161 = arith.constant dense<0.000000e+00> : vector<8x512xf32>
    %498 = tpu.matmul %496, %497, %cst_161 {dimension_numbers = #tpu.dot_dimension_numbers<[1], [0], [0], [1], [0, 0, 1, 1], [], []>} : vector<8x128xbf16>, vector<128x512xbf16>, vector<8x512xf32> -> vector<8x512xf32>
    %499 = arith.truncf %495 : vector<8x128xf32> to vector<8x128xbf16>
    %c0_162 = arith.constant 0 : index
    %c0_163 = arith.constant 0 : index
    %500 = vector.load %arg4[%c0_162, %c0_163] : memref<128x512xbf16, #tpu.memory_space<vmem>>, vector<128x512xbf16>
    %cst_164 = arith.constant dense<0.000000e+00> : vector<8x512xf32>
    %501 = tpu.matmul %499, %500, %cst_164 {dimension_numbers = #tpu.dot_dimension_numbers<[1], [0], [0], [1], [0, 0, 1, 1], [], []>} : vector<8x128xbf16>, vector<128x512xbf16>, vector<8x512xf32> -> vector<8x512xf32>
    %502 = arith.addf %498, %501 : vector<8x512xf32>
    %c0_165 = arith.constant 0 : index
    %c0_166 = arith.constant 0 : index
    %503 = vector.load %arg6[%c0_165, %c0_166] : memref<8x512xf32, #tpu.memory_space<vmem>>, vector<8x512xf32>
    %504 = arith.addf %502, %503 : vector<8x512xf32>
    %505 = vector.extract_strided_slice %504 {offsets = [0, 0], sizes = [8, 128], strides = [1, 1]} : vector<8x512xf32> to vector<8x128xf32>
    %506 = arith.negf %505 : vector<8x128xf32>
    %507 = math.exp %506 : vector<8x128xf32>
    %cst_167 = arith.constant 1.000000e+00 : f32
    %508 = vector.broadcast %cst_167 : f32 to vector<8x128xf32>
    %509 = arith.addf %508, %507 : vector<8x128xf32>
    %510 = arith.divf %508, %509 : vector<8x128xf32>
    %511 = vector.extract_strided_slice %504 {offsets = [0, 128], sizes = [8, 128], strides = [1, 1]} : vector<8x512xf32> to vector<8x128xf32>
    %512 = arith.negf %511 : vector<8x128xf32>
    %513 = math.exp %512 : vector<8x128xf32>
    %cst_168 = arith.constant 1.000000e+00 : f32
    %514 = vector.broadcast %cst_168 : f32 to vector<8x128xf32>
    %515 = arith.addf %514, %513 : vector<8x128xf32>
    %516 = arith.divf %514, %515 : vector<8x128xf32>
    %517 = vector.extract_strided_slice %504 {offsets = [0, 256], sizes = [8, 128], strides = [1, 1]} : vector<8x512xf32> to vector<8x128xf32>
    %518 = math.tanh %517 : vector<8x128xf32>
    %519 = vector.extract_strided_slice %504 {offsets = [0, 384], sizes = [8, 128], strides = [1, 1]} : vector<8x512xf32> to vector<8x128xf32>
    %520 = arith.negf %519 : vector<8x128xf32>
    %521 = math.exp %520 : vector<8x128xf32>
    %cst_169 = arith.constant 1.000000e+00 : f32
    %522 = vector.broadcast %cst_169 : f32 to vector<8x128xf32>
    %523 = arith.addf %522, %521 : vector<8x128xf32>
    %524 = arith.divf %522, %523 : vector<8x128xf32>
    %525 = arith.mulf %516, %462 : vector<8x128xf32>
    %526 = arith.mulf %510, %518 : vector<8x128xf32>
    %527 = arith.addf %525, %526 : vector<8x128xf32>
    %528 = math.tanh %527 : vector<8x128xf32>
    %529 = arith.mulf %524, %528 : vector<8x128xf32>
    %c56_170 = arith.constant 56 : index
    %c0_171 = arith.constant 0 : index
    %530 = vector.load %arg11[%c56_170, %c0_171] : memref<64x128xf32, #tpu.memory_space<vmem>>, vector<8x128xf32>
    tpu.vector_store %arg11[%c56_170, %c0_171], %529 {strides = array<i32>} : memref<64x128xf32, #tpu.memory_space<vmem>>, vector<8x128xf32>,
    %c0_172 = arith.constant 0 : index
    %c0_173 = arith.constant 0 : index
    %531 = vector.load %arg11[%c0_172, %c0_173] : memref<64x128xf32, #tpu.memory_space<vmem>>, vector<64x128xf32>
    %c0_174 = arith.constant 0 : index
    %c0_175 = arith.constant 0 : index
    %532 = vector.load %arg7[%c0_174, %c0_175] : memref<128x128xf32, #tpu.memory_space<vmem>>, vector<128x128xf32>
    %cst_176 = arith.constant dense<0.000000e+00> : vector<64x128xf32>
    %533 = tpu.matmul %531, %532, %cst_176 {dimension_numbers = #tpu.dot_dimension_numbers<[1], [0], [0], [1], [0, 0, 1, 1], [], []>} : vector<64x128xf32>, vector<128x128xf32>, vector<64x128xf32> -> vector<64x128xf32>
    %c0_177 = arith.constant 0 : index
    %c0_178 = arith.constant 0 : index
    %534 = vector.load %arg8[%c0_177, %c0_178] : memref<1x128xf32, #tpu.memory_space<vmem>>, vector<1x128xf32>
    %535 = vector.broadcast %534 : vector<1x128xf32> to vector<64x128xf32>
    %536 = arith.addf %533, %535 : vector<64x128xf32>
    %537 = vector.extract_strided_slice %536 {offsets = [0, 0], sizes = [8, 128], strides = [1, 1]} : vector<64x128xf32> to vector<8x128xf32>
    %c0_179 = arith.constant 0 : index
    %c0_180 = arith.constant 0 : index
    %538 = vector.load %arg9[%c0_179, %c0_180] : memref<8x1024xf32, #tpu.memory_space<vmem>>, vector<8x128xf32>
    tpu.vector_store %arg9[%c0_179, %c0_180], %537 {strides = array<i32>} : memref<8x1024xf32, #tpu.memory_space<vmem>>, vector<8x128xf32>,
    %539 = vector.extract_strided_slice %536 {offsets = [8, 0], sizes = [8, 128], strides = [1, 1]} : vector<64x128xf32> to vector<8x128xf32>
    %c0_181 = arith.constant 0 : index
    %c128 = arith.constant 128 : index
    %540 = vector.load %arg9[%c0_181, %c128] : memref<8x1024xf32, #tpu.memory_space<vmem>>, vector<8x128xf32>
    tpu.vector_store %arg9[%c0_181, %c128], %539 {strides = array<i32>} : memref<8x1024xf32, #tpu.memory_space<vmem>>, vector<8x128xf32>,
    %541 = vector.extract_strided_slice %536 {offsets = [16, 0], sizes = [8, 128], strides = [1, 1]} : vector<64x128xf32> to vector<8x128xf32>
    %c0_182 = arith.constant 0 : index
    %c256 = arith.constant 256 : index
    %542 = vector.load %arg9[%c0_182, %c256] : memref<8x1024xf32, #tpu.memory_space<vmem>>, vector<8x128xf32>
    tpu.vector_store %arg9[%c0_182, %c256], %541 {strides = array<i32>} : memref<8x1024xf32, #tpu.memory_space<vmem>>, vector<8x128xf32>,
    %543 = vector.extract_strided_slice %536 {offsets = [24, 0], sizes = [8, 128], strides = [1, 1]} : vector<64x128xf32> to vector<8x128xf32>
    %c0_183 = arith.constant 0 : index
    %c384 = arith.constant 384 : index
    %544 = vector.load %arg9[%c0_183, %c384] : memref<8x1024xf32, #tpu.memory_space<vmem>>, vector<8x128xf32>
    tpu.vector_store %arg9[%c0_183, %c384], %543 {strides = array<i32>} : memref<8x1024xf32, #tpu.memory_space<vmem>>, vector<8x128xf32>,
    %545 = vector.extract_strided_slice %536 {offsets = [32, 0], sizes = [8, 128], strides = [1, 1]} : vector<64x128xf32> to vector<8x128xf32>
    %c0_184 = arith.constant 0 : index
    %c512 = arith.constant 512 : index
    %546 = vector.load %arg9[%c0_184, %c512] : memref<8x1024xf32, #tpu.memory_space<vmem>>, vector<8x128xf32>
    tpu.vector_store %arg9[%c0_184, %c512], %545 {strides = array<i32>} : memref<8x1024xf32, #tpu.memory_space<vmem>>, vector<8x128xf32>,
    %547 = vector.extract_strided_slice %536 {offsets = [40, 0], sizes = [8, 128], strides = [1, 1]} : vector<64x128xf32> to vector<8x128xf32>
    %c0_185 = arith.constant 0 : index
    %c640 = arith.constant 640 : index
    %548 = vector.load %arg9[%c0_185, %c640] : memref<8x1024xf32, #tpu.memory_space<vmem>>, vector<8x128xf32>
    tpu.vector_store %arg9[%c0_185, %c640], %547 {strides = array<i32>} : memref<8x1024xf32, #tpu.memory_space<vmem>>, vector<8x128xf32>,
    %549 = vector.extract_strided_slice %536 {offsets = [48, 0], sizes = [8, 128], strides = [1, 1]} : vector<64x128xf32> to vector<8x128xf32>
    %c0_186 = arith.constant 0 : index
    %c768 = arith.constant 768 : index
    %550 = vector.load %arg9[%c0_186, %c768] : memref<8x1024xf32, #tpu.memory_space<vmem>>, vector<8x128xf32>
    tpu.vector_store %arg9[%c0_186, %c768], %549 {strides = array<i32>} : memref<8x1024xf32, #tpu.memory_space<vmem>>, vector<8x128xf32>,
    %551 = vector.extract_strided_slice %536 {offsets = [56, 0], sizes = [8, 128], strides = [1, 1]} : vector<64x128xf32> to vector<8x128xf32>
    %c0_187 = arith.constant 0 : index
    %c896 = arith.constant 896 : index
    %552 = vector.load %arg9[%c0_187, %c896] : memref<8x1024xf32, #tpu.memory_space<vmem>>, vector<8x128xf32>
    tpu.vector_store %arg9[%c0_187, %c896], %551 {strides = array<i32>} : memref<8x1024xf32, #tpu.memory_space<vmem>>, vector<8x128xf32>,
    return
  }
}

</mosaic_0001>

<bundles_post_ra>
// kernel: flow_lstm_forward.1
= control target key start
LH: loop header
LB: loop body
LE: loop exit
PB: predicated region body
PF: predicated region fallthrough
CT: control target
= control target key end

     0   :  { %14 = vsyncpa [#allocation5], 0  ;;  %s11701_s0 = inlined_call_operand.vmem [shape: f32[64,128], index: 0, kind: input, shape index: {}]   ;;  %s11702_s1 = inlined_call_operand.hbm [shape: f32[128,512], index: 1, kind: input, shape index: {}]   ;;  %s11703_s2 = inlined_call_operand.vmem [shape: f32[1,512], index: 2, kind: input, shape index: {}]   ;;  %s11704_s3 = inlined_call_operand.hbm [shape: bf16[128,512], index: 3, kind: input, shape index: {}]   ;;  %s11705_s4 = inlined_call_operand.hbm [shape: bf16[128,512], index: 4, kind: input, shape index: {}]   ;;  %s11706_s5 = inlined_call_operand.hbm [shape: bf16[128,512], index: 5, kind: input, shape index: {}]   ;;  %s11707_s6 = inlined_call_operand.hbm [shape: f32[8,512], index: 6, kind: input, shape index: {}]   ;;  %s11708_s7 = inlined_call_operand.vmem [shape: f32[128,128], index: 7, kind: input, shape index: {}]   ;;  %s11709_s8 = inlined_call_operand.vmem [shape: f32[1,128], index: 8, kind: input, shape index: {}]   ;;  %s11710_s9 = inlined_call_operand.vmem [shape: f32[8,1024], index: 9, kind: output, shape index: {}]  }
   0x1   :  { %15 = vsyncpa [#allocation7], 0 }
   0x2   :  { %16 = vsyncpa [#allocation10], 0  ;;  %s9693_s30 = smov [#allocation6]   ;;  %s9577_s13 = scalar_lea.hbm %s11704_s3, 4096 }
   0x3   :  { %s38_s10 = sshll.u32 %s9693_s30, 4  ;;  %p9578_p0 = scmp.ne.s32.totalorder %s11704_s3, %s9577_s13  ;;  %s39_s10 = int_to_ptr.vmem [resolvable:$true] %s38_s10 }
   0x4   :  { %p9581_p1 = scmp.lt.u32.totalorder %s9577_s13, %s11704_s3 }
   0x6   :  { %p9583_p2 = pnand %p9581_p1, %p9578_p0 }
   0x8   :  { %9586 = shalt.err (!%p9583_p2)
}
   0x9   :  { %s9587_s18 = scalar_lea.vmem %s39_s10, 4096  ;;  %p9592_p4 = scmp.lt.s32.totalorder %s39_s10, %s39_s10 }
   0xa   :  { %p9588_p3 = scmp.ne.s32.totalorder %s39_s10, %s9587_s18  ;;  %p9593_p5 = scmp.lt.s32.totalorder %s9587_s18, %s9587_s18 }
   0xc   :  { %p9594_p6 = por %p9593_p5, %p9592_p4 }
   0xe   :  { %p9595_p7 = pnand %p9594_p6, %p9588_p3 }
  0x10   :  { %9598 = shalt.err (!%p9595_p7)
}
  0x11   :  { %s9694_s19 = smov 256   ;;  %s9695_s20 = smov 16  }
  0x12   :  { %44 = dma.hbm_to_vmem [thread:$0]  %s11704_s3, 4096, %s39_s10, [#allocation7], %s9694_s19, %s9694_s19, %s9695_s20  }
  0x13   :  { %s9696_s23 = smov [#allocation9]   ;;  %s9697_s25 = smov [#allocation4]  }
  0x14   :  { %s62_s24 = sshll.u32 %s9696_s23, 4  ;;  %s24_s26 = sshll.u32 %s9697_s25, 4  ;;  %s63_s24 = int_to_ptr.vmem [resolvable:$true] %s62_s24  ;;  %s25_s26 = int_to_ptr.vmem [resolvable:$true] %s24_s26 }
  0x15   :  { %s9599_s29 = scalar_lea.hbm %s11706_s5, 4096 }
  0x16   :  { %p9600_p8 = scmp.ne.s32.totalorder %s11706_s5, %s9599_s29  ;;  %p9603_p9 = scmp.lt.u32.totalorder %s9599_s29, %s11706_s5 }
  0x18   :  { %p9605_p10 = pnand %p9603_p9, %p9600_p8 }
  0x1a   :  { %9608 = shalt.err (!%p9605_p10)
}
  0x1b   :  { %s9609_s3 = scalar_lea.vmem %s63_s24, 4096  ;;  %p9614_p12 = scmp.lt.s32.totalorder %s63_s24, %s63_s24 }
  0x1c   :  { %p9610_p11 = scmp.ne.s32.totalorder %s63_s24, %s9609_s3  ;;  %p9615_p13 = scmp.lt.s32.totalorder %s9609_s3, %s9609_s3 }
  0x1e   :  { %p9616_p0 = por %p9615_p13, %p9614_p12 }
  0x20   :  { %p9617_p1 = pnand %p9616_p0, %p9610_p11 }
  0x22   :  { %9620 = shalt.err (!%p9617_p1)
}
  0x23   :  { %68 = dma.hbm_to_vmem [thread:$0]  %s11706_s5, 4096, %s63_s24, [#allocation10], %s9694_s19, %s9694_s19, %s9695_s20  }
  0x24   :  { %s9621_s17 = scalar_lea.hbm %s11702_s1, 8192 }
  0x25   :  { %p9622_p2 = scmp.ne.s32.totalorder %s11702_s1, %s9621_s17  ;;  %p9625_p3 = scmp.lt.u32.totalorder %s9621_s17, %s11702_s1 }
  0x27   :  { %p9627_p4 = pnand %p9625_p3, %p9622_p2 }
  0x29   :  { %9630 = shalt.err (!%p9627_p4)
}
  0x2a   :  { %s9631_s25 = scalar_lea.vmem %s25_s26, 8192  ;;  %p9636_p6 = scmp.lt.s32.totalorder %s25_s26, %s25_s26 }
  0x2b   :  { %p9632_p5 = scmp.ne.s32.totalorder %s25_s26, %s9631_s25  ;;  %p9637_p7 = scmp.lt.s32.totalorder %s9631_s25, %s9631_s25 }
  0x2d   :  { %p9638_p8 = por %p9637_p7, %p9636_p6 }
  0x2f   :  { %p9639_p9 = pnand %p9638_p8, %p9632_p5 }
  0x31   :  { %9642 = shalt.err (!%p9639_p9)
}
  0x32   :  { %s9698_s5 = smov 512   ;;  %s9699_s24 = smov 32  }
  0x33   :  { %30 = dma.hbm_to_vmem [thread:$0]  %s11702_s1, 8192, %s25_s26, [#allocation5], %s9698_s5, %s9698_s5, %s9699_s24  }
  0x34   :  { %s9700_s29 = smov [#allocation8]   ;;  %s9701_s11 = smov [#allocation11]  }
  0x35   :  { %s50_s30 = sshll.u32 %s9700_s29, 4  ;;  %s75_s12 = sshll.u32 %s9701_s11, 4  ;;  %s51_s30 = int_to_ptr.vmem [resolvable:$true] %s50_s30  ;;  %s76_s12 = int_to_ptr.vmem [resolvable:$true] %s75_s12 }
  0x36   :  { %s9643_s10 = scalar_lea.hbm %s11705_s4, 4096 }
  0x37   :  { %p9644_p10 = scmp.ne.s32.totalorder %s11705_s4, %s9643_s10  ;;  %p9647_p11 = scmp.lt.u32.totalorder %s9643_s10, %s11705_s4 }
  0x39   :  { %p9649_p12 = pnand %p9647_p11, %p9644_p10 }
  0x3b   :  { %9652 = shalt.err (!%p9649_p12)
}
  0x3c   :  { %s9653_s1 = scalar_lea.vmem %s51_s30, 4096  ;;  %p9658_p0 = scmp.lt.s32.totalorder %s51_s30, %s51_s30 }
  0x3d   :  { %p9654_p13 = scmp.ne.s32.totalorder %s51_s30, %s9653_s1  ;;  %p9659_p1 = scmp.lt.s32.totalorder %s9653_s1, %s9653_s1 }
  0x3f   :  { %p9660_p2 = por %p9659_p1, %p9658_p0 }
  0x41   :  { %p9661_p3 = pnand %p9660_p2, %p9654_p13 }
  0x43   :  { %9664 = shalt.err (!%p9661_p3)
}
  0x44   :  { %56 = dma.hbm_to_vmem [thread:$0]  %s11705_s4, 4096, %s51_s30, [#allocation7], %s9694_s19, %s9694_s19, %s9695_s20  }
  0x45   :  { %s9665_s23 = scalar_lea.hbm %s11707_s6, 512 }
  0x46   :  { %p9666_p4 = scmp.ne.s32.totalorder %s11707_s6, %s9665_s23  ;;  %p9669_p5 = scmp.lt.u32.totalorder %s9665_s23, %s11707_s6 }
  0x48   :  { %p9671_p6 = pnand %p9669_p5, %p9666_p4 }
  0x4a   :  { %9674 = shalt.err (!%p9671_p6)
}
  0x4b   :  { %s9675_s28 = scalar_lea.vmem %s76_s12, 512  ;;  %p9680_p8 = scmp.lt.s32.totalorder %s76_s12, %s76_s12 }
  0x4c   :  { %p9676_p7 = scmp.ne.s32.totalorder %s76_s12, %s9675_s28  ;;  %p9681_p9 = scmp.lt.s32.totalorder %s9675_s28, %s9675_s28 }
  0x4e   :  { %p9682_p10 = por %p9681_p9, %p9680_p8 }
  0x50   :  { %p9683_p11 = pnand %p9682_p10, %p9676_p7 }
  0x52   :  { %9686 = shalt.err (!%p9683_p11)
}
  0x53   :  { %78 = dma.hbm_to_vmem [thread:$0]  %s11707_s6, 512, %s76_s12, [#allocation10]  }
  0x54   :  { %9687 = dma.done.wait [#allocation5], 8192  }
  0x55   :  { %9688 = vsyncadd [#allocation5], 4294959104 }
  0x56   :  { %9689 = dma.done.wait [#allocation7], 8192  }
  0x57   :  { %9690 = vsyncadd [#allocation7], 4294959104 }
  0x58   :  { %9691 = dma.done.wait [#allocation10], 4608  }
  0x59   :  { %9692 = vsyncadd [#allocation10], 4294962688  ;;  %v9702_v0 = vmov 0.0   ;;  %v11711_v1 = vmov 0   ;;  %v108_v2 = vld [vmem:[#allocation4 + $0x8] sm:$0xff]  ;;  %v107_v4 = vld [vmem:[#allocation4] sm:$0xff] }
  0x5a   :  { %257 = vmatprep.mubr.f32.mxu1 %v9702_v0  ;;  %679 = vmatprep.mubr.bf16.mxu0 %v11711_v1  ;;  %v112_v3 = vld [vmem:[#allocation4 + $0x28] sm:$0xff]  ;;  %v111_v6 = vld [vmem:[#allocation4 + $0x20] sm:$0xff] }
  0x5b   :  { %v8598_v5 = vpack.c.bf16 %v112_v3, %v108_v2  ;;  %v8600_v7 = vpack.c.bf16 %v111_v6, %v107_v4  ;;  %v8705_v8 = vld [vmem:[#allocation6 + $0x4] ss:$16 sps:$4 sm:$0xff]   ;;  %v8707_v9 = vld [vmem:[#allocation6] ss:$16 sps:$4 sm:$0xff]   ;;  %v116_v10 = vld [vmem:[#allocation4 + $0x48] sm:$0xff] }
  0x5c   :  { %v120_v11 = vld [vmem:[#allocation4 + $0x68] sm:$0xff]  ;;  %v115_v12 = vld [vmem:[#allocation4 + $0x40] sm:$0xff]  ;;  %647 = vmatprep.subr.bf16.mxu0 %v8705_v8  ;;  %v110_v2 = vld [vmem:[#allocation4 + $0x18] sm:$0xff] }
  0x5d   :  { %8599 = vmatprep.subr.bf16.mxu1 %v8598_v5  ;;  %v119_v13 = vld [vmem:[#allocation4 + $0x60] sm:$0xff]  ;;  %v8602_v14 = vpack.c.bf16 %v120_v11, %v116_v10  ;;  %648 = vmatpush1.bf16.msra.mxu0 %v8707_v9  ;;  %v124_v18 = vld [vmem:[#allocation4 + $0x88] sm:$0xff]  ;;  %v114_v3 = vld [vmem:[#allocation4 + $0x38] sm:$0xff] }
  0x5e   :  { %8601 = vmatpush1.bf16.msra.mxu1 %v8600_v7  ;;  %v8604_v15 = vpack.c.bf16 %v119_v13, %v115_v12  ;;  %v8708_v16 = vld [vmem:[#allocation6 + $0x24] ss:$16 sps:$4 sm:$0xff]   ;;  %v8710_v17 = vld [vmem:[#allocation6 + $0x20] ss:$16 sps:$4 sm:$0xff]   ;;  %v128_v19 = vld [vmem:[#allocation4 + $0xa8] sm:$0xff]  ;;  %v8630_v6 = vpack.c.bf16 %v114_v3, %v110_v2 }
  0x5f   :  { %8603 = vmatprep.subr.bf16.mxu1 %v8602_v14  ;;  %649 = vmatprep.subr.bf16.mxu0 %v8708_v16  ;;  %v8606_v20 = vpack.c.bf16 %v128_v19, %v124_v18  ;;  %v123_v21 = vld [vmem:[#allocation4 + $0x80] sm:$0xff]  ;;  %v132_v26 = vld [vmem:[#allocation4 + $0xc8] sm:$0xff]  ;;  %v109_v7 = vld [vmem:[#allocation4 + $0x10] sm:$0xff] }
  0x60   :  { %v127_v22 = vld [vmem:[#allocation4 + $0xa0] sm:$0xff]  ;;  %v136_v27 = vld [vmem:[#allocation4 + $0xe8] sm:$0xff]  ;;  %v113_v8 = vld [vmem:[#allocation4 + $0x30] sm:$0xff] }
  0x61   :  { %v8711_v23 = vld [vmem:[#allocation6 + $0x44] ss:$16 sps:$4 sm:$0xff]   ;;  %v8713_v24 = vld [vmem:[#allocation6 + $0x40] ss:$16 sps:$4 sm:$0xff]   ;;  %v8608_v25 = vpack.c.bf16 %v127_v22, %v123_v21  ;;  %650 = vmatpush1.bf16.msra.mxu0 %v8710_v17  ;;  %v8610_v29 = vpack.c.bf16 %v136_v27, %v132_v26  ;;  %v140_v32 = vld [vmem:[#allocation4 + $0x108] sm:$0xff]  ;;  %v8632_v12 = vpack.c.bf16 %v113_v8, %v109_v7 }
  0x62   :  { %8605 = vmatpush1.bf16.msra.mxu1 %v8604_v15  ;;  %v131_v28 = vld [vmem:[#allocation4 + $0xc0] sm:$0xff]  ;;  %651 = vmatprep.subr.bf16.mxu0 %v8711_v23  ;;  %v144_v33 = vld [vmem:[#allocation4 + $0x128] sm:$0xff]  ;;  %v118_v9 = vld [vmem:[#allocation4 + $0x58] sm:$0xff] }
  0x63   :  { %8607 = vmatprep.subr.bf16.mxu1 %v8606_v20  ;;  %v135_v30 = vld [vmem:[#allocation4 + $0xe0] sm:$0xff]  ;;  %v8614_v36 = vpack.c.bf16 %v144_v33, %v140_v32  ;;  %v148_v40 = vld [vmem:[#allocation4 + $0x148] sm:$0xff]  ;;  %v122_v10 = vld [vmem:[#allocation4 + $0x78] sm:$0xff] }
  0x64   :  { %v8714_v31 = vld [vmem:[#allocation6 + $0x64] ss:$16 sps:$4 sm:$0xff]   ;;  %v8612_v34 = vpack.c.bf16 %v135_v30, %v131_v28  ;;  %v8716_v35 = vld [vmem:[#allocation6 + $0x60] ss:$16 sps:$4 sm:$0xff]   ;;  %v152_v41 = vld [vmem:[#allocation4 + $0x168] sm:$0xff]  ;;  %v8634_v13 = vpack.c.bf16 %v122_v10, %v118_v9 }
  0x65   :  { %652 = vmatpush1.bf16.msra.mxu0 %v8713_v24  ;;  %v139_v37 = vld [vmem:[#allocation4 + $0x100] sm:$0xff]  ;;  %v8618_v45 = vpack.c.bf16 %v152_v41, %v148_v40  ;;  %v156_v48 = vld [vmem:[#allocation4 + $0x188] sm:$0xff]  ;;  %v117_v14 = vld [vmem:[#allocation4 + $0x50] sm:$0xff] }
  0x66   :  { %8609 = vmatpush1.bf16.msra.mxu1 %v8608_v25  ;;  %v143_v38 = vld [vmem:[#allocation4 + $0x120] sm:$0xff]  ;;  %653 = vmatprep.subr.bf16.mxu0 %v8714_v31  ;;  %v160_v49 = vld [vmem:[#allocation4 + $0x1a8] sm:$0xff]  ;;  %v121_v15 = vld [vmem:[#allocation4 + $0x70] sm:$0xff] }
  0x67   :  { %8611 = vmatprep.subr.bf16.mxu1 %v8610_v29  ;;  %v8717_v39 = vld [vmem:[#allocation6 + $0x84] ss:$16 sps:$4 sm:$0xff]   ;;  %v8616_v42 = vpack.c.bf16 %v143_v38, %v139_v37  ;;  %v8719_v43 = vld [vmem:[#allocation6 + $0x80] ss:$16 sps:$4 sm:$0xff]   ;;  %v8622_v52 = vpack.c.bf16 %v160_v49, %v156_v48  ;;  %v164_v56 = vld [vmem:[#allocation4 + $0x1c8] sm:$0xff]  ;;  %v8636_v19 = vpack.c.bf16 %v121_v15, %v117_v14 }
  0x68   :  { %v147_v44 = vld [vmem:[#allocation4 + $0x140] sm:$0xff]  ;;  %v168_v57 = vld [vmem:[#allocation4 + $0x1e8] sm:$0xff]  ;;  %v126_v16 = vld [vmem:[#allocation4 + $0x98] sm:$0xff] }
  0x69   :  { %654 = vmatpush1.bf16.msra.mxu0 %v8716_v35  ;;  %v151_v46 = vld [vmem:[#allocation4 + $0x160] sm:$0xff]  ;;  %v8626_v60 = vpack.c.bf16 %v168_v57, %v164_v56  ;;  %v130_v17 = vld [vmem:[#allocation4 + $0xb8] sm:$0xff]  ;;  %v9834_v18 = vld [vmem:[%s11701_s0 + $0x8] sm:$0xff] }
  0x6a   :  { %8613 = vmatpush1.bf16.msra.mxu1 %v8612_v34  ;;  %655 = vmatprep.subr.bf16.mxu0 %v8717_v39  ;;  %v8720_v47 = vld [vmem:[#allocation6 + $0xa4] ss:$16 sps:$4 sm:$0xff]   ;;  %v8620_v50 = vpack.c.bf16 %v151_v46, %v147_v44  ;;  %v8722_v51 = vld [vmem:[#allocation6 + $0xa0] ss:$16 sps:$4 sm:$0xff]   ;;  %v8638_v21 = vpack.c.bf16 %v130_v17, %v126_v16  ;;  %v134_v23 = vld [vmem:[#allocation4 + $0xd8] sm:$0xff] }
  0x6b   :  { %8615 = vmatprep.subr.bf16.mxu1 %v8614_v36  ;;  %v155_v53 = vld [vmem:[#allocation4 + $0x180] sm:$0xff]  ;;  %v125_v20 = vld [vmem:[#allocation4 + $0x90] sm:$0xff]  ;;  %v138_v24 = vld [vmem:[#allocation4 + $0xf8] sm:$0xff] }
  0x6c   :  { %v159_v54 = vld [vmem:[#allocation4 + $0x1a0] sm:$0xff]  ;;  %v129_v22 = vld [vmem:[#allocation4 + $0xb0] sm:$0xff]  ;;  %v8642_v28 = vpack.c.bf16 %v138_v24, %v134_v23  ;;  %v142_v30 = vld [vmem:[#allocation4 + $0x118] sm:$0xff] }
  0x6d   :  { %656 = vmatpush1.bf16.msra.mxu0 %v8719_v43  ;;  %v8723_v55 = vld [vmem:[#allocation6 + $0xc4] ss:$16 sps:$4 sm:$0xff]   ;;  %v8624_v58 = vpack.c.bf16 %v159_v54, %v155_v53  ;;  %v8725_v59 = vld [vmem:[#allocation6 + $0xc0] ss:$16 sps:$4 sm:$0xff]   ;;  %v8640_v26 = vpack.c.bf16 %v129_v22, %v125_v20  ;;  %v146_v31 = vld [vmem:[#allocation4 + $0x138] sm:$0xff] }
  0x6e   :  { %8617 = vmatpush1.bf16.msra.mxu1 %v8616_v42  ;;  %657 = vmatprep.subr.bf16.mxu0 %v8720_v47  ;;  %v163_v61 = vld [vmem:[#allocation4 + $0x1c0] sm:$0xff]  ;;  %v9843_v25 = vld [vmem:[%s11701_s0 + $0x10] sm:$0xff]  ;;  %v9850_v32 = vld [vmem:[%s11701_s0 + $0x18] sm:$0xff]  ;;  %v8646_v36 = vpack.c.bf16 %v146_v31, %v142_v30 }
  0x6f   :  { %8619 = vmatprep.subr.bf16.mxu1 %v8618_v45  ;;  %v167_v62 = vld [vmem:[#allocation4 + $0x1e0] sm:$0xff]  ;;  %v133_v27 = vld [vmem:[#allocation4 + $0xd0] sm:$0xff]  ;;  %v150_v37 = vld [vmem:[#allocation4 + $0x158] sm:$0xff] }
  0x70   :  { %v8726_v63 = vld [vmem:[#allocation6 + $0xe4] ss:$16 sps:$4 sm:$0xff]   ;;  %v8628_v4 = vpack.c.bf16 %v167_v62, %v163_v61  ;;  %v8728_v5 = vld [vmem:[#allocation6 + $0xe0] ss:$16 sps:$4 sm:$0xff]   ;;  %v154_v38 = vld [vmem:[#allocation4 + $0x178] sm:$0xff] }
  0x71   :  { %658 = vmatpush1.bf16.msra.mxu0 %v8722_v51  ;;  %v9828_v11 = vld [vmem:[%s11701_s0] sm:$0xff]  ;;  %v137_v29 = vld [vmem:[#allocation4 + $0xf0] sm:$0xff]  ;;  %v158_v43 = vld [vmem:[#allocation4 + $0x198] sm:$0xff]  ;;  %v8650_v45 = vpack.c.bf16 %v154_v38, %v150_v37 }
  0x72   :  { %8621 = vmatpush1.bf16.msra.mxu1 %v8620_v50  ;;  %659 = vmatprep.subr.bf16.mxu0 %v8723_v55  ;;  %v141_v33 = vld [vmem:[#allocation4 + $0x110] sm:$0xff]  ;;  %v8644_v34 = vpack.c.bf16 %v137_v29, %v133_v27  ;;  %v9856_v39 = vld [vmem:[%s11701_s0 + $0x20] sm:$0xff]  ;;  %v162_v44 = vld [vmem:[#allocation4 + $0x1b8] sm:$0xff] }
  0x73   :  { %8623 = vmatprep.subr.bf16.mxu1 %v8622_v52  ;;  %v145_v35 = vld [vmem:[#allocation4 + $0x130] sm:$0xff]  ;;  %v9863_v46 = vld [vmem:[%s11701_s0 + $0x28] sm:$0xff]  ;;  %v166_v50 = vld [vmem:[#allocation4 + $0x1d8] sm:$0xff]  ;;  %v8654_v52 = vpack.c.bf16 %v162_v44, %v158_v43 }
  0x74   :  { %v149_v40 = vld [vmem:[#allocation4 + $0x150] sm:$0xff]  ;;  %v8648_v42 = vpack.c.bf16 %v145_v35, %v141_v33  ;;  %v170_v51 = vld [vmem:[#allocation4 + $0x1f8] sm:$0xff] }
  0x75   :  { %660 = vmatpush1.bf16.msra.mxu0 %v8725_v59  ;;  %v153_v41 = vld [vmem:[#allocation4 + $0x170] sm:$0xff]  ;;  %v8658_v57 = vpack.c.bf16 %v170_v51, %v166_v50  ;;  %v8731_v59 = vld [vmem:[#allocation6 + $0xc] ss:$16 sps:$4 sm:$0xff]   ;;  %v8729_v61 = vld [vmem:[#allocation6 + $0x8] ss:$16 sps:$4 sm:$0xff]  }
  0x76   :  { %8625 = vmatpush1.bf16.msra.mxu1 %v8624_v58  ;;  %661 = vmatprep.subr.bf16.mxu0 %v8726_v63  ;;  %v157_v47 = vld [vmem:[#allocation4 + $0x190] sm:$0xff]  ;;  %v8652_v49 = vpack.c.bf16 %v153_v41, %v149_v40  ;;  %v106_v58 = vld [vmem:[%s11701_s0 + $0x38] sm:$0xff]  ;;  %v171_v50 = vld [vmem:[%s11703_s2] sm:$0xf] }
  0x77   :  { %8627 = vmatprep.subr.bf16.mxu1 %v8626_v60  ;;  %v161_v48 = vld [vmem:[#allocation4 + $0x1b0] sm:$0xff]  ;;  %v8734_v62 = vld [vmem:[#allocation6 + $0x2c] ss:$16 sps:$4 sm:$0xff]   ;;  %v8732_v63 = vld [vmem:[#allocation6 + $0x28] ss:$16 sps:$4 sm:$0xff]  }
  0x78   :  { %v105_v53 = vld [vmem:[%s11701_s0 + $0x30] sm:$0xff]  ;;  %v8656_v56 = vpack.c.bf16 %v161_v48, %v157_v47  ;;  %v8737_v2 = vld [vmem:[#allocation6 + $0x4c] ss:$16 sps:$4 sm:$0xff]   ;;  %v8735_v3 = vld [vmem:[#allocation6 + $0x48] ss:$16 sps:$4 sm:$0xff]   ;;  %v173_v47 = vlaneseq }
  0x79   :  { %662 = vmatpush1.bf16.msra.mxu0 %v8728_v5  ;;  %v165_v54 = vld [vmem:[#allocation4 + $0x1d0] sm:$0xff]  ;;  %v8738_v5 = vld [vmem:[#allocation6 + $0x68] ss:$16 sps:$4 sm:$0xff]   ;;  %v8746_v8 = vld [vmem:[#allocation6 + $0xac] ss:$16 sps:$4 sm:$0xff]  }
  0x7a   :  { %8629 = vmatpush1.bf16.msra.mxu1 %v8628_v4  ;;  %v169_v55 = vld [vmem:[#allocation4 + $0x1f0] sm:$0xff]  ;;  %v8740_v4 = vld [vmem:[#allocation6 + $0x6c] ss:$16 sps:$4 sm:$0xff]   ;;  %v8741_v7 = vld [vmem:[#allocation6 + $0x88] ss:$16 sps:$4 sm:$0xff]   ;;  %v174_v48 = vshrl.u32 %v173_v47, 7 }
  0x7b   :  { %8631 = vmatprep.subr.bf16.mxu1 %v8630_v6  ;;  %v8660_v60 = vpack.c.bf16 %v169_v55, %v165_v54  ;;  %v8743_v6 = vld [vmem:[#allocation6 + $0x8c] ss:$16 sps:$4 sm:$0xff]   ;;  %v8744_v9 = vld [vmem:[#allocation6 + $0xa8] ss:$16 sps:$4 sm:$0xff]   ;;  %v9893_v14 = vld [vmem:[#allocation8 + $0x4] ss:$16 sps:$4 sm:$0xff]  }
  0x7c   :  { %680 = vmatmul.mubr.bf16.vlgmr.msra.gmra.mrb[0].mxu0 %v11711_v1  ;;  %v8749_v10 = vld [vmem:[#allocation6 + $0xcc] ss:$16 sps:$4 sm:$0xff]   ;;  %v9897_v16 = vld [vmem:[#allocation8] ss:$16 sps:$4 sm:$0xff]   ;;  %v9899_v17 = vld [vmem:[#allocation8 + $0x8] ss:$16 sps:$4 sm:$0xff]   ;;  %982 = vmatprep.subr.bf16.mxu0 %v9893_v14 }
  0x7d   :  { %258 = vmatmul.mubr.f32.vlgmr.msra.gmra.mrb[0].mxu1 %v9828_v11  ;;  %1014 = vmatprep.mubr.bf16.mxu0 %v11711_v1  ;;  %v9895_v15 = vld [vmem:[#allocation8 + $0xc] ss:$16 sps:$4 sm:$0xff]   ;;  %v9911_v20 = vld [vmem:[#allocation8 + $0x28] ss:$16 sps:$4 sm:$0xff]   ;;  %v9921_v23 = vld [vmem:[#allocation8 + $0x40] ss:$16 sps:$4 sm:$0xff]  }
  0x7e   :  { %8633 = vmatpush1.bf16.msra.mxu1 %v8632_v12  ;;  %263 = vmatprep.mubr.f32.mxu1 %v9702_v0  ;;  %v8752_v12 = vld [vmem:[#allocation6 + $0xec] ss:$16 sps:$4 sm:$0xff]   ;;  %v9923_v24 = vld [vmem:[#allocation8 + $0x48] ss:$16 sps:$4 sm:$0xff]   ;;  %v9933_v27 = vld [vmem:[#allocation8 + $0x60] ss:$16 sps:$4 sm:$0xff]  }
  0x7f   :  { %8635 = vmatprep.subr.bf16.mxu1 %v8634_v13  ;;  %v8750_v13 = vld [vmem:[#allocation6 + $0xe8] ss:$16 sps:$4 sm:$0xff]   ;;  %983 = vmatpush1.bf16.msra.mxu0 %v9897_v16  ;;  %v9919_v22 = vld [vmem:[#allocation8 + $0x4c] ss:$16 sps:$4 sm:$0xff]   ;;  %v9941_v29 = vld [vmem:[#allocation8 + $0x84] ss:$16 sps:$4 sm:$0xff]  }
  0x80   :  { %v9943_v30 = vld [vmem:[#allocation8 + $0x8c] ss:$16 sps:$4 sm:$0xff]   ;;  %v9945_v31 = vld [vmem:[#allocation8 + $0x80] ss:$16 sps:$4 sm:$0xff]   ;;  %v9957_v35 = vld [vmem:[#allocation8 + $0xa8] ss:$16 sps:$4 sm:$0xff]  }
  0x81   :  { %264 = vmatmul.mubr.f32.gmra.mrb[2].mxu1 %v9834_v18  ;;  %v9953_v33 = vld [vmem:[#allocation8 + $0xa0] ss:$16 sps:$4 sm:$0xff]   ;;  %v9961_v37 = vld [vmem:[#allocation8 + $0xc4] ss:$16 sps:$4 sm:$0xff]   ;;  %v9964_v38 = vld [vmem:[#allocation8 + $0xcc] ss:$16 sps:$4 sm:$0xff]  }
  0x82   :  { %8637 = vmatpush1.bf16.msra.mxu1 %v8636_v19  ;;  %269 = vmatprep.mubr.f32.mxu1 %v9702_v0  ;;  %v9909_v19 = vld [vmem:[#allocation8 + $0x20] ss:$16 sps:$4 sm:$0xff]   ;;  %v9972_v40 = vld [vmem:[#allocation8 + $0xc8] ss:$16 sps:$4 sm:$0xff]   ;;  %v9974_v41 = vld [vmem:[#allocation8 + $0xe4] ss:$16 sps:$4 sm:$0xff]  }
  0x83   :  { %8639 = vmatprep.subr.bf16.mxu1 %v8638_v21  ;;  %v9917_v21 = vld [vmem:[#allocation8 + $0x44] ss:$16 sps:$4 sm:$0xff]   ;;  %v9980_v43 = vld [vmem:[#allocation8 + $0xe0] ss:$16 sps:$4 sm:$0xff]   ;;  %v9984_v44 = vld [vmem:[#allocation8 + $0xe8] ss:$16 sps:$4 sm:$0xff]  }
  0x84   :  { %v179_v51 = vsub.s32 1, %v174_v48 }
  0x85   :  { %270 = vmatmul.mubr.f32.gmra.mrb[4].mxu1 %v9843_v25 }
  0x86   :  { %8641 = vmatpush1.bf16.msra.mxu1 %v8640_v26  ;;  %275 = vmatprep.mubr.f32.mxu1 %v9702_v0  ;;  %v9931_v26 = vld [vmem:[#allocation8 + $0x6c] ss:$16 sps:$4 sm:$0xff]  }
  0x87   :  { %8643 = vmatprep.subr.bf16.mxu1 %v8642_v28  ;;  %v9935_v28 = vld [vmem:[#allocation8 + $0x68] ss:$16 sps:$4 sm:$0xff]  }
  0x89   :  { %276 = vmatmul.mubr.f32.gmra.mrb[6].mxu1 %v9850_v32 }
  0x8a   :  { %8645 = vmatpush1.bf16.msra.mxu1 %v8644_v34  ;;  %281 = vmatprep.mubr.f32.mxu1 %v9702_v0  ;;  %v9955_v34 = vld [vmem:[#allocation8 + $0xa4] ss:$16 sps:$4 sm:$0xff]  }
  0x8b   :  { %8647 = vmatprep.subr.bf16.mxu1 %v8646_v36  ;;  %v9959_v36 = vld [vmem:[#allocation8 + $0xac] ss:$16 sps:$4 sm:$0xff]  }
  0x8d   :  { %282 = vmatmul.mubr.f32.gmra.mrb[8].mxu1 %v9856_v39 }
  0x8e   :  { %8649 = vmatpush1.bf16.msra.mxu1 %v8648_v42  ;;  %287 = vmatprep.mubr.f32.mxu1 %v9702_v0  ;;  %v9977_v42 = vld [vmem:[#allocation8 + $0xec] ss:$16 sps:$4 sm:$0xff]  }
  0x8f   :  { %8651 = vmatprep.subr.bf16.mxu1 %v8650_v45  ;;  %v9986_v45 = vld [vmem:[#allocation9 + $0x4] ss:$16 sps:$4 sm:$0xff]  }
  0x91   :  { %288 = vmatmul.mubr.f32.gmra.mrb[10].mxu1 %v9863_v46 }
  0x92   :  { %8653 = vmatpush1.bf16.msra.mxu1 %v8652_v49  ;;  %293 = vmatprep.mubr.f32.mxu1 %v9702_v0  ;;  %v175_v49 = vsub.s32 0, %v174_v48 }
  0x93   :  { %8655 = vmatprep.subr.bf16.mxu1 %v8654_v52 }
  0x94   :  { %v176_v52 = vrot.slane %v171_v50, %v175_v49 }
  0x95   :  { %294 = vmatmul.mubr.f32.gmra.mrb[12].mxu1 %v105_v53 }
  0x96   :  { %8657 = vmatpush1.bf16.msra.mxu1 %v8656_v56  ;;  %299 = vmatprep.mubr.f32.mxu1 %v9702_v0 }
  0x97   :  { %8659 = vmatprep.subr.bf16.mxu1 %v8658_v57 }
  0x99   :  { %300 = vmatmul.mubr.f32.gmra.mrb[14].mxu1 %v106_v58 }
  0x9a   :  { %8661 = vmatpush1.bf16.msra.mxu1 %v8660_v60  ;;  %370 = vmatprep.mubr.f32.mxu1 %v9702_v0 }
  0x9b   :  { %688 = vmatprep.subr.bf16.mxu1 %v8731_v59 }
  0x9d   :  { %371 = vmatmul.mubr.f32.vlgmr.msra.gmra.mrb[16].mxu1 %v9828_v11  ;;  %v8747_v11 = vld [vmem:[#allocation6 + $0xc8] ss:$16 sps:$4 sm:$0xff]  }
  0x9e   :  { %689 = vmatpush1.bf16.msra.mxu1 %v8729_v61  ;;  %376 = vmatprep.mubr.f32.mxu1 %v9702_v0 }
  0x9f   :  { %690 = vmatprep.subr.bf16.mxu1 %v8734_v62 }
  0xa1   :  { %377 = vmatmul.mubr.f32.gmra.mrb[18].mxu1 %v9834_v18  ;;  %v9907_v18 = vld [vmem:[#allocation8 + $0x2c] ss:$16 sps:$4 sm:$0xff]  }
  0xa2   :  { %691 = vmatpush1.bf16.msra.mxu1 %v8732_v63  ;;  %382 = vmatprep.mubr.f32.mxu1 %v9702_v0 }
  0xa3   :  { %692 = vmatprep.subr.bf16.mxu1 %v8737_v2 }
  0xa5   :  { %383 = vmatmul.mubr.f32.gmra.mrb[20].mxu1 %v9843_v25  ;;  %v9929_v25 = vld [vmem:[#allocation8 + $0x64] ss:$16 sps:$4 sm:$0xff]  }
  0xa6   :  { %693 = vmatpush1.bf16.msra.mxu1 %v8735_v3  ;;  %388 = vmatprep.mubr.f32.mxu1 %v9702_v0 }
  0xa7   :  { %694 = vmatprep.subr.bf16.mxu1 %v8740_v4 }
  0xa9   :  { %389 = vmatmul.mubr.f32.gmra.mrb[22].mxu1 %v9850_v32  ;;  %v9947_v32 = vld [vmem:[#allocation8 + $0x88] ss:$16 sps:$4 sm:$0xff]  }
  0xaa   :  { %695 = vmatpush1.bf16.msra.mxu1 %v8738_v5  ;;  %394 = vmatprep.mubr.f32.mxu1 %v9702_v0 }
  0xab   :  { %696 = vmatprep.subr.bf16.mxu1 %v8743_v6 }
  0xad   :  { %395 = vmatmul.mubr.f32.gmra.mrb[24].mxu1 %v9856_v39  ;;  %v9968_v39 = vld [vmem:[#allocation8 + $0xc0] ss:$16 sps:$4 sm:$0xff]  }
  0xae   :  { %697 = vmatpush1.bf16.msra.mxu1 %v8741_v7  ;;  %400 = vmatprep.mubr.f32.mxu1 %v9702_v0 }
  0xaf   :  { %698 = vmatprep.subr.bf16.mxu1 %v8746_v8 }
  0xb1   :  { %401 = vmatmul.mubr.f32.gmra.mrb[26].mxu1 %v9863_v46  ;;  %v9989_v46 = vld [vmem:[#allocation9 + $0xc] ss:$16 sps:$4 sm:$0xff]  }
  0xb2   :  { %699 = vmatpush1.bf16.msra.mxu1 %v8744_v9  ;;  %406 = vmatprep.mubr.f32.mxu1 %v9702_v0 }
  0xb3   :  { %700 = vmatprep.subr.bf16.mxu1 %v8749_v10 }
  0xb5   :  { %407 = vmatmul.mubr.f32.gmra.mrb[28].mxu1 %v105_v53  ;;  %v180_v53 = vrot.slane %v171_v50, %v179_v51 }
  0xb6   :  { %701 = vmatpush1.bf16.msra.mxu1 %v8747_v11  ;;  %412 = vmatprep.mubr.f32.mxu1 %v9702_v0  ;;  %v9905_v0 = vld [vmem:[#allocation8 + $0x24] ss:$16 sps:$4 sm:$0xff]  }
  0xb7   :  { %702 = vmatprep.subr.bf16.mxu1 %v8752_v12  ;;  %984 = vmatprep.subr.bf16.mxu0 %v9905_v0 }
  0xb8   :  { %985 = vmatpush1.bf16.msra.mxu0 %v9909_v19 }
  0xb9   :  { %413 = vmatmul.mubr.f32.gmra.mrb[30].mxu1 %v106_v58  ;;  %986 = vmatprep.subr.bf16.mxu0 %v9917_v21 }
  0xba   :  { %703 = vmatpush1.bf16.msra.mxu1 %v8750_v13  ;;  %720 = vmatprep.mubr.bf16.mxu1 %v11711_v1 }
  0xbb   :  { %1023 = vmatprep.subr.bf16.mxu1 %v9895_v15 }
  0xbc   :  { %987 = vmatpush1.bf16.msra.mxu0 %v9921_v23 }
  0xbd   :  { %721 = vmatmul.mubr.bf16.vlgmr.msra.gmra.mrb[32].mxu1 %v11711_v1  ;;  %988 = vmatprep.subr.bf16.mxu0 %v9929_v25 }
  0xbe   :  { %1055 = vmatprep.mubr.bf16.mxu1 %v11711_v1  ;;  %1024 = vmatpush1.bf16.msra.mxu1 %v9899_v17 }
  0xbf   :  { %1025 = vmatprep.subr.bf16.mxu1 %v9907_v18 }
  0xc0   :  { %989 = vmatpush1.bf16.msra.mxu0 %v9933_v27 }
  0xc1   :  { %990 = vmatprep.subr.bf16.mxu0 %v9941_v29 }
  0xc2   :  { %1026 = vmatpush1.bf16.msra.mxu1 %v9911_v20 }
  0xc3   :  { %1027 = vmatprep.subr.bf16.mxu1 %v9919_v22 }
  0xc4   :  { %991 = vmatpush1.bf16.msra.mxu0 %v9945_v31 }
  0xc5   :  { %992 = vmatprep.subr.bf16.mxu0 %v9955_v34 }
  0xc6   :  { %1028 = vmatpush1.bf16.msra.mxu1 %v9923_v24 }
  0xc7   :  { %1029 = vmatprep.subr.bf16.mxu1 %v9931_v26 }
  0xc8   :  { %993 = vmatpush1.bf16.msra.mxu0 %v9953_v33 }
  0xc9   :  { %994 = vmatprep.subr.bf16.mxu0 %v9961_v37 }
  0xca   :  { %1030 = vmatpush1.bf16.msra.mxu1 %v9935_v28 }
  0xcb   :  { %1031 = vmatprep.subr.bf16.mxu1 %v9943_v30 }
  0xcc   :  { %995 = vmatpush1.bf16.msra.mxu0 %v9968_v39 }
  0xcd   :  { %996 = vmatprep.subr.bf16.mxu0 %v9974_v41 }
  0xce   :  { %1032 = vmatpush1.bf16.msra.mxu1 %v9947_v32 }
  0xcf   :  { %1033 = vmatprep.subr.bf16.mxu1 %v9959_v36 }
  0xd0   :  { %997 = vmatpush1.bf16.msra.mxu0 %v9980_v43 }
  0xd1   :  { %1224 = vmatprep.subr.bf16.mxu0 %v9986_v45 }
  0xd2   :  { %1034 = vmatpush1.bf16.msra.mxu1 %v9957_v35 }
  0xd3   :  { %1035 = vmatprep.subr.bf16.mxu1 %v9964_v38 }
  0xd6   :  { %1036 = vmatpush1.bf16.msra.mxu1 %v9972_v40 }
  0xd7   :  { %1037 = vmatprep.subr.bf16.mxu1 %v9977_v42 }
  0xda   :  { %1038 = vmatpush1.bf16.msra.mxu1 %v9984_v44 }
  0xdb   :  { %1265 = vmatprep.subr.bf16.mxu1 %v9989_v46 }
 0x14f   :  { %v681_v57 = vpop.f32.mrb[0].mxu0 }
 0x150   :  { %v259_v54 = vpop.f32.mrb[0].mxu1  ;;  %v683_v59 = vpop.f32.mrb[1].mxu0 }
 0x151   :  { %v260_v55 = vadd.f32 %v259_v54, %v176_v52  ;;  %v261_v56 = vpop.f32.mrb[1].mxu1  ;;  %v685_v61 = vpop.f32.mrb[2].mxu0 }
 0x152   :  { %v262_v58 = vadd.f32 %v261_v56, %v180_v53  ;;  %v686_v2 = vpop.f32.mrb[3].mxu0 }
 0x153   :  { %v729_v60 = vadd.f32 %v681_v57, %v260_v55 }
 0x154   :  { %v730_v62 = vadd.f32 %v683_v59, %v262_v58  ;;  %v265_v63 = vpop.f32.mrb[2].mxu1 }
 0x155   :  { %v9998_v3 = vadd.f32 %v265_v63, %v176_v52  ;;  %v267_v4 = vpop.f32.mrb[3].mxu1 }
 0x156   :  { %v10000_v5 = vadd.f32 %v267_v4, %v180_v53 }
 0x158   :  { %v271_v6 = vpop.f32.mrb[4].mxu1 }
 0x159   :  { %v10002_v7 = vadd.f32 %v271_v6, %v176_v52  ;;  %v273_v8 = vpop.f32.mrb[5].mxu1 }
 0x15a   :  { %v10004_v9 = vadd.f32 %v273_v8, %v180_v53 }
 0x15b   :  { %11826 = vst [vmem:[#allocation15_spill] sm:$0xff] %v10002_v7  ;;  %v10127_v7 = vld [vmem:[#allocation9 + $0xc4] ss:$16 sps:$4 sm:$0xff]  }
 0x15c   :  { %11827 = vst [vmem:[#allocation16_spill] sm:$0xff] %v10004_v9  ;;  %v277_v10 = vpop.f32.mrb[6].mxu1  ;;  %v10121_v9 = vld [vmem:[#allocation9 + $0xa0] ss:$16 sps:$4 sm:$0xff]   ;;  %11859 = vst [vmem:[#allocation47_spill] sm:$0xff] %v10127_v7 }
 0x15d   :  { %v10006_v11 = vadd.f32 %v277_v10, %v176_v52  ;;  %v279_v12 = vpop.f32.mrb[7].mxu1  ;;  %11857 = vst [vmem:[#allocation45_spill] sm:$0xff] %v10121_v9 }
 0x15e   :  { %v10008_v13 = vadd.f32 %v279_v12, %v180_v53  ;;  %v183_v12 = vsub.s32 2, %v174_v48 }
 0x15f   :  { %11828 = vst [vmem:[#allocation17_spill] sm:$0xff] %v10006_v11 }
 0x160   :  { %11829 = vst [vmem:[#allocation18_spill] sm:$0xff] %v10008_v13  ;;  %v283_v47 = vpop.f32.mrb[8].mxu1  ;;  %v184_v1 = vrot.slane %v171_v50, %v183_v12 }
 0x161   :  { %v10010_v49 = vadd.f32 %v283_v47, %v176_v52  ;;  %v285_v51 = vpop.f32.mrb[9].mxu1 }
 0x162   :  { %v10012_v54 = vadd.f32 %v285_v51, %v180_v53  ;;  %v187_v51 = vsub.s32 3, %v174_v48 }
 0x163   :  { %11830 = vst [vmem:[#allocation19_spill] sm:$0xff] %v10010_v49 }
 0x164   :  { %11831 = vst [vmem:[#allocation20_spill] sm:$0xff] %v10012_v54  ;;  %v289_v55 = vpop.f32.mrb[10].mxu1 }
 0x165   :  { %v10014_v56 = vadd.f32 %v289_v55, %v176_v52  ;;  %v291_v57 = vpop.f32.mrb[11].mxu1 }
 0x166   :  { %v10016_v58 = vadd.f32 %v291_v57, %v180_v53 }
 0x167   :  { %11832 = vst [vmem:[#allocation21_spill] sm:$0xff] %v10014_v56  ;;  %v188_v56 = vrot.slane %v171_v50, %v187_v51 }
 0x168   :  { %11833 = vst [vmem:[#allocation22_spill] sm:$0xff] %v10016_v58  ;;  %v295_v59 = vpop.f32.mrb[12].mxu1 }
 0x169   :  { %v10018_v61 = vadd.f32 %v295_v59, %v176_v52  ;;  %v297_v63 = vpop.f32.mrb[13].mxu1 }
 0x16a   :  { %v10020_v2 = vadd.f32 %v297_v63, %v180_v53 }
 0x16b   :  { %11834 = vst [vmem:[#allocation23_spill] sm:$0xff] %v10018_v61 }
 0x16c   :  { %11835 = vst [vmem:[#allocation24_spill] sm:$0xff] %v10020_v2  ;;  %v301_v4 = vpop.f32.mrb[14].mxu1 }
 0x16d   :  { %v10022_v6 = vadd.f32 %v301_v4, %v176_v52  ;;  %v303_v8 = vpop.f32.mrb[15].mxu1 }
 0x16e   :  { %v10024_v10 = vadd.f32 %v303_v8, %v180_v53  ;;  %v7746_v53 = vmul.f32 -1.442695, %v730_v62 }
 0x16f   :  { %11836 = vst [vmem:[#allocation25_spill] sm:$0xff] %v10022_v6 }
 0x170   :  { %11837 = vst [vmem:[#allocation26_spill] sm:$0xff] %v10024_v10  ;;  %v372_v47 = vpop.f32.mrb[16].mxu1  ;;  %v7745_v10 = vmul.f32 -1.442695, %v729_v60  ;;  %9305 = vpow2.f32 %v7746_v53 }
 0x171   :  { %v374_v55 = vpop.f32.mrb[17].mxu1 }
 0x172   :  { %9307 = vpow2.f32 %v7745_v10 }
 0x174   :  { %v378_v57 = vpop.f32.mrb[18].mxu1 }
 0x175   :  { %v10026_v58 = vadd.f32 %v378_v57, %v184_v1  ;;  %v380_v59 = vpop.f32.mrb[19].mxu1 }
 0x176   :  { %v10028_v61 = vadd.f32 %v380_v59, %v188_v56 }
 0x178   :  { %v384_v63 = vpop.f32.mrb[20].mxu1 }
 0x179   :  { %v10030_v2 = vadd.f32 %v384_v63, %v184_v1  ;;  %v386_v52 = vpop.f32.mrb[21].mxu1 }
 0x17a   :  { %v10032_v4 = vadd.f32 %v386_v52, %v188_v56 }
 0x17b   :  { %11838 = vst [vmem:[#allocation27_spill] sm:$0xff] %v10030_v2  ;;  %v10123_v2 = vld [vmem:[#allocation9 + $0xa8] ss:$16 sps:$4 sm:$0xff]  }
 0x17c   :  { %11839 = vst [vmem:[#allocation28_spill] sm:$0xff] %v10032_v4  ;;  %v390_v8 = vpop.f32.mrb[22].mxu1  ;;  %v10117_v4 = vld [vmem:[#allocation9 + $0xac] ss:$16 sps:$4 sm:$0xff]   ;;  %11858 = vst [vmem:[#allocation46_spill] sm:$0xff] %v10123_v2 }
 0x17d   :  { %v10034_v6 = vadd.f32 %v390_v8, %v184_v1  ;;  %v392_v48 = vpop.f32.mrb[23].mxu1  ;;  %11856 = vst [vmem:[#allocation44_spill] sm:$0xff] %v10117_v4 }
 0x17e   :  { %v10036_v12 = vadd.f32 %v392_v48, %v188_v56  ;;  %v9306_v48 = vpop.eup %9305 }
 0x17f   :  { %11840 = vst [vmem:[#allocation29_spill] sm:$0xff] %v10034_v6  ;;  %v9308_v53 = vpop.eup %9307 }
 0x180   :  { %11841 = vst [vmem:[#allocation30_spill] sm:$0xff] %v10036_v12  ;;  %v396_v50 = vpop.f32.mrb[24].mxu1 }
 0x181   :  { %v10038_v51 = vadd.f32 %v396_v50, %v184_v1  ;;  %v398_v57 = vpop.f32.mrb[25].mxu1  ;;  %v742_v50 = vadd.f32 1.0, %v9306_v48 }
 0x182   :  { %v10040_v59 = vadd.f32 %v398_v57, %v188_v56 }
 0x183   :  { %11842 = vst [vmem:[#allocation31_spill] sm:$0xff] %v10038_v51  ;;  %9309 = vrcp.f32 %v742_v50  ;;  %v10079_v50 = vld [vmem:[#allocation9 + $0x4c] ss:$16 sps:$4 sm:$0xff]  }
 0x184   :  { %11843 = vst [vmem:[#allocation32_spill] sm:$0xff] %v10040_v59  ;;  %v402_v63 = vpop.f32.mrb[26].mxu1  ;;  %v736_v59 = vadd.f32 1.0, %v9308_v53 }
 0x185   :  { %v10042_v54 = vadd.f32 %v402_v63, %v184_v1  ;;  %v404_v52 = vpop.f32.mrb[27].mxu1  ;;  %v373_v63 = vadd.f32 %v372_v47, %v184_v1 }
 0x186   :  { %v10044_v62 = vadd.f32 %v404_v52, %v188_v56  ;;  %9311 = vrcp.f32 %v736_v59  ;;  %v10063_v59 = vld [vmem:[#allocation9 + $0x24] ss:$16 sps:$4 sm:$0xff]  }
 0x187   :  { %11844 = vst [vmem:[#allocation33_spill] sm:$0xff] %v10042_v54  ;;  %v375_v54 = vadd.f32 %v374_v55, %v188_v56  ;;  %v10059_v55 = vld [vmem:[#allocation9 + $0x8] ss:$16 sps:$4 sm:$0xff]  }
 0x188   :  { %11845 = vst [vmem:[#allocation34_spill] sm:$0xff] %v10044_v62  ;;  %v408_v60 = vpop.f32.mrb[28].mxu1 }
 0x189   :  { %v10046_v8 = vadd.f32 %v408_v60, %v184_v1  ;;  %v410_v49 = vpop.f32.mrb[29].mxu1 }
 0x18a   :  { %v10048_v12 = vadd.f32 %v410_v49, %v188_v56 }
 0x18b   :  { %11846 = vst [vmem:[#allocation35_spill] sm:$0xff] %v10046_v8 }
 0x18c   :  { %11847 = vst [vmem:[#allocation36_spill] sm:$0xff] %v10048_v12  ;;  %v414_v10 = vpop.f32.mrb[30].mxu1 }
 0x18d   :  { %v10050_v51 = vadd.f32 %v414_v10, %v184_v1  ;;  %v416_v57 = vpop.f32.mrb[31].mxu1  ;;  %v9310_v48 = vpop.eup %9309 }
 0x18e   :  { %v10052_v13 = vadd.f32 %v416_v57, %v188_v56  ;;  %v752_v11 = vmul.f32 0.0, %v9310_v48  ;;  %v10093_v48 = vld [vmem:[#allocation9 + $0x6c] ss:$16 sps:$4 sm:$0xff]  }
 0x18f   :  { %11848 = vst [vmem:[#allocation37_spill] sm:$0xff] %v10050_v51 }
 0x190   :  { %11849 = vst [vmem:[#allocation38_spill] sm:$0xff] %v10052_v13  ;;  %v722_v52 = vpop.f32.mrb[32].mxu1  ;;  %v9312_v10 = vpop.eup %9311 }
 0x191   :  { %v731_v62 = vadd.f32 %v722_v52, %v373_v63  ;;  %v724_v60 = vpop.f32.mrb[33].mxu1  ;;  %v11850_v63 = vmov 0   ;;  %v10085_v52 = vld [vmem:[#allocation9 + $0x40] ss:$16 sps:$4 sm:$0xff]  }
 0x192   :  { %v732_v8 = vadd.f32 %v724_v60, %v375_v54  ;;  %v726_v6 = vpop.f32.mrb[34].mxu1  ;;  %v10087_v60 = vld [vmem:[#allocation9 + $0x48] ss:$16 sps:$4 sm:$0xff]  }
 0x193   :  { %9313 = vtanh.f32 %v731_v62  ;;  %v727_v49 = vpop.f32.mrb[35].mxu1  ;;  %v10057_v6 = vld [vmem:[#allocation9] ss:$16 sps:$4 sm:$0xff]   ;;  %v10065_v62 = vld [vmem:[#allocation9 + $0x2c] ss:$16 sps:$4 sm:$0xff]  }
 0x194   :  { %v7747_v12 = vmul.f32 -1.442695, %v732_v8  ;;  %v10077_v8 = vld [vmem:[#allocation9 + $0x44] ss:$16 sps:$4 sm:$0xff]  }
 0x195   :  { %v10091_v49 = vld [vmem:[#allocation9 + $0x64] ss:$16 sps:$4 sm:$0xff]  }
 0x196   :  { %9315 = vpow2.f32 %v7747_v12 }
 0x19d   :  { %v9314_v51 = vpop.eup %9313 }
 0x19e   :  { %v753_v53 = vmul.f32 %v9314_v51, %v9312_v10  ;;  %v10073_v51 = vld [vmem:[#allocation9 + $0x28] ss:$16 sps:$4 sm:$0xff]   ;;  %v10097_v10 = vld [vmem:[#allocation9 + $0x60] ss:$16 sps:$4 sm:$0xff]  }
 0x1a0   :  { %v9316_v57 = vpop.eup %9315  ;;  %v10054_v13 = vadd.f32 %v753_v53, %v752_v11  ;;  %v10071_v11 = vld [vmem:[#allocation9 + $0x20] ss:$16 sps:$4 sm:$0xff]   ;;  %v10099_v53 = vld [vmem:[#allocation9 + $0x68] ss:$16 sps:$4 sm:$0xff]  }
 0x1a1   :  { %v749_v1 = vadd.f32 1.0, %v9316_v57  ;;  %v10103_v57 = vld [vmem:[#allocation9 + $0x84] ss:$16 sps:$4 sm:$0xff]  }
 0x1a2   :  { %9317 = vtanh.f32 %v10054_v13  ;;  %11851 = vst [vmem:[#allocation39_spill] sm:$0xff] %v10103_v57 }
 0x1a3   :  { %9319 = vrcp.f32 %v749_v1  ;;  %v10105_v1 = vld [vmem:[#allocation9 + $0x8c] ss:$16 sps:$4 sm:$0xff]  }
 0x1a4   :  { %11852 = vst [vmem:[#allocation40_spill] sm:$0xff] %v10105_v1 }
 0x1ac   :  { %v9318_v56 = vpop.eup %9317 }
 0x1ad   :  { %v9320_v47 = vpop.eup %9319 }
 0x1ae   :  { %v756_v54 = vmul.f32 %v9320_v47, %v9318_v56  ;;  %v10109_v56 = vld [vmem:[#allocation9 + $0x80] ss:$16 sps:$4 sm:$0xff]   ;;  %v10111_v47 = vld [vmem:[#allocation9 + $0x88] ss:$16 sps:$4 sm:$0xff]  }
 0x1af   :  { %11853 = vst [vmem:[#allocation41_spill] sm:$0xff] %v10109_v56  ;;  %11854 = vst [vmem:[#allocation42_spill] sm:$0xff] %v10111_v47 }
 0x1b0   :  { %v10061_v12 = vpack.c.bf16 %v756_v54, %v756_v54  ;;  %v10115_v54 = vld [vmem:[#allocation9 + $0xa4] ss:$16 sps:$4 sm:$0xff]  }
 0x1b1   :  { %11855 = vst [vmem:[#allocation43_spill] sm:$0xff] %v10115_v54 }
 0x1b2   :  { %1015 = vmatmul.mubr.bf16.vlgmr.msra.gmra.mrb[4].mxu0 %v10061_v12  ;;  %1056 = vmatmul.mubr.bf16.vlgmr.msra.gmra.mrb[36].mxu1 %v10061_v12 }
 0x1b3   :  { %1225 = vmatpush1.bf16.msra.mxu0 %v10057_v6  ;;  %1266 = vmatpush1.bf16.msra.mxu1 %v10059_v55 }
 0x1b4   :  { %1226 = vmatprep.subr.bf16.mxu0 %v10063_v59  ;;  %1267 = vmatprep.subr.bf16.mxu1 %v10065_v62 }
 0x1b5   :  { %1256 = vmatprep.mubr.bf16.mxu0 %v11850_v63  ;;  %1297 = vmatprep.mubr.bf16.mxu1 %v11850_v63 }
 0x1b7   :  { %1227 = vmatpush1.bf16.msra.mxu0 %v10071_v11  ;;  %1268 = vmatpush1.bf16.msra.mxu1 %v10073_v51 }
 0x1b8   :  { %1228 = vmatprep.subr.bf16.mxu0 %v10077_v8  ;;  %1269 = vmatprep.subr.bf16.mxu1 %v10079_v50 }
 0x1bb   :  { %1229 = vmatpush1.bf16.msra.mxu0 %v10085_v52  ;;  %1270 = vmatpush1.bf16.msra.mxu1 %v10087_v60 }
 0x1bc   :  { %1230 = vmatprep.subr.bf16.mxu0 %v10091_v49  ;;  %1271 = vmatprep.subr.bf16.mxu1 %v10093_v48 }
 0x1bf   :  { %1231 = vmatpush1.bf16.msra.mxu0 %v10097_v10  ;;  %1272 = vmatpush1.bf16.msra.mxu1 %v10099_v53 }
 0x1c0   :  { %1232 = vmatprep.subr.bf16.mxu0 %v10103_v57  ;;  %1273 = vmatprep.subr.bf16.mxu1 %v10105_v1  ;;  %v10129_v57 = vld [vmem:[#allocation9 + $0xcc] ss:$16 sps:$4 sm:$0xff]   ;;  %v10133_v1 = vld [vmem:[#allocation9 + $0xc0] ss:$16 sps:$4 sm:$0xff]  }
 0x1c1   :  { %11860 = vst [vmem:[#allocation48_spill] sm:$0xff] %v10129_v57  ;;  %11861 = vst [vmem:[#allocation49_spill] sm:$0xff] %v10133_v1 }
 0x1c3   :  { %1233 = vmatpush1.bf16.msra.mxu0 %v10109_v56  ;;  %1274 = vmatpush1.bf16.msra.mxu1 %v10111_v47  ;;  %v10135_v56 = vld [vmem:[#allocation9 + $0xc8] ss:$16 sps:$4 sm:$0xff]   ;;  %v10139_v47 = vld [vmem:[#allocation9 + $0xe4] ss:$16 sps:$4 sm:$0xff]  }
 0x1c4   :  { %1234 = vmatprep.subr.bf16.mxu0 %v10115_v54  ;;  %1275 = vmatprep.subr.bf16.mxu1 %v10117_v4  ;;  %11862 = vst [vmem:[#allocation50_spill] sm:$0xff] %v10135_v56  ;;  %11863 = vst [vmem:[#allocation51_spill] sm:$0xff] %v10139_v47  ;;  %v10141_v54 = vld [vmem:[#allocation9 + $0xec] ss:$16 sps:$4 sm:$0xff]   ;;  %v10145_v4 = vld [vmem:[#allocation9 + $0xe0] ss:$16 sps:$4 sm:$0xff]  }
 0x1c5   :  { %11864 = vst [vmem:[#allocation52_spill] sm:$0xff] %v10141_v54  ;;  %11865 = vst [vmem:[#allocation53_spill] sm:$0xff] %v10145_v4 }
 0x1c7   :  { %1235 = vmatpush1.bf16.msra.mxu0 %v10121_v9  ;;  %1276 = vmatpush1.bf16.msra.mxu1 %v10123_v2  ;;  %v10147_v9 = vld [vmem:[#allocation9 + $0xe8] ss:$16 sps:$4 sm:$0xff]   ;;  %v10151_v2 = vld [vmem:[#allocation6 + $0x4] ss:$16 sps:$4 sm:$0xff]  }
 0x1c8   :  { %1236 = vmatprep.subr.bf16.mxu0 %v10127_v7  ;;  %1277 = vmatprep.subr.bf16.mxu1 %v10129_v57  ;;  %11866 = vst [vmem:[#allocation54_spill] sm:$0xff] %v10147_v9  ;;  %11867 = vst [vmem:[#allocation55_spill] sm:$0xff] %v10151_v2  ;;  %v10155_v57 = vld [vmem:[#allocation6] ss:$16 sps:$4 sm:$0xff]   ;;  %v9567_v7 = vld [vmem:[#allocation6 + $0x6c] ss:$16 sps:$4 sm:$0xff]  }
 0x1c9   :  { %11868 = vst [vmem:[#allocation56_spill] sm:$0xff] %v10155_v57 }
 0x1cb   :  { %1237 = vmatpush1.bf16.msra.mxu0 %v10133_v1  ;;  %1278 = vmatpush1.bf16.msra.mxu1 %v10135_v56  ;;  %v9561_v1 = vld [vmem:[#allocation6 + $0xc] ss:$16 sps:$4 sm:$0xff]   ;;  %v10158_v56 = vld [vmem:[#allocation6 + $0x24] ss:$16 sps:$4 sm:$0xff]  }
 0x1cc   :  { %1238 = vmatprep.subr.bf16.mxu0 %v10139_v47  ;;  %1279 = vmatprep.subr.bf16.mxu1 %v10141_v54  ;;  %11869 = vst [vmem:[#allocation57_spill] sm:$0xff] %v10158_v56  ;;  %v9562_v54 = vld [vmem:[#allocation6 + $0x8] ss:$16 sps:$4 sm:$0xff]   ;;  %v10163_v47 = vld [vmem:[#allocation6 + $0x20] ss:$16 sps:$4 sm:$0xff]  }
 0x1cd   :  { %11870 = vst [vmem:[#allocation58_spill] sm:$0xff] %v10163_v47 }
 0x1cf   :  { %1239 = vmatpush1.bf16.msra.mxu0 %v10145_v4  ;;  %1280 = vmatpush1.bf16.msra.mxu1 %v10147_v9  ;;  %v9563_v9 = vld [vmem:[#allocation6 + $0x2c] ss:$16 sps:$4 sm:$0xff]   ;;  %v10166_v4 = vld [vmem:[#allocation6 + $0x44] ss:$16 sps:$4 sm:$0xff]  }
 0x1d0   :  { %1535 = vmatprep.subr.bf16.mxu0 %v10151_v2  ;;  %1576 = vmatprep.subr.bf16.mxu1 %v9561_v1  ;;  %11871 = vst [vmem:[#allocation59_spill] sm:$0xff] %v10166_v4  ;;  %v9564_v1 = vld [vmem:[#allocation6 + $0x28] ss:$16 sps:$4 sm:$0xff]   ;;  %v10171_v2 = vld [vmem:[#allocation6 + $0x40] ss:$16 sps:$4 sm:$0xff]  }
 0x1d1   :  { %11872 = vst [vmem:[#allocation60_spill] sm:$0xff] %v10171_v2 }
 0x1d2   :  { %1257 = vmatmul.mubr.bf16.vlgmr.msra.gmra.mrb[8].mxu0 %v11850_v63  ;;  %1298 = vmatmul.mubr.bf16.vlgmr.msra.gmra.mrb[40].mxu1 %v11850_v63 }
 0x1d3   :  { %1536 = vmatpush1.bf16.msra.mxu0 %v10155_v57  ;;  %1577 = vmatpush1.bf16.msra.mxu1 %v9562_v54  ;;  %v9565_v54 = vld [vmem:[#allocation6 + $0x4c] ss:$16 sps:$4 sm:$0xff]   ;;  %v10174_v57 = vld [vmem:[#allocation6 + $0x64] ss:$16 sps:$4 sm:$0xff]  }
 0x1d4   :  { %1537 = vmatprep.subr.bf16.mxu0 %v10158_v56  ;;  %1578 = vmatprep.subr.bf16.mxu1 %v9563_v9  ;;  %11873 = vst [vmem:[#allocation61_spill] sm:$0xff] %v10174_v57  ;;  %v9566_v9 = vld [vmem:[#allocation6 + $0x48] ss:$16 sps:$4 sm:$0xff]   ;;  %v10177_v56 = vld [vmem:[#allocation6 + $0x60] ss:$16 sps:$4 sm:$0xff]  }
 0x1d5   :  { %1567 = vmatprep.mubr.bf16.mxu0 %v11850_v63  ;;  %1608 = vmatprep.mubr.bf16.mxu1 %v11850_v63  ;;  %11874 = vst [vmem:[#allocation62_spill] sm:$0xff] %v10177_v56 }
 0x1d7   :  { %1538 = vmatpush1.bf16.msra.mxu0 %v10163_v47  ;;  %1579 = vmatpush1.bf16.msra.mxu1 %v9564_v1  ;;  %v10180_v47 = vld [vmem:[#allocation6 + $0x84] ss:$16 sps:$4 sm:$0xff]   ;;  %v9568_v1 = vld [vmem:[#allocation6 + $0x68] ss:$16 sps:$4 sm:$0xff]  }
 0x1d8   :  { %1539 = vmatprep.subr.bf16.mxu0 %v10166_v4  ;;  %1580 = vmatprep.subr.bf16.mxu1 %v9565_v54  ;;  %11875 = vst [vmem:[#allocation63_spill] sm:$0xff] %v10180_v47  ;;  %v10183_v4 = vld [vmem:[#allocation6 + $0x80] ss:$16 sps:$4 sm:$0xff]   ;;  %v9569_v54 = vld [vmem:[#allocation6 + $0x8c] ss:$16 sps:$4 sm:$0xff]  }
 0x1d9   :  { %11876 = vst [vmem:[#allocation64_spill] sm:$0xff] %v10183_v4 }
 0x1db   :  { %1540 = vmatpush1.bf16.msra.mxu0 %v10171_v2  ;;  %1581 = vmatpush1.bf16.msra.mxu1 %v9566_v9  ;;  %v10186_v2 = vld [vmem:[#allocation6 + $0xa4] ss:$16 sps:$4 sm:$0xff]   ;;  %v9570_v9 = vld [vmem:[#allocation6 + $0x88] ss:$16 sps:$4 sm:$0xff]  }
 0x1dc   :  { %1541 = vmatprep.subr.bf16.mxu0 %v10174_v57  ;;  %1582 = vmatprep.subr.bf16.mxu1 %v9567_v7  ;;  %11877 = vst [vmem:[#allocation65_spill] sm:$0xff] %v10186_v2  ;;  %v10189_v57 = vld [vmem:[#allocation6 + $0xa0] ss:$16 sps:$4 sm:$0xff]   ;;  %v9571_v7 = vld [vmem:[#allocation6 + $0xac] ss:$16 sps:$4 sm:$0xff]  }
 0x1df   :  { %1542 = vmatpush1.bf16.msra.mxu0 %v10177_v56  ;;  %1583 = vmatpush1.bf16.msra.mxu1 %v9568_v1  ;;  %v10192_v56 = vld [vmem:[#allocation6 + $0xc4] ss:$16 sps:$4 sm:$0xff]   ;;  %v9572_v1 = vld [vmem:[#allocation6 + $0xa8] ss:$16 sps:$4 sm:$0xff]  }
 0x1e0   :  { %1543 = vmatprep.subr.bf16.mxu0 %v10180_v47  ;;  %1584 = vmatprep.subr.bf16.mxu1 %v9569_v54  ;;  %v10195_v47 = vld [vmem:[#allocation6 + $0xc0] ss:$16 sps:$4 sm:$0xff]   ;;  %v9573_v54 = vld [vmem:[#allocation6 + $0xcc] ss:$16 sps:$4 sm:$0xff]  }
 0x1e3   :  { %1544 = vmatpush1.bf16.msra.mxu0 %v10183_v4  ;;  %1585 = vmatpush1.bf16.msra.mxu1 %v9570_v9  ;;  %v10198_v4 = vld [vmem:[#allocation6 + $0xe4] ss:$16 sps:$4 sm:$0xff]   ;;  %v9574_v9 = vld [vmem:[#allocation6 + $0xc8] ss:$16 sps:$4 sm:$0xff]  }
 0x1e4   :  { %1545 = vmatprep.subr.bf16.mxu0 %v10186_v2  ;;  %1586 = vmatprep.subr.bf16.mxu1 %v9571_v7  ;;  %v10201_v2 = vld [vmem:[#allocation6 + $0xe0] ss:$16 sps:$4 sm:$0xff]   ;;  %v9575_v7 = vld [vmem:[#allocation6 + $0xec] ss:$16 sps:$4 sm:$0xff]  }
 0x1e7   :  { %1546 = vmatpush1.bf16.msra.mxu0 %v10189_v57  ;;  %1587 = vmatpush1.bf16.msra.mxu1 %v9572_v1  ;;  %v9576_v1 = vld [vmem:[#allocation6 + $0xe8] ss:$16 sps:$4 sm:$0xff]  }
 0x1e8   :  { %1547 = vmatprep.subr.bf16.mxu0 %v10192_v56  ;;  %1588 = vmatprep.subr.bf16.mxu1 %v9573_v54 }
 0x1eb   :  { %1548 = vmatpush1.bf16.msra.mxu0 %v10195_v47  ;;  %1589 = vmatpush1.bf16.msra.mxu1 %v9574_v9 }
 0x1ec   :  { %1549 = vmatprep.subr.bf16.mxu0 %v10198_v4  ;;  %1590 = vmatprep.subr.bf16.mxu1 %v9575_v7 }
 0x1ef   :  { %1550 = vmatpush1.bf16.msra.mxu0 %v10201_v2  ;;  %1591 = vmatpush1.bf16.msra.mxu1 %v9576_v1 }
 0x1f0   :  { %1871 = vmatprep.subr.bf16.mxu0 %v9893_v14  ;;  %1912 = vmatprep.subr.bf16.mxu1 %v9895_v15 }
 0x1f2   :  { %1568 = vmatmul.mubr.bf16.vlgmr.msra.gmra.mrb[12].mxu0 %v10061_v12  ;;  %1609 = vmatmul.mubr.bf16.vlgmr.msra.gmra.mrb[44].mxu1 %v10061_v12 }
 0x1f3   :  { %1872 = vmatpush1.bf16.msra.mxu0 %v9897_v16  ;;  %1913 = vmatpush1.bf16.msra.mxu1 %v9899_v17 }
 0x1f4   :  { %1873 = vmatprep.subr.bf16.mxu0 %v9905_v0  ;;  %1914 = vmatprep.subr.bf16.mxu1 %v9907_v18 }
 0x1f5   :  { %1903 = vmatprep.mubr.bf16.mxu0 %v11850_v63  ;;  %1944 = vmatprep.mubr.bf16.mxu1 %v11850_v63 }
 0x1f7   :  { %1874 = vmatpush1.bf16.msra.mxu0 %v9909_v19  ;;  %1915 = vmatpush1.bf16.msra.mxu1 %v9911_v20 }
 0x1f8   :  { %1875 = vmatprep.subr.bf16.mxu0 %v9917_v21  ;;  %1916 = vmatprep.subr.bf16.mxu1 %v9919_v22  ;;  %v10243_v22 = vld [vmem:[#allocation11] sm:$0xff] }
 0x1fb   :  { %1876 = vmatpush1.bf16.msra.mxu0 %v9921_v23  ;;  %1917 = vmatpush1.bf16.msra.mxu1 %v9923_v24 }
 0x1fc   :  { %1877 = vmatprep.subr.bf16.mxu0 %v9929_v25  ;;  %1918 = vmatprep.subr.bf16.mxu1 %v9931_v26 }
 0x1ff   :  { %1878 = vmatpush1.bf16.msra.mxu0 %v9933_v27  ;;  %1919 = vmatpush1.bf16.msra.mxu1 %v9935_v28  ;;  %v10245_v27 = vld [vmem:[#allocation11 + $0x8] sm:$0xff] }
 0x200   :  { %1879 = vmatprep.subr.bf16.mxu0 %v9941_v29  ;;  %1920 = vmatprep.subr.bf16.mxu1 %v9943_v30 }
 0x203   :  { %1880 = vmatpush1.bf16.msra.mxu0 %v9945_v31  ;;  %1921 = vmatpush1.bf16.msra.mxu1 %v9947_v32 }
 0x204   :  { %1881 = vmatprep.subr.bf16.mxu0 %v9955_v34  ;;  %1922 = vmatprep.subr.bf16.mxu1 %v9959_v36 }
 0x207   :  { %1882 = vmatpush1.bf16.msra.mxu0 %v9953_v33  ;;  %1923 = vmatpush1.bf16.msra.mxu1 %v9957_v35 }
 0x208   :  { %1883 = vmatprep.subr.bf16.mxu0 %v9961_v37  ;;  %1924 = vmatprep.subr.bf16.mxu1 %v9964_v38 }
 0x20b   :  { %1884 = vmatpush1.bf16.msra.mxu0 %v9968_v39  ;;  %1925 = vmatpush1.bf16.msra.mxu1 %v9972_v40  ;;  %v10249_v39 = vld [vmem:[#allocation11 + $0x10] sm:$0xff] }
 0x20c   :  { %1885 = vmatprep.subr.bf16.mxu0 %v9974_v41  ;;  %1926 = vmatprep.subr.bf16.mxu1 %v9977_v42 }
 0x20f   :  { %1886 = vmatpush1.bf16.msra.mxu0 %v9980_v43  ;;  %1927 = vmatpush1.bf16.msra.mxu1 %v9984_v44 }
 0x210   :  { %2113 = vmatprep.subr.bf16.mxu0 %v9986_v45  ;;  %2154 = vmatprep.subr.bf16.mxu1 %v9989_v46 }
 0x285   :  { %v1016_v14 = vpop.f32.mrb[4].mxu0  ;;  %v1057_v15 = vpop.f32.mrb[36].mxu1 }
 0x286   :  { %v1018_v16 = vpop.f32.mrb[5].mxu0  ;;  %v1059_v17 = vpop.f32.mrb[37].mxu1 }
 0x287   :  { %v1020_v0 = vpop.f32.mrb[6].mxu0  ;;  %v1061_v18 = vpop.f32.mrb[38].mxu1 }
 0x288   :  { %v1021_v19 = vpop.f32.mrb[7].mxu0  ;;  %v1062_v20 = vpop.f32.mrb[39].mxu1 }
 0x2a5   :  { %v1258_v21 = vpop.f32.mrb[8].mxu0  ;;  %v1299_v23 = vpop.f32.mrb[40].mxu1 }
 0x2a6   :  { %v1259_v24 = vadd.f32 %v1258_v21, %v1016_v14  ;;  %v1300_v25 = vadd.f32 %v1299_v23, %v1057_v15  ;;  %v1260_v26 = vpop.f32.mrb[9].mxu0  ;;  %v1301_v28 = vpop.f32.mrb[41].mxu1 }
 0x2a7   :  { %v1261_v29 = vadd.f32 %v1260_v26, %v1018_v16  ;;  %v1302_v30 = vadd.f32 %v1301_v28, %v1059_v17  ;;  %v1262_v31 = vpop.f32.mrb[10].mxu0  ;;  %v1303_v32 = vpop.f32.mrb[42].mxu1 }
 0x2a8   :  { %v1310_v33 = vadd.f32 %v10243_v22, %v1259_v24  ;;  %v1263_v34 = vpop.f32.mrb[11].mxu0  ;;  %v1304_v35 = vpop.f32.mrb[43].mxu1  ;;  %v1312_v40 = vadd.f32 %v10249_v39, %v1300_v25 }
 0x2a9   :  { %v1311_v36 = vadd.f32 %v10245_v27, %v1261_v29 }
 0x2aa   :  { %v7812_v37 = vmul.f32 -1.442695, %v1310_v33 }
 0x2ab   :  { %v7813_v38 = vmul.f32 -1.442695, %v1311_v36 }
 0x2ac   :  { %9321 = vpow2.f32 %v7812_v37 }
 0x2ad   :  { %9323 = vpow2.f32 %v7813_v38  ;;  %v10262_v38 = vld [vmem:[#allocation11 + $0x18] sm:$0xff] }
 0x2ae   :  { %9325 = vtanh.f32 %v1312_v40  ;;  %v1313_v40 = vadd.f32 %v10262_v38, %v1302_v30  ;;  %v11889_v30 = vld [vmem:[#allocation50_spill] sm:$0xff] }
 0x2b6   :  { %v9322_v41 = vpop.eup %9321 }
 0x2b7   :  { %v9324_v42 = vpop.eup %9323  ;;  %v1317_v43 = vadd.f32 1.0, %v9322_v41 }
 0x2b8   :  { %v1323_v44 = vadd.f32 1.0, %v9324_v42  ;;  %v9326_v45 = vpop.eup %9325  ;;  %v7814_v42 = vmul.f32 -1.442695, %v1313_v40  ;;  %v10358_v40 = vld [vmem:[#allocation6 + $0xc8] ss:$16 sps:$4 sm:$0xff]  }
 0x2b9   :  { %9327 = vrcp.f32 %v1317_v43 }
 0x2ba   :  { %9329 = vrcp.f32 %v1323_v44 }
 0x2c3   :  { %v9328_v46 = vpop.eup %9327 }
 0x2c4   :  { %v9330_v12 = vpop.eup %9329  ;;  %v1334_v54 = vmul.f32 %v9328_v46, %v9326_v45  ;;  %v11890_v46 = vld [vmem:[#allocation51_spill] sm:$0xff] }
 0x2c5   :  { %v1333_v9 = vmul.f32 0.0, %v9330_v12  ;;  %v1569_v7 = vpop.f32.mrb[12].mxu0  ;;  %v1610_v1 = vpop.f32.mrb[44].mxu1  ;;  %v11891_v12 = vld [vmem:[#allocation52_spill] sm:$0xff] }
 0x2c6   :  { %v1617_v14 = vadd.f32 %v1569_v7, %v9998_v3  ;;  %v1619_v15 = vadd.f32 %v1610_v1, %v10026_v58  ;;  %v1571_v16 = vpop.f32.mrb[13].mxu0  ;;  %v1612_v17 = vpop.f32.mrb[45].mxu1  ;;  %v11893_v7 = vld [vmem:[#allocation53_spill] sm:$0xff]  ;;  %v11894_v1 = vld [vmem:[#allocation54_spill] sm:$0xff] }
 0x2c7   :  { %v10254_v0 = vadd.f32 %v1334_v54, %v1333_v9  ;;  %v1618_v18 = vadd.f32 %v1571_v16, %v10000_v5  ;;  %v1620_v19 = vadd.f32 %v1612_v17, %v10028_v61  ;;  %v1573_v20 = vpop.f32.mrb[14].mxu0  ;;  %v1614_v21 = vpop.f32.mrb[46].mxu1  ;;  %v10302_v9 = vld [vmem:[#allocation6 + $0xc] ss:$16 sps:$4 sm:$0xff]   ;;  %v11895_v16 = vld [vmem:[#allocation55_spill] sm:$0xff] }
 0x2c8   :  { %v7847_v23 = vmul.f32 -1.442695, %v1617_v14  ;;  %v1574_v24 = vpop.f32.mrb[15].mxu0  ;;  %v1615_v25 = vpop.f32.mrb[47].mxu1  ;;  %v10306_v14 = vld [vmem:[#allocation6 + $0x8] ss:$16 sps:$4 sm:$0xff]  }
 0x2c9   :  { %v7848_v26 = vmul.f32 -1.442695, %v1618_v18  ;;  %v7849_v28 = vmul.f32 -1.442695, %v1620_v19  ;;  %v10312_v17 = vld [vmem:[#allocation6 + $0x2c] ss:$16 sps:$4 sm:$0xff]  }
 0x2ca   :  { %9331 = vpow2.f32 %v7847_v23  ;;  %v11896_v18 = vld [vmem:[#allocation56_spill] sm:$0xff]  ;;  %v11897_v20 = vld [vmem:[#allocation57_spill] sm:$0xff]  ;;  %v11898_v23 = vld [vmem:[#allocation58_spill] sm:$0xff] }
 0x2cb   :  { %9333 = vpow2.f32 %v7848_v26  ;;  %v10316_v19 = vld [vmem:[#allocation6 + $0x28] ss:$16 sps:$4 sm:$0xff]   ;;  %v10320_v21 = vld [vmem:[#allocation6 + $0x4c] ss:$16 sps:$4 sm:$0xff]   ;;  %v11899_v25 = vld [vmem:[#allocation59_spill] sm:$0xff] }
 0x2cc   :  { %9335 = vpow2.f32 %v7849_v28  ;;  %v10326_v24 = vld [vmem:[#allocation6 + $0x48] ss:$16 sps:$4 sm:$0xff]   ;;  %v10330_v26 = vld [vmem:[#allocation6 + $0x6c] ss:$16 sps:$4 sm:$0xff]  }
 0x2cd   :  { %9337 = vtanh.f32 %v1619_v15  ;;  %v11900_v28 = vld [vmem:[#allocation60_spill] sm:$0xff] }
 0x2d4   :  { %v9332_v3 = vpop.eup %9331 }
 0x2d5   :  { %v9334_v29 = vpop.eup %9333  ;;  %v1624_v58 = vadd.f32 1.0, %v9332_v3  ;;  %v10334_v3 = vld [vmem:[#allocation6 + $0x68] ss:$16 sps:$4 sm:$0xff]  }
 0x2d6   :  { %v1630_v31 = vadd.f32 1.0, %v9334_v29  ;;  %v9336_v5 = vpop.eup %9335  ;;  %v11901_v29 = vld [vmem:[#allocation61_spill] sm:$0xff] }
 0x2d7   :  { %9339 = vrcp.f32 %v1624_v58  ;;  %v9338_v32 = vpop.eup %9337  ;;  %v1637_v35 = vadd.f32 1.0, %v9336_v5  ;;  %v10338_v58 = vld [vmem:[#allocation6 + $0x8c] ss:$16 sps:$4 sm:$0xff]   ;;  %v10342_v5 = vld [vmem:[#allocation6 + $0x88] ss:$16 sps:$4 sm:$0xff]  }
 0x2d8   :  { %9341 = vrcp.f32 %v1630_v31  ;;  %v11902_v31 = vld [vmem:[#allocation62_spill] sm:$0xff] }
 0x2d9   :  { %9343 = vrcp.f32 %v1637_v35  ;;  %v11905_v35 = vld [vmem:[#allocation65_spill] sm:$0xff] }
 0x2e1   :  { %v9340_v61 = vpop.eup %9339 }
 0x2e2   :  { %v9342_v33 = vpop.eup %9341  ;;  %v1641_v34 = vmul.f32 %v9340_v61, %v9338_v32  ;;  %v11903_v32 = vld [vmem:[#allocation63_spill] sm:$0xff]  ;;  %v10346_v61 = vld [vmem:[#allocation6 + $0xac] ss:$16 sps:$4 sm:$0xff]  }
 0x2e3   :  { %v1640_v36 = vmul.f32 %v9342_v33, %v10054_v13  ;;  %v9344_v41 = vpop.eup %9343  ;;  %v11904_v33 = vld [vmem:[#allocation64_spill] sm:$0xff] }
 0x2e5   :  { %v10259_v37 = vadd.f32 %v1641_v34, %v1640_v36  ;;  %v10350_v34 = vld [vmem:[#allocation6 + $0xa8] ss:$16 sps:$4 sm:$0xff]   ;;  %v10354_v36 = vld [vmem:[#allocation6 + $0xcc] ss:$16 sps:$4 sm:$0xff]  }
 0x2e7   :  { %9345 = vtanh.f32 %v10259_v37 }
 0x2e8   :  { %9347 = vpow2.f32 %v7814_v42  ;;  %v10366_v42 = vld [vmem:[#allocation6 + $0xe8] ss:$16 sps:$4 sm:$0xff]  }
 0x2e9   :  { %9349 = vtanh.f32 %v10254_v0 }
 0x2f1   :  { %v9346_v43 = vpop.eup %9345 }
 0x2f2   :  { %v1644_v44 = vmul.f32 %v9346_v43, %v9344_v41  ;;  %v9348_v13 = vpop.eup %9347  ;;  %v10362_v41 = vld [vmem:[#allocation6 + $0xec] ss:$16 sps:$4 sm:$0xff]  }
 0x2f3   :  { %v10390_v43 = vld [vmem:[#allocation8 + $0x2c] ss:$16 sps:$4 sm:$0xff]  }
 0x2f4   :  { %v10265_v45 = vpack.c.bf16 %v1644_v44, %v1644_v44  ;;  %v10392_v44 = vld [vmem:[#allocation8 + $0x20] ss:$16 sps:$4 sm:$0xff]  }
 0x2f6   :  { %1904 = vmatmul.mubr.bf16.vlgmr.msra.gmra.mrb[16].mxu0 %v10265_v45  ;;  %1945 = vmatmul.mubr.bf16.vlgmr.msra.gmra.mrb[48].mxu1 %v10265_v45 }
 0x2f7   :  { %2114 = vmatpush1.bf16.msra.mxu0 %v10057_v6  ;;  %2155 = vmatpush1.bf16.msra.mxu1 %v10059_v55  ;;  %v1330_v6 = vadd.f32 1.0, %v9348_v13  ;;  %v11878_v55 = vld [vmem:[#allocation39_spill] sm:$0xff] }
 0x2f8   :  { %2115 = vmatprep.subr.bf16.mxu0 %v10063_v59  ;;  %2156 = vmatprep.subr.bf16.mxu1 %v10065_v62  ;;  %v11879_v59 = vld [vmem:[#allocation40_spill] sm:$0xff]  ;;  %v11880_v62 = vld [vmem:[#allocation41_spill] sm:$0xff] }
 0x2f9   :  { %2145 = vmatprep.mubr.bf16.mxu0 %v11850_v63  ;;  %2186 = vmatprep.mubr.bf16.mxu1 %v11850_v63  ;;  %9351 = vrcp.f32 %v1330_v6  ;;  %v10400_v13 = vld [vmem:[#allocation8 + $0x44] ss:$16 sps:$4 sm:$0xff]   ;;  %v10402_v6 = vld [vmem:[#allocation8 + $0x4c] ss:$16 sps:$4 sm:$0xff]  }
 0x2fb   :  { %2116 = vmatpush1.bf16.msra.mxu0 %v10071_v11  ;;  %2157 = vmatpush1.bf16.msra.mxu1 %v10073_v51  ;;  %v11881_v11 = vld [vmem:[#allocation42_spill] sm:$0xff]  ;;  %v11882_v51 = vld [vmem:[#allocation43_spill] sm:$0xff] }
 0x2fc   :  { %2117 = vmatprep.subr.bf16.mxu0 %v10077_v8  ;;  %2158 = vmatprep.subr.bf16.mxu1 %v10079_v50  ;;  %v11883_v8 = vld [vmem:[#allocation44_spill] sm:$0xff]  ;;  %v11884_v50 = vld [vmem:[#allocation45_spill] sm:$0xff] }
 0x2ff   :  { %2118 = vmatpush1.bf16.msra.mxu0 %v10085_v52  ;;  %2159 = vmatpush1.bf16.msra.mxu1 %v10087_v60  ;;  %v11885_v52 = vld [vmem:[#allocation46_spill] sm:$0xff]  ;;  %v11886_v60 = vld [vmem:[#allocation47_spill] sm:$0xff] }
 0x300   :  { %2119 = vmatprep.subr.bf16.mxu0 %v10091_v49  ;;  %2160 = vmatprep.subr.bf16.mxu1 %v10093_v48  ;;  %v11887_v49 = vld [vmem:[#allocation48_spill] sm:$0xff]  ;;  %v9350_v48 = vpop.eup %9349 }
 0x303   :  { %2120 = vmatpush1.bf16.msra.mxu0 %v10097_v10  ;;  %2161 = vmatpush1.bf16.msra.mxu1 %v10099_v53  ;;  %v9352_v10 = vpop.eup %9351  ;;  %v11888_v53 = vld [vmem:[#allocation49_spill] sm:$0xff] }
 0x304   :  { %2121 = vmatprep.subr.bf16.mxu0 %v11878_v55  ;;  %2162 = vmatprep.subr.bf16.mxu1 %v11879_v59  ;;  %v10300_v54 = vmul.f32 %v9352_v10, %v9350_v48  ;;  %v10404_v55 = vld [vmem:[#allocation8 + $0x40] ss:$16 sps:$4 sm:$0xff]   ;;  %v10406_v59 = vld [vmem:[#allocation8 + $0x48] ss:$16 sps:$4 sm:$0xff]   ;;  %v10434_v48 = vld [vmem:[#allocation8 + $0xa4] ss:$16 sps:$4 sm:$0xff]  }
 0x305   :  { %11907 = vst [vmem:[#allocation41_spill] sm:$0xff] %v10434_v48  ;;  %v10436_v10 = vld [vmem:[#allocation8 + $0xac] ss:$16 sps:$4 sm:$0xff]  }
 0x306   :  { %11892 = vst [vmem:[#allocation39_spill] sm:$0xff] %v10300_v54  ;;  %v1645_v15 = vpack.c.bf16 %v10300_v54, %v10300_v54  ;;  %11908 = vst [vmem:[#allocation42_spill] sm:$0xff] %v10436_v10 }
 0x307   :  { %2122 = vmatpush1.bf16.msra.mxu0 %v11880_v62  ;;  %2163 = vmatpush1.bf16.msra.mxu1 %v11881_v11  ;;  %v10412_v62 = vld [vmem:[#allocation8 + $0x64] ss:$16 sps:$4 sm:$0xff]   ;;  %v10414_v11 = vld [vmem:[#allocation8 + $0x6c] ss:$16 sps:$4 sm:$0xff]  }
 0x308   :  { %2123 = vmatprep.subr.bf16.mxu0 %v11882_v51  ;;  %2164 = vmatprep.subr.bf16.mxu1 %v11883_v8  ;;  %v10416_v51 = vld [vmem:[#allocation8 + $0x60] ss:$16 sps:$4 sm:$0xff]   ;;  %v10418_v8 = vld [vmem:[#allocation8 + $0x68] ss:$16 sps:$4 sm:$0xff]  }
 0x30b   :  { %2124 = vmatpush1.bf16.msra.mxu0 %v11884_v50  ;;  %2165 = vmatpush1.bf16.msra.mxu1 %v11885_v52  ;;  %v10424_v50 = vld [vmem:[#allocation8 + $0x84] ss:$16 sps:$4 sm:$0xff]   ;;  %v10426_v52 = vld [vmem:[#allocation8 + $0x8c] ss:$16 sps:$4 sm:$0xff]  }
 0x30c   :  { %2125 = vmatprep.subr.bf16.mxu0 %v11886_v60  ;;  %2166 = vmatprep.subr.bf16.mxu1 %v11887_v49  ;;  %v10428_v60 = vld [vmem:[#allocation8 + $0x80] ss:$16 sps:$4 sm:$0xff]   ;;  %v10430_v49 = vld [vmem:[#allocation8 + $0x88] ss:$16 sps:$4 sm:$0xff]  }
 0x30d   :  { %11906 = vst [vmem:[#allocation40_spill] sm:$0xff] %v10430_v49 }
 0x30f   :  { %2126 = vmatpush1.bf16.msra.mxu0 %v11888_v53  ;;  %2167 = vmatpush1.bf16.msra.mxu1 %v11889_v30  ;;  %v10440_v53 = vld [vmem:[#allocation8 + $0xa0] ss:$16 sps:$4 sm:$0xff]   ;;  %v10442_v30 = vld [vmem:[#allocation8 + $0xa8] ss:$16 sps:$4 sm:$0xff]  }
 0x310   :  { %2127 = vmatprep.subr.bf16.mxu0 %v11890_v46  ;;  %2168 = vmatprep.subr.bf16.mxu1 %v11891_v12  ;;  %11909 = vst [vmem:[#allocation43_spill] sm:$0xff] %v10440_v53  ;;  %11910 = vst [vmem:[#allocation44_spill] sm:$0xff] %v10442_v30  ;;  %v10446_v46 = vld [vmem:[#allocation8 + $0xc4] ss:$16 sps:$4 sm:$0xff]   ;;  %v10448_v12 = vld [vmem:[#allocation8 + $0xcc] ss:$16 sps:$4 sm:$0xff]  }
 0x311   :  { %11911 = vst [vmem:[#allocation45_spill] sm:$0xff] %v10446_v46  ;;  %11912 = vst [vmem:[#allocation46_spill] sm:$0xff] %v10448_v12 }
 0x313   :  { %2128 = vmatpush1.bf16.msra.mxu0 %v11893_v7  ;;  %2169 = vmatpush1.bf16.msra.mxu1 %v11894_v1  ;;  %v10452_v7 = vld [vmem:[#allocation8 + $0xc0] ss:$16 sps:$4 sm:$0xff]   ;;  %v10454_v1 = vld [vmem:[#allocation8 + $0xc8] ss:$16 sps:$4 sm:$0xff]  }
 0x314   :  { %2424 = vmatprep.subr.bf16.mxu0 %v11895_v16  ;;  %2465 = vmatprep.subr.bf16.mxu1 %v10302_v9  ;;  %11913 = vst [vmem:[#allocation47_spill] sm:$0xff] %v10452_v7  ;;  %11914 = vst [vmem:[#allocation48_spill] sm:$0xff] %v10454_v1  ;;  %v10460_v16 = vld [vmem:[#allocation8 + $0xec] ss:$16 sps:$4 sm:$0xff]  }
 0x315   :  { %11916 = vst [vmem:[#allocation50_spill] sm:$0xff] %v10460_v16 }
 0x316   :  { %2146 = vmatmul.mubr.bf16.vlgmr.msra.gmra.mrb[20].mxu0 %v1645_v15  ;;  %2187 = vmatmul.mubr.bf16.vlgmr.msra.gmra.mrb[52].mxu1 %v1645_v15  ;;  %v10458_v15 = vld [vmem:[#allocation8 + $0xe4] ss:$16 sps:$4 sm:$0xff]  }
 0x317   :  { %2425 = vmatpush1.bf16.msra.mxu0 %v11896_v18  ;;  %2466 = vmatpush1.bf16.msra.mxu1 %v10306_v14  ;;  %11915 = vst [vmem:[#allocation49_spill] sm:$0xff] %v10458_v15  ;;  %v10464_v18 = vld [vmem:[#allocation8 + $0xe0] ss:$16 sps:$4 sm:$0xff]  }
 0x318   :  { %2426 = vmatprep.subr.bf16.mxu0 %v11897_v20  ;;  %2467 = vmatprep.subr.bf16.mxu1 %v10312_v17  ;;  %11917 = vst [vmem:[#allocation51_spill] sm:$0xff] %v10464_v18  ;;  %v10466_v20 = vld [vmem:[#allocation8 + $0xe8] ss:$16 sps:$4 sm:$0xff]  }
 0x319   :  { %2456 = vmatprep.mubr.bf16.mxu0 %v11850_v63  ;;  %2497 = vmatprep.mubr.bf16.mxu1 %v11850_v63  ;;  %11918 = vst [vmem:[#allocation52_spill] sm:$0xff] %v10466_v20 }
 0x31b   :  { %2427 = vmatpush1.bf16.msra.mxu0 %v11898_v23  ;;  %2468 = vmatpush1.bf16.msra.mxu1 %v10316_v19  ;;  %v10470_v23 = vld [vmem:[#allocation9 + $0x4] ss:$16 sps:$4 sm:$0xff]  }
 0x31c   :  { %2428 = vmatprep.subr.bf16.mxu0 %v11899_v25  ;;  %2469 = vmatprep.subr.bf16.mxu1 %v10320_v21  ;;  %11919 = vst [vmem:[#allocation53_spill] sm:$0xff] %v10470_v23  ;;  %v10472_v25 = vld [vmem:[#allocation9 + $0xc] ss:$16 sps:$4 sm:$0xff]  }
 0x31d   :  { %11920 = vst [vmem:[#allocation54_spill] sm:$0xff] %v10472_v25 }
 0x31f   :  { %2429 = vmatpush1.bf16.msra.mxu0 %v11900_v28  ;;  %2470 = vmatpush1.bf16.msra.mxu1 %v10326_v24 }
 0x320   :  { %2430 = vmatprep.subr.bf16.mxu0 %v11901_v29  ;;  %2471 = vmatprep.subr.bf16.mxu1 %v10330_v26 }
 0x323   :  { %2431 = vmatpush1.bf16.msra.mxu0 %v11902_v31  ;;  %2472 = vmatpush1.bf16.msra.mxu1 %v10334_v3 }
 0x324   :  { %2432 = vmatprep.subr.bf16.mxu0 %v11903_v32  ;;  %2473 = vmatprep.subr.bf16.mxu1 %v10338_v58 }
 0x327   :  { %2433 = vmatpush1.bf16.msra.mxu0 %v11904_v33  ;;  %2474 = vmatpush1.bf16.msra.mxu1 %v10342_v5 }
 0x328   :  { %2434 = vmatprep.subr.bf16.mxu0 %v11905_v35  ;;  %2475 = vmatprep.subr.bf16.mxu1 %v10346_v61 }
 0x32b   :  { %2435 = vmatpush1.bf16.msra.mxu0 %v10189_v57  ;;  %2476 = vmatpush1.bf16.msra.mxu1 %v10350_v34  ;;  %v10376_v57 = vld [vmem:[#allocation8 + $0x4] ss:$16 sps:$4 sm:$0xff]  }
 0x32c   :  { %2436 = vmatprep.subr.bf16.mxu0 %v10192_v56  ;;  %2477 = vmatprep.subr.bf16.mxu1 %v10354_v36  ;;  %v10378_v56 = vld [vmem:[#allocation8 + $0xc] ss:$16 sps:$4 sm:$0xff]  }
 0x32f   :  { %2437 = vmatpush1.bf16.msra.mxu0 %v10195_v47  ;;  %2478 = vmatpush1.bf16.msra.mxu1 %v10358_v40  ;;  %v10380_v47 = vld [vmem:[#allocation8] ss:$16 sps:$4 sm:$0xff]  }
 0x330   :  { %2438 = vmatprep.subr.bf16.mxu0 %v10198_v4  ;;  %2479 = vmatprep.subr.bf16.mxu1 %v10362_v41  ;;  %v10382_v4 = vld [vmem:[#allocation8 + $0x8] ss:$16 sps:$4 sm:$0xff]  }
 0x333   :  { %2439 = vmatpush1.bf16.msra.mxu0 %v10201_v2  ;;  %2480 = vmatpush1.bf16.msra.mxu1 %v10366_v42  ;;  %v10388_v2 = vld [vmem:[#allocation8 + $0x24] ss:$16 sps:$4 sm:$0xff]  }
 0x334   :  { %2760 = vmatprep.subr.bf16.mxu0 %v10376_v57  ;;  %2801 = vmatprep.subr.bf16.mxu1 %v10378_v56 }
 0x336   :  { %2457 = vmatmul.mubr.bf16.vlgmr.msra.gmra.mrb[24].mxu0 %v10265_v45  ;;  %2498 = vmatmul.mubr.bf16.vlgmr.msra.gmra.mrb[56].mxu1 %v10265_v45  ;;  %v10394_v45 = vld [vmem:[#allocation8 + $0x28] ss:$16 sps:$4 sm:$0xff]  }
 0x337   :  { %2792 = vmatprep.mubr.bf16.mxu0 %v11850_v63  ;;  %2833 = vmatprep.mubr.bf16.mxu1 %v11850_v63 }
 0x338   :  { %2761 = vmatpush1.bf16.msra.mxu0 %v10380_v47  ;;  %2802 = vmatpush1.bf16.msra.mxu1 %v10382_v4 }
 0x339   :  { %2762 = vmatprep.subr.bf16.mxu0 %v10388_v2  ;;  %2803 = vmatprep.subr.bf16.mxu1 %v10390_v43 }
 0x33c   :  { %2763 = vmatpush1.bf16.msra.mxu0 %v10392_v44  ;;  %2804 = vmatpush1.bf16.msra.mxu1 %v10394_v45 }
 0x33d   :  { %2764 = vmatprep.subr.bf16.mxu0 %v10400_v13  ;;  %2805 = vmatprep.subr.bf16.mxu1 %v10402_v6 }
 0x340   :  { %2765 = vmatpush1.bf16.msra.mxu0 %v10404_v55  ;;  %2806 = vmatpush1.bf16.msra.mxu1 %v10406_v59 }
 0x341   :  { %2766 = vmatprep.subr.bf16.mxu0 %v10412_v62  ;;  %2807 = vmatprep.subr.bf16.mxu1 %v10414_v11 }
 0x344   :  { %2767 = vmatpush1.bf16.msra.mxu0 %v10416_v51  ;;  %2808 = vmatpush1.bf16.msra.mxu1 %v10418_v8 }
 0x345   :  { %2768 = vmatprep.subr.bf16.mxu0 %v10424_v50  ;;  %2809 = vmatprep.subr.bf16.mxu1 %v10426_v52 }
 0x348   :  { %2769 = vmatpush1.bf16.msra.mxu0 %v10428_v60  ;;  %2810 = vmatpush1.bf16.msra.mxu1 %v10430_v49 }
 0x349   :  { %2770 = vmatprep.subr.bf16.mxu0 %v10434_v48  ;;  %2811 = vmatprep.subr.bf16.mxu1 %v10436_v10 }
 0x34c   :  { %2771 = vmatpush1.bf16.msra.mxu0 %v10440_v53  ;;  %2812 = vmatpush1.bf16.msra.mxu1 %v10442_v30 }
 0x34d   :  { %2772 = vmatprep.subr.bf16.mxu0 %v10446_v46  ;;  %2813 = vmatprep.subr.bf16.mxu1 %v10448_v12 }
 0x350   :  { %2773 = vmatpush1.bf16.msra.mxu0 %v10452_v7  ;;  %2814 = vmatpush1.bf16.msra.mxu1 %v10454_v1 }
 0x351   :  { %2774 = vmatprep.subr.bf16.mxu0 %v10458_v15  ;;  %2815 = vmatprep.subr.bf16.mxu1 %v10460_v16 }
 0x354   :  { %2775 = vmatpush1.bf16.msra.mxu0 %v10464_v18  ;;  %2816 = vmatpush1.bf16.msra.mxu1 %v10466_v20 }
 0x355   :  { %3002 = vmatprep.subr.bf16.mxu0 %v10470_v23  ;;  %3043 = vmatprep.subr.bf16.mxu1 %v10472_v25 }
 0x3c9   :  { %v1905_v28 = vpop.f32.mrb[16].mxu0  ;;  %v1946_v29 = vpop.f32.mrb[48].mxu1 }
 0x3ca   :  { %v1907_v31 = vpop.f32.mrb[17].mxu0  ;;  %v1948_v32 = vpop.f32.mrb[49].mxu1 }
 0x3cb   :  { %v1909_v33 = vpop.f32.mrb[18].mxu0  ;;  %v1950_v35 = vpop.f32.mrb[50].mxu1 }
 0x3cc   :  { %v1910_v54 = vpop.f32.mrb[19].mxu0  ;;  %v1951_v16 = vpop.f32.mrb[51].mxu1 }
 0x3e9   :  { %v2147_v15 = vpop.f32.mrb[20].mxu0  ;;  %v2188_v1 = vpop.f32.mrb[52].mxu1 }
 0x3ea   :  { %v2148_v7 = vadd.f32 %v2147_v15, %v1905_v28  ;;  %v2189_v12 = vadd.f32 %v2188_v1, %v1946_v29  ;;  %v2149_v46 = vpop.f32.mrb[21].mxu0  ;;  %v2190_v18 = vpop.f32.mrb[53].mxu1  ;;  %v11923_v29 = vld [vmem:[#allocation16_spill] sm:$0xff] }
 0x3eb   :  { %v2150_v30 = vadd.f32 %v2149_v46, %v1907_v31  ;;  %v2191_v20 = vadd.f32 %v2190_v18, %v1948_v32  ;;  %v2151_v53 = vpop.f32.mrb[22].mxu0  ;;  %v2192_v23 = vpop.f32.mrb[54].mxu1  ;;  %v11924_v32 = vld [vmem:[#allocation28_spill] sm:$0xff] }
 0x3ec   :  { %v2199_v25 = vadd.f32 %v2148_v7, %v10243_v22  ;;  %v2152_v10 = vpop.f32.mrb[23].mxu0  ;;  %v2193_v48 = vpop.f32.mrb[55].mxu1  ;;  %v2201_v54 = vadd.f32 %v2189_v12, %v10249_v39  ;;  %v11922_v23 = vld [vmem:[#allocation27_spill] sm:$0xff] }
 0x3ed   :  { %v2200_v49 = vadd.f32 %v2150_v30, %v10245_v27 }
 0x3ee   :  { %v7914_v33 = vmul.f32 -1.442695, %v2199_v25 }
 0x3ef   :  { %v7915_v35 = vmul.f32 -1.442695, %v2200_v49  ;;  %v11921_v49 = vld [vmem:[#allocation15_spill] sm:$0xff] }
 0x3f0   :  { %9353 = vpow2.f32 %v7914_v33 }
 0x3f1   :  { %9355 = vpow2.f32 %v7915_v35 }
 0x3f2   :  { %9357 = vtanh.f32 %v2201_v54 }
 0x3fa   :  { %v9354_v15 = vpop.eup %9353 }
 0x3fb   :  { %v9356_v1 = vpop.eup %9355  ;;  %v2206_v16 = vadd.f32 1.0, %v9354_v15 }
 0x3fc   :  { %v2212_v46 = vadd.f32 1.0, %v9356_v1  ;;  %v9358_v53 = vpop.eup %9357 }
 0x3fd   :  { %9359 = vrcp.f32 %v2206_v16 }
 0x3fe   :  { %9361 = vrcp.f32 %v2212_v46 }
 0x407   :  { %v9360_v18 = vpop.eup %9359 }
 0x408   :  { %v9362_v22 = vpop.eup %9361  ;;  %v2223_v10 = vmul.f32 %v9360_v18, %v9358_v53 }
 0x409   :  { %v2222_v48 = vmul.f32 %v9362_v22, %v10254_v0  ;;  %v2458_v27 = vpop.f32.mrb[24].mxu0  ;;  %v2499_v30 = vpop.f32.mrb[56].mxu1 }
 0x40a   :  { %v2506_v7 = vadd.f32 %v2458_v27, %v11921_v49  ;;  %v2508_v25 = vadd.f32 %v2499_v30, %v11922_v23  ;;  %v2460_v39 = vpop.f32.mrb[25].mxu0  ;;  %v2501_v12 = vpop.f32.mrb[57].mxu1 }
 0x40b   :  { %v10484_v28 = vadd.f32 %v2223_v10, %v2222_v48  ;;  %v2507_v31 = vadd.f32 %v2460_v39, %v11923_v29  ;;  %v2509_v33 = vadd.f32 %v2501_v12, %v11924_v32  ;;  %v2462_v35 = vpop.f32.mrb[26].mxu0  ;;  %v2503_v54 = vpop.f32.mrb[58].mxu1  ;;  %v2202_v29 = vadd.f32 %v2191_v20, %v10262_v38  ;;  %v10507_v38 = vld [vmem:[#allocation9 + $0x20] ss:$16 sps:$4 sm:$0xff]   ;;  %v10509_v20 = vld [vmem:[#allocation9 + $0x28] ss:$16 sps:$4 sm:$0xff]  }
 0x40c   :  { %v7949_v15 = vmul.f32 -1.442695, %v2506_v7  ;;  %v2463_v1 = vpop.f32.mrb[27].mxu0  ;;  %v2504_v16 = vpop.f32.mrb[59].mxu1  ;;  %v10493_v35 = vld [vmem:[#allocation9] ss:$16 sps:$4 sm:$0xff]  }
 0x40d   :  { %v7950_v0 = vmul.f32 -1.442695, %v2507_v31  ;;  %v7951_v46 = vmul.f32 -1.442695, %v2509_v33  ;;  %v10495_v54 = vld [vmem:[#allocation9 + $0x8] ss:$16 sps:$4 sm:$0xff]  }
 0x40e   :  { %9363 = vpow2.f32 %v7949_v15  ;;  %v10499_v1 = vld [vmem:[#allocation9 + $0x24] ss:$16 sps:$4 sm:$0xff]  }
 0x40f   :  { %9365 = vpow2.f32 %v7950_v0  ;;  %v10513_v16 = vld [vmem:[#allocation9 + $0x44] ss:$16 sps:$4 sm:$0xff]   ;;  %v10515_v0 = vld [vmem:[#allocation9 + $0x4c] ss:$16 sps:$4 sm:$0xff]  }
 0x410   :  { %9367 = vpow2.f32 %v7951_v46  ;;  %v10521_v46 = vld [vmem:[#allocation9 + $0x40] ss:$16 sps:$4 sm:$0xff]  }
 0x411   :  { %9369 = vtanh.f32 %v2508_v25  ;;  %v7916_v25 = vmul.f32 -1.442695, %v2202_v29  ;;  %v10552_v29 = vld [vmem:[#allocation9 + $0xa4] ss:$16 sps:$4 sm:$0xff]  }
 0x412   :  { %11929 = vst [vmem:[#allocation59_spill] sm:$0xff] %v10552_v29 }
 0x418   :  { %v9364_v53 = vpop.eup %9363 }
 0x419   :  { %v9366_v18 = vpop.eup %9365  ;;  %v2513_v22 = vadd.f32 1.0, %v9364_v53  ;;  %v10523_v53 = vld [vmem:[#allocation9 + $0x48] ss:$16 sps:$4 sm:$0xff]  }
 0x41a   :  { %v2519_v10 = vadd.f32 1.0, %v9366_v18  ;;  %v9368_v48 = vpop.eup %9367  ;;  %v10527_v18 = vld [vmem:[#allocation9 + $0x64] ss:$16 sps:$4 sm:$0xff]  }
 0x41b   :  { %9371 = vrcp.f32 %v2513_v22  ;;  %v9370_v27 = vpop.eup %9369  ;;  %v2526_v7 = vadd.f32 1.0, %v9368_v48  ;;  %v10529_v22 = vld [vmem:[#allocation9 + $0x6c] ss:$16 sps:$4 sm:$0xff]   ;;  %v10533_v48 = vld [vmem:[#allocation9 + $0x60] ss:$16 sps:$4 sm:$0xff]  }
 0x41c   :  { %9373 = vrcp.f32 %v2519_v10 }
 0x41d   :  { %9375 = vrcp.f32 %v2526_v7  ;;  %v10545_v7 = vld [vmem:[#allocation9 + $0x80] ss:$16 sps:$4 sm:$0xff]  }
 0x41e   :  { %11927 = vst [vmem:[#allocation57_spill] sm:$0xff] %v10545_v7 }
 0x425   :  { %v9372_v30 = vpop.eup %9371 }
 0x426   :  { %v9374_v49 = vpop.eup %9373  ;;  %v2530_v23 = vmul.f32 %v9372_v30, %v9370_v27  ;;  %v10535_v27 = vld [vmem:[#allocation9 + $0x68] ss:$16 sps:$4 sm:$0xff]   ;;  %v10539_v30 = vld [vmem:[#allocation9 + $0x84] ss:$16 sps:$4 sm:$0xff]  }
 0x427   :  { %v2529_v39 = vmul.f32 %v9374_v49, %v10259_v37  ;;  %v9376_v31 = vpop.eup %9375  ;;  %v10501_v37 = vld [vmem:[#allocation9 + $0x2c] ss:$16 sps:$4 sm:$0xff]   ;;  %11925 = vst [vmem:[#allocation55_spill] sm:$0xff] %v10539_v30 }
 0x428   :  { %v10541_v49 = vld [vmem:[#allocation9 + $0x8c] ss:$16 sps:$4 sm:$0xff]  }
 0x429   :  { %v10489_v12 = vadd.f32 %v2530_v23, %v2529_v39  ;;  %11926 = vst [vmem:[#allocation56_spill] sm:$0xff] %v10541_v49  ;;  %v10547_v39 = vld [vmem:[#allocation9 + $0x88] ss:$16 sps:$4 sm:$0xff]  }
 0x42a   :  { %11928 = vst [vmem:[#allocation58_spill] sm:$0xff] %v10547_v39 }
 0x42b   :  { %9377 = vtanh.f32 %v10489_v12 }
 0x42c   :  { %9379 = vpow2.f32 %v7916_v25  ;;  %v10558_v25 = vld [vmem:[#allocation9 + $0xa0] ss:$16 sps:$4 sm:$0xff]  }
 0x42d   :  { %9381 = vtanh.f32 %v10484_v28  ;;  %11931 = vst [vmem:[#allocation61_spill] sm:$0xff] %v10558_v25 }
 0x435   :  { %v9378_v32 = vpop.eup %9377 }
 0x436   :  { %v2533_v33 = vmul.f32 %v9378_v32, %v9376_v31  ;;  %v9380_v10 = vpop.eup %9379  ;;  %v10554_v31 = vld [vmem:[#allocation9 + $0xac] ss:$16 sps:$4 sm:$0xff]   ;;  %v10560_v32 = vld [vmem:[#allocation9 + $0xa8] ss:$16 sps:$4 sm:$0xff]  }
 0x437   :  { %v2219_v23 = vadd.f32 1.0, %v9380_v10  ;;  %11930 = vst [vmem:[#allocation60_spill] sm:$0xff] %v10554_v31  ;;  %11932 = vst [vmem:[#allocation62_spill] sm:$0xff] %v10560_v32  ;;  %v10566_v10 = vld [vmem:[#allocation9 + $0xcc] ss:$16 sps:$4 sm:$0xff]  }
 0x438   :  { %v10497_v15 = vpack.c.bf16 %v2533_v33, %v2533_v33  ;;  %v10564_v33 = vld [vmem:[#allocation9 + $0xc4] ss:$16 sps:$4 sm:$0xff]   ;;  %11934 = vst [vmem:[#allocation64_spill] sm:$0xff] %v10566_v10 }
 0x439   :  { %9383 = vrcp.f32 %v2219_v23  ;;  %11933 = vst [vmem:[#allocation63_spill] sm:$0xff] %v10564_v33  ;;  %v10570_v23 = vld [vmem:[#allocation9 + $0xc0] ss:$16 sps:$4 sm:$0xff]  }
 0x43a   :  { %2793 = vmatmul.mubr.bf16.vlgmr.msra.gmra.mrb[28].mxu0 %v10497_v15  ;;  %2834 = vmatmul.mubr.bf16.vlgmr.msra.gmra.mrb[60].mxu1 %v10497_v15 }
 0x43b   :  { %3003 = vmatpush1.bf16.msra.mxu0 %v10493_v35  ;;  %3044 = vmatpush1.bf16.msra.mxu1 %v10495_v54 }
 0x43c   :  { %3004 = vmatprep.subr.bf16.mxu0 %v10499_v1  ;;  %3045 = vmatprep.subr.bf16.mxu1 %v10501_v37 }
 0x43d   :  { %3034 = vmatprep.mubr.bf16.mxu0 %v11850_v63  ;;  %3075 = vmatprep.mubr.bf16.mxu1 %v11850_v63 }
 0x43f   :  { %3005 = vmatpush1.bf16.msra.mxu0 %v10507_v38  ;;  %3046 = vmatpush1.bf16.msra.mxu1 %v10509_v20 }
 0x440   :  { %3006 = vmatprep.subr.bf16.mxu0 %v10513_v16  ;;  %3047 = vmatprep.subr.bf16.mxu1 %v10515_v0 }
 0x443   :  { %3007 = vmatpush1.bf16.msra.mxu0 %v10521_v46  ;;  %3048 = vmatpush1.bf16.msra.mxu1 %v10523_v53 }
 0x444   :  { %3008 = vmatprep.subr.bf16.mxu0 %v10527_v18  ;;  %3049 = vmatprep.subr.bf16.mxu1 %v10529_v22 }
 0x447   :  { %3009 = vmatpush1.bf16.msra.mxu0 %v10533_v48  ;;  %3050 = vmatpush1.bf16.msra.mxu1 %v10535_v27 }
 0x448   :  { %3010 = vmatprep.subr.bf16.mxu0 %v10539_v30  ;;  %3051 = vmatprep.subr.bf16.mxu1 %v10541_v49  ;;  %v10594_v30 = vld [vmem:[#allocation6] ss:$16 sps:$4 sm:$0xff]  }
 0x44b   :  { %3011 = vmatpush1.bf16.msra.mxu0 %v10545_v7  ;;  %3052 = vmatpush1.bf16.msra.mxu1 %v10547_v39  ;;  %v10572_v7 = vld [vmem:[#allocation9 + $0xc8] ss:$16 sps:$4 sm:$0xff]   ;;  %v10576_v39 = vld [vmem:[#allocation9 + $0xe4] ss:$16 sps:$4 sm:$0xff]  }
 0x44c   :  { %3012 = vmatprep.subr.bf16.mxu0 %v10552_v29  ;;  %3053 = vmatprep.subr.bf16.mxu1 %v10554_v31  ;;  %11935 = vst [vmem:[#allocation65_spill] sm:$0xff] %v10572_v7  ;;  %11936 = vst [vmem:[#allocation15_spill] sm:$0xff] %v10576_v39  ;;  %v10578_v29 = vld [vmem:[#allocation9 + $0xec] ss:$16 sps:$4 sm:$0xff]   ;;  %v9382_v31 = vpop.eup %9381 }
 0x44d   :  { %v9384_v49 = vpop.eup %9383 }
 0x44f   :  { %3013 = vmatpush1.bf16.msra.mxu0 %v10558_v25  ;;  %3054 = vmatpush1.bf16.msra.mxu1 %v10560_v32  ;;  %v10582_v25 = vld [vmem:[#allocation9 + $0xe0] ss:$16 sps:$4 sm:$0xff]   ;;  %v10584_v32 = vld [vmem:[#allocation9 + $0xe8] ss:$16 sps:$4 sm:$0xff]  }
 0x450   :  { %3014 = vmatprep.subr.bf16.mxu0 %v10564_v33  ;;  %3055 = vmatprep.subr.bf16.mxu1 %v10566_v10  ;;  %v10588_v33 = vmul.f32 %v9384_v49, %v9382_v31  ;;  %v10590_v10 = vld [vmem:[#allocation6 + $0x4] ss:$16 sps:$4 sm:$0xff]   ;;  %v10604_v49 = vld [vmem:[#allocation6 + $0x20] ss:$16 sps:$4 sm:$0xff]  }
 0x451   :  { %v10608_v31 = vld [vmem:[#allocation6 + $0x44] ss:$16 sps:$4 sm:$0xff]  }
 0x452   :  { %11937 = vst [vmem:[#allocation27_spill] sm:$0xff] %v10588_v33 }
 0x453   :  { %3015 = vmatpush1.bf16.msra.mxu0 %v10570_v23  ;;  %3056 = vmatpush1.bf16.msra.mxu1 %v10572_v7  ;;  %v2534_v7 = vpack.c.bf16 %v10588_v33, %v10588_v33 }
 0x454   :  { %3016 = vmatprep.subr.bf16.mxu0 %v10576_v39  ;;  %3057 = vmatprep.subr.bf16.mxu1 %v10578_v29  ;;  %v10600_v39 = vld [vmem:[#allocation6 + $0x24] ss:$16 sps:$4 sm:$0xff]  }
 0x457   :  { %3017 = vmatpush1.bf16.msra.mxu0 %v10582_v25  ;;  %3058 = vmatpush1.bf16.msra.mxu1 %v10584_v32 }
 0x458   :  { %3313 = vmatprep.subr.bf16.mxu0 %v10590_v10  ;;  %3354 = vmatprep.subr.bf16.mxu1 %v10302_v9  ;;  %v10614_v9 = vld [vmem:[#allocation6 + $0x40] ss:$16 sps:$4 sm:$0xff]  }
 0x45a   :  { %3035 = vmatmul.mubr.bf16.vlgmr.msra.gmra.mrb[32].mxu0 %v2534_v7  ;;  %3076 = vmatmul.mubr.bf16.vlgmr.msra.gmra.mrb[64].mxu1 %v2534_v7  ;;  %v10626_v7 = vld [vmem:[#allocation6 + $0x84] ss:$16 sps:$4 sm:$0xff]  }
 0x45b   :  { %3314 = vmatpush1.bf16.msra.mxu0 %v10594_v30  ;;  %3355 = vmatpush1.bf16.msra.mxu1 %v10306_v14  ;;  %v10618_v14 = vld [vmem:[#allocation6 + $0x64] ss:$16 sps:$4 sm:$0xff]  }
 0x45c   :  { %3315 = vmatprep.subr.bf16.mxu0 %v10600_v39  ;;  %3356 = vmatprep.subr.bf16.mxu1 %v10312_v17  ;;  %v10622_v17 = vld [vmem:[#allocation6 + $0x60] ss:$16 sps:$4 sm:$0xff]  }
 0x45d   :  { %3345 = vmatprep.mubr.bf16.mxu0 %v11850_v63  ;;  %3386 = vmatprep.mubr.bf16.mxu1 %v11850_v63 }
 0x45f   :  { %3316 = vmatpush1.bf16.msra.mxu0 %v10604_v49  ;;  %3357 = vmatpush1.bf16.msra.mxu1 %v10316_v19  ;;  %v10630_v19 = vld [vmem:[#allocation6 + $0x80] ss:$16 sps:$4 sm:$0xff]  }
 0x460   :  { %3317 = vmatprep.subr.bf16.mxu0 %v10608_v31  ;;  %3358 = vmatprep.subr.bf16.mxu1 %v10320_v21  ;;  %v10634_v21 = vld [vmem:[#allocation6 + $0xa4] ss:$16 sps:$4 sm:$0xff]  }
 0x463   :  { %3318 = vmatpush1.bf16.msra.mxu0 %v10614_v9  ;;  %3359 = vmatpush1.bf16.msra.mxu1 %v10326_v24  ;;  %v10638_v24 = vld [vmem:[#allocation6 + $0xa0] ss:$16 sps:$4 sm:$0xff]  }
 0x464   :  { %3319 = vmatprep.subr.bf16.mxu0 %v10618_v14  ;;  %3360 = vmatprep.subr.bf16.mxu1 %v10330_v26  ;;  %v10642_v26 = vld [vmem:[#allocation6 + $0xc4] ss:$16 sps:$4 sm:$0xff]  }
 0x467   :  { %3320 = vmatpush1.bf16.msra.mxu0 %v10622_v17  ;;  %3361 = vmatpush1.bf16.msra.mxu1 %v10334_v3  ;;  %v10646_v3 = vld [vmem:[#allocation6 + $0xc0] ss:$16 sps:$4 sm:$0xff]  }
 0x468   :  { %3321 = vmatprep.subr.bf16.mxu0 %v10626_v7  ;;  %3362 = vmatprep.subr.bf16.mxu1 %v10338_v58  ;;  %v10650_v58 = vld [vmem:[#allocation6 + $0xe4] ss:$16 sps:$4 sm:$0xff]  }
 0x46b   :  { %3322 = vmatpush1.bf16.msra.mxu0 %v10630_v19  ;;  %3363 = vmatpush1.bf16.msra.mxu1 %v10342_v5  ;;  %v10654_v5 = vld [vmem:[#allocation6 + $0xe0] ss:$16 sps:$4 sm:$0xff]  }
 0x46c   :  { %3323 = vmatprep.subr.bf16.mxu0 %v10634_v21  ;;  %3364 = vmatprep.subr.bf16.mxu1 %v10346_v61  ;;  %v11938_v61 = vld [vmem:[#allocation40_spill] sm:$0xff] }
 0x46f   :  { %3324 = vmatpush1.bf16.msra.mxu0 %v10638_v24  ;;  %3365 = vmatpush1.bf16.msra.mxu1 %v10350_v34  ;;  %v11939_v34 = vld [vmem:[#allocation41_spill] sm:$0xff] }
 0x470   :  { %3325 = vmatprep.subr.bf16.mxu0 %v10642_v26  ;;  %3366 = vmatprep.subr.bf16.mxu1 %v10354_v36  ;;  %v11940_v36 = vld [vmem:[#allocation42_spill] sm:$0xff] }
 0x473   :  { %3326 = vmatpush1.bf16.msra.mxu0 %v10646_v3  ;;  %3367 = vmatpush1.bf16.msra.mxu1 %v10358_v40  ;;  %v11941_v40 = vld [vmem:[#allocation43_spill] sm:$0xff] }
 0x474   :  { %3327 = vmatprep.subr.bf16.mxu0 %v10650_v58  ;;  %3368 = vmatprep.subr.bf16.mxu1 %v10362_v41  ;;  %v11942_v41 = vld [vmem:[#allocation44_spill] sm:$0xff] }
 0x477   :  { %3328 = vmatpush1.bf16.msra.mxu0 %v10654_v5  ;;  %3369 = vmatpush1.bf16.msra.mxu1 %v10366_v42  ;;  %v11943_v42 = vld [vmem:[#allocation45_spill] sm:$0xff] }
 0x478   :  { %3649 = vmatprep.subr.bf16.mxu0 %v10376_v57  ;;  %3690 = vmatprep.subr.bf16.mxu1 %v10378_v56  ;;  %v11944_v57 = vld [vmem:[#allocation46_spill] sm:$0xff]  ;;  %v11945_v56 = vld [vmem:[#allocation47_spill] sm:$0xff] }
 0x47a   :  { %3346 = vmatmul.mubr.bf16.vlgmr.msra.gmra.mrb[36].mxu0 %v10497_v15  ;;  %3387 = vmatmul.mubr.bf16.vlgmr.msra.gmra.mrb[68].mxu1 %v10497_v15 }
 0x47b   :  { %3650 = vmatpush1.bf16.msra.mxu0 %v10380_v47  ;;  %3691 = vmatpush1.bf16.msra.mxu1 %v10382_v4  ;;  %v11946_v47 = vld [vmem:[#allocation48_spill] sm:$0xff]  ;;  %v11947_v4 = vld [vmem:[#allocation49_spill] sm:$0xff] }
 0x47c   :  { %3651 = vmatprep.subr.bf16.mxu0 %v10388_v2  ;;  %3692 = vmatprep.subr.bf16.mxu1 %v10390_v43  ;;  %v11948_v2 = vld [vmem:[#allocation50_spill] sm:$0xff]  ;;  %v11949_v43 = vld [vmem:[#allocation51_spill] sm:$0xff] }
 0x47d   :  { %3681 = vmatprep.mubr.bf16.mxu0 %v11850_v63  ;;  %3722 = vmatprep.mubr.bf16.mxu1 %v11850_v63 }
 0x47f   :  { %3652 = vmatpush1.bf16.msra.mxu0 %v10392_v44  ;;  %3693 = vmatpush1.bf16.msra.mxu1 %v10394_v45  ;;  %v11950_v44 = vld [vmem:[#allocation52_spill] sm:$0xff]  ;;  %v11951_v45 = vld [vmem:[#allocation53_spill] sm:$0xff] }
 0x480   :  { %3653 = vmatprep.subr.bf16.mxu0 %v10400_v13  ;;  %3694 = vmatprep.subr.bf16.mxu1 %v10402_v6  ;;  %v11952_v13 = vld [vmem:[#allocation54_spill] sm:$0xff] }
 0x483   :  { %3654 = vmatpush1.bf16.msra.mxu0 %v10404_v55  ;;  %3695 = vmatpush1.bf16.msra.mxu1 %v10406_v59 }
 0x484   :  { %3655 = vmatprep.subr.bf16.mxu0 %v10412_v62  ;;  %3696 = vmatprep.subr.bf16.mxu1 %v10414_v11 }
 0x487   :  { %3656 = vmatpush1.bf16.msra.mxu0 %v10416_v51  ;;  %3697 = vmatpush1.bf16.msra.mxu1 %v10418_v8 }
 0x488   :  { %3657 = vmatprep.subr.bf16.mxu0 %v10424_v50  ;;  %3698 = vmatprep.subr.bf16.mxu1 %v10426_v52 }
 0x48b   :  { %3658 = vmatpush1.bf16.msra.mxu0 %v10428_v60  ;;  %3699 = vmatpush1.bf16.msra.mxu1 %v11938_v61  ;;  %v10698_v60 = vld [vmem:[#allocation11] sm:$0xff] }
 0x48c   :  { %3659 = vmatprep.subr.bf16.mxu0 %v11939_v34  ;;  %3700 = vmatprep.subr.bf16.mxu1 %v11940_v36 }
 0x48f   :  { %3660 = vmatpush1.bf16.msra.mxu0 %v11941_v40  ;;  %3701 = vmatpush1.bf16.msra.mxu1 %v11942_v41  ;;  %v10700_v40 = vld [vmem:[#allocation11 + $0x8] sm:$0xff] }
 0x490   :  { %3661 = vmatprep.subr.bf16.mxu0 %v11943_v42  ;;  %3702 = vmatprep.subr.bf16.mxu1 %v11944_v57 }
 0x493   :  { %3662 = vmatpush1.bf16.msra.mxu0 %v11945_v56  ;;  %3703 = vmatpush1.bf16.msra.mxu1 %v11946_v47 }
 0x494   :  { %3663 = vmatprep.subr.bf16.mxu0 %v11947_v4  ;;  %3704 = vmatprep.subr.bf16.mxu1 %v11948_v2 }
 0x497   :  { %3664 = vmatpush1.bf16.msra.mxu0 %v11949_v43  ;;  %3705 = vmatpush1.bf16.msra.mxu1 %v11950_v44 }
 0x498   :  { %3891 = vmatprep.subr.bf16.mxu0 %v11951_v45  ;;  %3932 = vmatprep.subr.bf16.mxu1 %v11952_v13 }
 0x50d   :  { %v2794_v6 = vpop.f32.mrb[28].mxu0  ;;  %v2835_v55 = vpop.f32.mrb[60].mxu1 }
 0x50e   :  { %v2796_v59 = vpop.f32.mrb[29].mxu0  ;;  %v2837_v62 = vpop.f32.mrb[61].mxu1 }
 0x50f   :  { %v2798_v11 = vpop.f32.mrb[30].mxu0  ;;  %v2839_v51 = vpop.f32.mrb[62].mxu1 }
 0x510   :  { %v2799_v8 = vpop.f32.mrb[31].mxu0  ;;  %v2840_v50 = vpop.f32.mrb[63].mxu1 }
 0x52d   :  { %v3036_v52 = vpop.f32.mrb[32].mxu0  ;;  %v3077_v15 = vpop.f32.mrb[64].mxu1 }
 0x52e   :  { %v3037_v61 = vadd.f32 %v3036_v52, %v2794_v6  ;;  %v3078_v34 = vadd.f32 %v3077_v15, %v2835_v55  ;;  %v3038_v36 = vpop.f32.mrb[33].mxu0  ;;  %v3079_v41 = vpop.f32.mrb[65].mxu1  ;;  %v10704_v6 = vld [vmem:[#allocation11 + $0x10] sm:$0xff] }
 0x52f   :  { %v3039_v42 = vadd.f32 %v3038_v36, %v2796_v59  ;;  %v3080_v57 = vadd.f32 %v3079_v41, %v2837_v62  ;;  %v3040_v56 = vpop.f32.mrb[34].mxu0  ;;  %v3081_v47 = vpop.f32.mrb[66].mxu1 }
 0x530   :  { %v3088_v4 = vadd.f32 %v10698_v60, %v3037_v61  ;;  %v3041_v2 = vpop.f32.mrb[35].mxu0  ;;  %v3082_v43 = vpop.f32.mrb[67].mxu1  ;;  %v3090_v55 = vadd.f32 %v10704_v6, %v3078_v34  ;;  %v11954_v47 = vld [vmem:[#allocation29_spill] sm:$0xff] }
 0x531   :  { %v3089_v44 = vadd.f32 %v10700_v40, %v3039_v42  ;;  %v11953_v42 = vld [vmem:[#allocation17_spill] sm:$0xff] }
 0x532   :  { %v8016_v45 = vmul.f32 -1.442695, %v3088_v4 }
 0x533   :  { %v8017_v13 = vmul.f32 -1.442695, %v3089_v44  ;;  %v11955_v44 = vld [vmem:[#allocation18_spill] sm:$0xff] }
 0x534   :  { %9385 = vpow2.f32 %v8016_v45 }
 0x535   :  { %9387 = vpow2.f32 %v8017_v13  ;;  %v11956_v13 = vld [vmem:[#allocation30_spill] sm:$0xff] }
 0x536   :  { %9389 = vtanh.f32 %v3090_v55 }
 0x53e   :  { %v9386_v11 = vpop.eup %9385 }
 0x53f   :  { %v9388_v51 = vpop.eup %9387  ;;  %v3095_v59 = vadd.f32 1.0, %v9386_v11 }
 0x540   :  { %v3101_v62 = vadd.f32 1.0, %v9388_v51  ;;  %v9390_v8 = vpop.eup %9389 }
 0x541   :  { %9391 = vrcp.f32 %v3095_v59 }
 0x542   :  { %9393 = vrcp.f32 %v3101_v62 }
 0x54b   :  { %v9392_v50 = vpop.eup %9391 }
 0x54c   :  { %v9394_v52 = vpop.eup %9393  ;;  %v3112_v15 = vmul.f32 %v9392_v50, %v9390_v8 }
 0x54d   :  { %v3111_v61 = vmul.f32 %v9394_v52, %v10484_v28  ;;  %v3347_v36 = vpop.f32.mrb[36].mxu0  ;;  %v3388_v41 = vpop.f32.mrb[68].mxu1 }
 0x54e   :  { %v3395_v56 = vadd.f32 %v3347_v36, %v11953_v42  ;;  %v3397_v4 = vadd.f32 %v3388_v41, %v11954_v47  ;;  %v3349_v34 = vpop.f32.mrb[37].mxu0  ;;  %v3390_v2 = vpop.f32.mrb[69].mxu1 }
 0x54f   :  { %v10710_v43 = vadd.f32 %v3112_v15, %v3111_v61  ;;  %v3396_v45 = vadd.f32 %v3349_v34, %v11955_v44  ;;  %v3398_v55 = vadd.f32 %v3390_v2, %v11956_v13  ;;  %v3351_v11 = vpop.f32.mrb[38].mxu0  ;;  %v3392_v51 = vpop.f32.mrb[70].mxu1  ;;  %v10718_v13 = vld [vmem:[#allocation11 + $0x18] sm:$0xff] }
 0x550   :  { %v8051_v59 = vmul.f32 -1.442695, %v3395_v56  ;;  %v3352_v62 = vpop.f32.mrb[39].mxu0  ;;  %v3393_v8 = vpop.f32.mrb[71].mxu1 }
 0x551   :  { %v8052_v28 = vmul.f32 -1.442695, %v3396_v45  ;;  %v8053_v50 = vmul.f32 -1.442695, %v3398_v55 }
 0x552   :  { %9395 = vpow2.f32 %v8051_v59 }
 0x553   :  { %9397 = vpow2.f32 %v8052_v28  ;;  %v10758_v28 = vld [vmem:[#allocation6 + $0xc] ss:$16 sps:$4 sm:$0xff]  }
 0x554   :  { %9399 = vpow2.f32 %v8053_v50  ;;  %v10762_v50 = vld [vmem:[#allocation6 + $0x8] ss:$16 sps:$4 sm:$0xff]  }
 0x555   :  { %9401 = vtanh.f32 %v3397_v4  ;;  %v3091_v4 = vadd.f32 %v10718_v13, %v3080_v57  ;;  %v11968_v57 = vld [vmem:[#allocation15_spill] sm:$0xff] }
 0x557   :  { %v8018_v11 = vmul.f32 -1.442695, %v3091_v4  ;;  %v10880_v4 = vld [vmem:[#allocation8 + $0x84] ss:$16 sps:$4 sm:$0xff]  }
 0x55c   :  { %v9396_v52 = vpop.eup %9395 }
 0x55d   :  { %v9398_v36 = vpop.eup %9397  ;;  %v3402_v41 = vadd.f32 1.0, %v9396_v52 }
 0x55e   :  { %v3408_v15 = vadd.f32 1.0, %v9398_v36  ;;  %v9400_v61 = vpop.eup %9399  ;;  %v10848_v36 = vld [vmem:[#allocation8 + $0x20] ss:$16 sps:$4 sm:$0xff]  }
 0x55f   :  { %9403 = vrcp.f32 %v3402_v41  ;;  %v9402_v42 = vpop.eup %9401  ;;  %v3415_v56 = vadd.f32 1.0, %v9400_v61  ;;  %v10850_v41 = vld [vmem:[#allocation8 + $0x28] ss:$16 sps:$4 sm:$0xff]   ;;  %v10858_v61 = vld [vmem:[#allocation8 + $0x4c] ss:$16 sps:$4 sm:$0xff]  }
 0x560   :  { %9405 = vrcp.f32 %v3408_v15  ;;  %v10856_v15 = vld [vmem:[#allocation8 + $0x44] ss:$16 sps:$4 sm:$0xff]  }
 0x561   :  { %9407 = vrcp.f32 %v3415_v56  ;;  %v10872_v56 = vld [vmem:[#allocation8 + $0x60] ss:$16 sps:$4 sm:$0xff]  }
 0x569   :  { %v9404_v47 = vpop.eup %9403 }
 0x56a   :  { %v9406_v34 = vpop.eup %9405  ;;  %v3419_v2 = vmul.f32 %v9404_v47, %v9402_v42  ;;  %v10860_v42 = vld [vmem:[#allocation8 + $0x40] ss:$16 sps:$4 sm:$0xff]   ;;  %v10862_v47 = vld [vmem:[#allocation8 + $0x48] ss:$16 sps:$4 sm:$0xff]  }
 0x56b   :  { %v3418_v44 = vmul.f32 %v9406_v34, %v10489_v12  ;;  %v9408_v55 = vpop.eup %9407  ;;  %v10868_v34 = vld [vmem:[#allocation8 + $0x64] ss:$16 sps:$4 sm:$0xff]  }
 0x56d   :  { %v10715_v45 = vadd.f32 %v3419_v2, %v3418_v44  ;;  %v10870_v2 = vld [vmem:[#allocation8 + $0x6c] ss:$16 sps:$4 sm:$0xff]   ;;  %v10874_v44 = vld [vmem:[#allocation8 + $0x68] ss:$16 sps:$4 sm:$0xff]  }
 0x56f   :  { %9409 = vtanh.f32 %v10715_v45 }
 0x570   :  { %9411 = vpow2.f32 %v8018_v11  ;;  %v10884_v11 = vld [vmem:[#allocation8 + $0x80] ss:$16 sps:$4 sm:$0xff]  }
 0x571   :  { %9413 = vtanh.f32 %v10710_v43 }
 0x579   :  { %v9410_v51 = vpop.eup %9409 }
 0x57a   :  { %v3422_v59 = vmul.f32 %v9410_v51, %v9408_v55  ;;  %v9412_v12 = vpop.eup %9411  ;;  %v10882_v55 = vld [vmem:[#allocation8 + $0x8c] ss:$16 sps:$4 sm:$0xff]   ;;  %v10886_v51 = vld [vmem:[#allocation8 + $0x88] ss:$16 sps:$4 sm:$0xff]  }
 0x57b   :  { %11970 = vst [vmem:[#allocation28_spill] sm:$0xff] %v10886_v51 }
 0x57c   :  { %v10721_v62 = vpack.c.bf16 %v3422_v59, %v3422_v59  ;;  %v10890_v59 = vld [vmem:[#allocation8 + $0xa4] ss:$16 sps:$4 sm:$0xff]  }
 0x57d   :  { %11971 = vst [vmem:[#allocation40_spill] sm:$0xff] %v10890_v59 }
 0x57e   :  { %3682 = vmatmul.mubr.bf16.vlgmr.msra.gmra.mrb[40].mxu0 %v10721_v62  ;;  %3723 = vmatmul.mubr.bf16.vlgmr.msra.gmra.mrb[72].mxu1 %v10721_v62 }
 0x57f   :  { %3892 = vmatpush1.bf16.msra.mxu0 %v10493_v35  ;;  %3933 = vmatpush1.bf16.msra.mxu1 %v10495_v54  ;;  %v3108_v35 = vadd.f32 1.0, %v9412_v12  ;;  %v11957_v54 = vld [vmem:[#allocation55_spill] sm:$0xff] }
 0x580   :  { %3893 = vmatprep.subr.bf16.mxu0 %v10499_v1  ;;  %3934 = vmatprep.subr.bf16.mxu1 %v10501_v37  ;;  %v11958_v1 = vld [vmem:[#allocation56_spill] sm:$0xff]  ;;  %v11959_v37 = vld [vmem:[#allocation57_spill] sm:$0xff] }
 0x581   :  { %3923 = vmatprep.mubr.bf16.mxu0 %v11850_v63  ;;  %3964 = vmatprep.mubr.bf16.mxu1 %v11850_v63  ;;  %9415 = vrcp.f32 %v3108_v35  ;;  %v10896_v12 = vld [vmem:[#allocation8 + $0xa0] ss:$16 sps:$4 sm:$0xff]   ;;  %v10898_v35 = vld [vmem:[#allocation8 + $0xa8] ss:$16 sps:$4 sm:$0xff]  }
 0x582   :  { %11973 = vst [vmem:[#allocation42_spill] sm:$0xff] %v10896_v12  ;;  %11974 = vst [vmem:[#allocation43_spill] sm:$0xff] %v10898_v35 }
 0x583   :  { %3894 = vmatpush1.bf16.msra.mxu0 %v10507_v38  ;;  %3935 = vmatpush1.bf16.msra.mxu1 %v10509_v20  ;;  %v11960_v38 = vld [vmem:[#allocation58_spill] sm:$0xff]  ;;  %v11961_v20 = vld [vmem:[#allocation59_spill] sm:$0xff] }
 0x584   :  { %3895 = vmatprep.subr.bf16.mxu0 %v10513_v16  ;;  %3936 = vmatprep.subr.bf16.mxu1 %v10515_v0  ;;  %v11962_v16 = vld [vmem:[#allocation60_spill] sm:$0xff]  ;;  %v11963_v0 = vld [vmem:[#allocation61_spill] sm:$0xff] }
 0x587   :  { %3896 = vmatpush1.bf16.msra.mxu0 %v10521_v46  ;;  %3937 = vmatpush1.bf16.msra.mxu1 %v10523_v53  ;;  %v11964_v46 = vld [vmem:[#allocation62_spill] sm:$0xff]  ;;  %v11965_v53 = vld [vmem:[#allocation63_spill] sm:$0xff] }
 0x588   :  { %3897 = vmatprep.subr.bf16.mxu0 %v10527_v18  ;;  %3938 = vmatprep.subr.bf16.mxu1 %v10529_v22  ;;  %v11966_v18 = vld [vmem:[#allocation64_spill] sm:$0xff]  ;;  %v9414_v22 = vpop.eup %9413 }
 0x58b   :  { %3898 = vmatpush1.bf16.msra.mxu0 %v10533_v48  ;;  %3939 = vmatpush1.bf16.msra.mxu1 %v10535_v27  ;;  %v9416_v48 = vpop.eup %9415  ;;  %v11967_v27 = vld [vmem:[#allocation65_spill] sm:$0xff] }
 0x58c   :  { %3899 = vmatprep.subr.bf16.mxu0 %v11957_v54  ;;  %3940 = vmatprep.subr.bf16.mxu1 %v11958_v1  ;;  %v10756_v8 = vmul.f32 %v9416_v48, %v9414_v22  ;;  %v10902_v54 = vld [vmem:[#allocation8 + $0xc4] ss:$16 sps:$4 sm:$0xff]   ;;  %v10904_v1 = vld [vmem:[#allocation8 + $0xcc] ss:$16 sps:$4 sm:$0xff]  }
 0x58d   :  { %11975 = vst [vmem:[#allocation44_spill] sm:$0xff] %v10902_v54  ;;  %11976 = vst [vmem:[#allocation45_spill] sm:$0xff] %v10904_v1 }
 0x58e   :  { %11969 = vst [vmem:[#allocation16_spill] sm:$0xff] %v10756_v8  ;;  %v3423_v52 = vpack.c.bf16 %v10756_v8, %v10756_v8 }
 0x58f   :  { %3900 = vmatpush1.bf16.msra.mxu0 %v11959_v37  ;;  %3941 = vmatpush1.bf16.msra.mxu1 %v11960_v38  ;;  %v10908_v37 = vld [vmem:[#allocation8 + $0xc0] ss:$16 sps:$4 sm:$0xff]   ;;  %v10910_v38 = vld [vmem:[#allocation8 + $0xc8] ss:$16 sps:$4 sm:$0xff]  }
 0x590   :  { %3901 = vmatprep.subr.bf16.mxu0 %v11961_v20  ;;  %3942 = vmatprep.subr.bf16.mxu1 %v11962_v16  ;;  %11977 = vst [vmem:[#allocation46_spill] sm:$0xff] %v10908_v37  ;;  %11978 = vst [vmem:[#allocation47_spill] sm:$0xff] %v10910_v38  ;;  %v10914_v20 = vld [vmem:[#allocation8 + $0xe4] ss:$16 sps:$4 sm:$0xff]   ;;  %v10916_v16 = vld [vmem:[#allocation8 + $0xec] ss:$16 sps:$4 sm:$0xff]  }
 0x591   :  { %11979 = vst [vmem:[#allocation48_spill] sm:$0xff] %v10914_v20  ;;  %11980 = vst [vmem:[#allocation49_spill] sm:$0xff] %v10916_v16 }
 0x593   :  { %3902 = vmatpush1.bf16.msra.mxu0 %v11963_v0  ;;  %3943 = vmatpush1.bf16.msra.mxu1 %v11964_v46  ;;  %v10920_v0 = vld [vmem:[#allocation8 + $0xe0] ss:$16 sps:$4 sm:$0xff]   ;;  %v10922_v46 = vld [vmem:[#allocation8 + $0xe8] ss:$16 sps:$4 sm:$0xff]  }
 0x594   :  { %3903 = vmatprep.subr.bf16.mxu0 %v11965_v53  ;;  %3944 = vmatprep.subr.bf16.mxu1 %v11966_v18  ;;  %11981 = vst [vmem:[#allocation50_spill] sm:$0xff] %v10920_v0  ;;  %11982 = vst [vmem:[#allocation51_spill] sm:$0xff] %v10922_v46  ;;  %v10926_v53 = vld [vmem:[#allocation9 + $0x4] ss:$16 sps:$4 sm:$0xff]   ;;  %v10928_v18 = vld [vmem:[#allocation9 + $0xc] ss:$16 sps:$4 sm:$0xff]  }
 0x595   :  { %11983 = vst [vmem:[#allocation52_spill] sm:$0xff] %v10926_v53  ;;  %11984 = vst [vmem:[#allocation53_spill] sm:$0xff] %v10928_v18 }
 0x597   :  { %3904 = vmatpush1.bf16.msra.mxu0 %v10570_v23  ;;  %3945 = vmatpush1.bf16.msra.mxu1 %v11967_v27  ;;  %v10768_v23 = vld [vmem:[#allocation6 + $0x2c] ss:$16 sps:$4 sm:$0xff]  }
 0x598   :  { %3905 = vmatprep.subr.bf16.mxu0 %v11968_v57  ;;  %3946 = vmatprep.subr.bf16.mxu1 %v10578_v29  ;;  %v10772_v29 = vld [vmem:[#allocation6 + $0x28] ss:$16 sps:$4 sm:$0xff]  }
 0x59b   :  { %3906 = vmatpush1.bf16.msra.mxu0 %v10582_v25  ;;  %3947 = vmatpush1.bf16.msra.mxu1 %v10584_v32  ;;  %v10776_v25 = vld [vmem:[#allocation6 + $0x4c] ss:$16 sps:$4 sm:$0xff]   ;;  %v10782_v32 = vld [vmem:[#allocation6 + $0x48] ss:$16 sps:$4 sm:$0xff]  }
 0x59c   :  { %4202 = vmatprep.subr.bf16.mxu0 %v10590_v10  ;;  %4243 = vmatprep.subr.bf16.mxu1 %v10758_v28  ;;  %v10794_v10 = vld [vmem:[#allocation6 + $0x8c] ss:$16 sps:$4 sm:$0xff]  }
 0x59e   :  { %3924 = vmatmul.mubr.bf16.vlgmr.msra.gmra.mrb[44].mxu0 %v3423_v52  ;;  %3965 = vmatmul.mubr.bf16.vlgmr.msra.gmra.mrb[76].mxu1 %v3423_v52 }
 0x59f   :  { %4203 = vmatpush1.bf16.msra.mxu0 %v10594_v30  ;;  %4244 = vmatpush1.bf16.msra.mxu1 %v10762_v50  ;;  %v10786_v30 = vld [vmem:[#allocation6 + $0x6c] ss:$16 sps:$4 sm:$0xff]  }
 0x5a0   :  { %4204 = vmatprep.subr.bf16.mxu0 %v10600_v39  ;;  %4245 = vmatprep.subr.bf16.mxu1 %v10768_v23  ;;  %v10790_v39 = vld [vmem:[#allocation6 + $0x68] ss:$16 sps:$4 sm:$0xff]  }
 0x5a1   :  { %4234 = vmatprep.mubr.bf16.mxu0 %v11850_v63  ;;  %4275 = vmatprep.mubr.bf16.mxu1 %v11850_v63 }
 0x5a3   :  { %4205 = vmatpush1.bf16.msra.mxu0 %v10604_v49  ;;  %4246 = vmatpush1.bf16.msra.mxu1 %v10772_v29  ;;  %v10798_v49 = vld [vmem:[#allocation6 + $0x88] ss:$16 sps:$4 sm:$0xff]  }
 0x5a4   :  { %4206 = vmatprep.subr.bf16.mxu0 %v10608_v31  ;;  %4247 = vmatprep.subr.bf16.mxu1 %v10776_v25  ;;  %v10802_v31 = vld [vmem:[#allocation6 + $0xac] ss:$16 sps:$4 sm:$0xff]  }
 0x5a7   :  { %4207 = vmatpush1.bf16.msra.mxu0 %v10614_v9  ;;  %4248 = vmatpush1.bf16.msra.mxu1 %v10782_v32  ;;  %v10806_v9 = vld [vmem:[#allocation6 + $0xa8] ss:$16 sps:$4 sm:$0xff]  }
 0x5a8   :  { %4208 = vmatprep.subr.bf16.mxu0 %v10618_v14  ;;  %4249 = vmatprep.subr.bf16.mxu1 %v10786_v30  ;;  %v10810_v14 = vld [vmem:[#allocation6 + $0xcc] ss:$16 sps:$4 sm:$0xff]  }
 0x5ab   :  { %4209 = vmatpush1.bf16.msra.mxu0 %v10622_v17  ;;  %4250 = vmatpush1.bf16.msra.mxu1 %v10790_v39  ;;  %v10814_v17 = vld [vmem:[#allocation6 + $0xc8] ss:$16 sps:$4 sm:$0xff]  }
 0x5ac   :  { %4210 = vmatprep.subr.bf16.mxu0 %v10626_v7  ;;  %4251 = vmatprep.subr.bf16.mxu1 %v10794_v10  ;;  %v10818_v7 = vld [vmem:[#allocation6 + $0xec] ss:$16 sps:$4 sm:$0xff]  }
 0x5af   :  { %4211 = vmatpush1.bf16.msra.mxu0 %v10630_v19  ;;  %4252 = vmatpush1.bf16.msra.mxu1 %v10798_v49  ;;  %v10822_v19 = vld [vmem:[#allocation6 + $0xe8] ss:$16 sps:$4 sm:$0xff]  }
 0x5b0   :  { %4212 = vmatprep.subr.bf16.mxu0 %v10634_v21  ;;  %4253 = vmatprep.subr.bf16.mxu1 %v10802_v31  ;;  %v10832_v21 = vld [vmem:[#allocation8 + $0x4] ss:$16 sps:$4 sm:$0xff]  }
 0x5b3   :  { %4213 = vmatpush1.bf16.msra.mxu0 %v10638_v24  ;;  %4254 = vmatpush1.bf16.msra.mxu1 %v10806_v9  ;;  %v10834_v24 = vld [vmem:[#allocation8 + $0xc] ss:$16 sps:$4 sm:$0xff]  }
 0x5b4   :  { %4214 = vmatprep.subr.bf16.mxu0 %v10642_v26  ;;  %4255 = vmatprep.subr.bf16.mxu1 %v10810_v14  ;;  %v10836_v26 = vld [vmem:[#allocation8] ss:$16 sps:$4 sm:$0xff]  }
 0x5b7   :  { %4215 = vmatpush1.bf16.msra.mxu0 %v10646_v3  ;;  %4256 = vmatpush1.bf16.msra.mxu1 %v10814_v17  ;;  %v10838_v3 = vld [vmem:[#allocation8 + $0x8] ss:$16 sps:$4 sm:$0xff]  }
 0x5b8   :  { %4216 = vmatprep.subr.bf16.mxu0 %v10650_v58  ;;  %4257 = vmatprep.subr.bf16.mxu1 %v10818_v7  ;;  %v10844_v58 = vld [vmem:[#allocation8 + $0x24] ss:$16 sps:$4 sm:$0xff]  }
 0x5bb   :  { %4217 = vmatpush1.bf16.msra.mxu0 %v10654_v5  ;;  %4258 = vmatpush1.bf16.msra.mxu1 %v10822_v19  ;;  %v10846_v5 = vld [vmem:[#allocation8 + $0x2c] ss:$16 sps:$4 sm:$0xff]  }
 0x5bc   :  { %4538 = vmatprep.subr.bf16.mxu0 %v10832_v21  ;;  %4579 = vmatprep.subr.bf16.mxu1 %v10834_v24 }
 0x5be   :  { %4235 = vmatmul.mubr.bf16.vlgmr.msra.gmra.mrb[48].mxu0 %v10721_v62  ;;  %4276 = vmatmul.mubr.bf16.vlgmr.msra.gmra.mrb[80].mxu1 %v10721_v62  ;;  %v10892_v62 = vld [vmem:[#allocation8 + $0xac] ss:$16 sps:$4 sm:$0xff]  }
 0x5bf   :  { %4570 = vmatprep.mubr.bf16.mxu0 %v11850_v63  ;;  %4611 = vmatprep.mubr.bf16.mxu1 %v11850_v63  ;;  %11972 = vst [vmem:[#allocation41_spill] sm:$0xff] %v10892_v62 }
 0x5c0   :  { %4539 = vmatpush1.bf16.msra.mxu0 %v10836_v26  ;;  %4580 = vmatpush1.bf16.msra.mxu1 %v10838_v3 }
 0x5c1   :  { %4540 = vmatprep.subr.bf16.mxu0 %v10844_v58  ;;  %4581 = vmatprep.subr.bf16.mxu1 %v10846_v5 }
 0x5c4   :  { %4541 = vmatpush1.bf16.msra.mxu0 %v10848_v36  ;;  %4582 = vmatpush1.bf16.msra.mxu1 %v10850_v41 }
 0x5c5   :  { %4542 = vmatprep.subr.bf16.mxu0 %v10856_v15  ;;  %4583 = vmatprep.subr.bf16.mxu1 %v10858_v61 }
 0x5c8   :  { %4543 = vmatpush1.bf16.msra.mxu0 %v10860_v42  ;;  %4584 = vmatpush1.bf16.msra.mxu1 %v10862_v47 }
 0x5c9   :  { %4544 = vmatprep.subr.bf16.mxu0 %v10868_v34  ;;  %4585 = vmatprep.subr.bf16.mxu1 %v10870_v2 }
 0x5cc   :  { %4545 = vmatpush1.bf16.msra.mxu0 %v10872_v56  ;;  %4586 = vmatpush1.bf16.msra.mxu1 %v10874_v44 }
 0x5cd   :  { %4546 = vmatprep.subr.bf16.mxu0 %v10880_v4  ;;  %4587 = vmatprep.subr.bf16.mxu1 %v10882_v55 }
 0x5d0   :  { %4547 = vmatpush1.bf16.msra.mxu0 %v10884_v11  ;;  %4588 = vmatpush1.bf16.msra.mxu1 %v10886_v51 }
 0x5d1   :  { %4548 = vmatprep.subr.bf16.mxu0 %v10890_v59  ;;  %4589 = vmatprep.subr.bf16.mxu1 %v10892_v62 }
 0x5d4   :  { %4549 = vmatpush1.bf16.msra.mxu0 %v10896_v12  ;;  %4590 = vmatpush1.bf16.msra.mxu1 %v10898_v35 }
 0x5d5   :  { %4550 = vmatprep.subr.bf16.mxu0 %v10902_v54  ;;  %4591 = vmatprep.subr.bf16.mxu1 %v10904_v1 }
 0x5d8   :  { %4551 = vmatpush1.bf16.msra.mxu0 %v10908_v37  ;;  %4592 = vmatpush1.bf16.msra.mxu1 %v10910_v38 }
 0x5d9   :  { %4552 = vmatprep.subr.bf16.mxu0 %v10914_v20  ;;  %4593 = vmatprep.subr.bf16.mxu1 %v10916_v16 }
 0x5dc   :  { %4553 = vmatpush1.bf16.msra.mxu0 %v10920_v0  ;;  %4594 = vmatpush1.bf16.msra.mxu1 %v10922_v46 }
 0x5dd   :  { %4780 = vmatprep.subr.bf16.mxu0 %v10926_v53  ;;  %4821 = vmatprep.subr.bf16.mxu1 %v10928_v18 }
 0x651   :  { %v3683_v22 = vpop.f32.mrb[40].mxu0  ;;  %v3724_v48 = vpop.f32.mrb[72].mxu1 }
 0x652   :  { %v3685_v27 = vpop.f32.mrb[41].mxu0  ;;  %v3726_v57 = vpop.f32.mrb[73].mxu1 }
 0x653   :  { %v3687_v52 = vpop.f32.mrb[42].mxu0  ;;  %v3728_v8 = vpop.f32.mrb[74].mxu1 }
 0x654   :  { %v3688_v33 = vpop.f32.mrb[43].mxu0  ;;  %v3729_v16 = vpop.f32.mrb[75].mxu1 }
 0x671   :  { %v3925_v20 = vpop.f32.mrb[44].mxu0  ;;  %v3966_v38 = vpop.f32.mrb[76].mxu1 }
 0x672   :  { %v3926_v37 = vadd.f32 %v3925_v20, %v3683_v22  ;;  %v3967_v1 = vadd.f32 %v3966_v38, %v3724_v48  ;;  %v3927_v54 = vpop.f32.mrb[45].mxu0  ;;  %v3968_v0 = vpop.f32.mrb[77].mxu1  ;;  %v11987_v48 = vld [vmem:[#allocation20_spill] sm:$0xff] }
 0x673   :  { %v3928_v35 = vadd.f32 %v3927_v54, %v3685_v27  ;;  %v3969_v46 = vadd.f32 %v3968_v0, %v3726_v57  ;;  %v3929_v12 = vpop.f32.mrb[46].mxu0  ;;  %v3970_v53 = vpop.f32.mrb[78].mxu1  ;;  %v11988_v57 = vld [vmem:[#allocation32_spill] sm:$0xff] }
 0x674   :  { %v3977_v18 = vadd.f32 %v3926_v37, %v10698_v60  ;;  %v3930_v62 = vpop.f32.mrb[47].mxu0  ;;  %v3971_v59 = vpop.f32.mrb[79].mxu1  ;;  %v3979_v33 = vadd.f32 %v3967_v1, %v10704_v6  ;;  %v11986_v53 = vld [vmem:[#allocation31_spill] sm:$0xff] }
 0x675   :  { %v3978_v51 = vadd.f32 %v3928_v35, %v10700_v40 }
 0x676   :  { %v8118_v52 = vmul.f32 -1.442695, %v3977_v18 }
 0x677   :  { %v8119_v8 = vmul.f32 -1.442695, %v3978_v51  ;;  %v11985_v51 = vld [vmem:[#allocation19_spill] sm:$0xff] }
 0x678   :  { %9417 = vpow2.f32 %v8118_v52 }
 0x679   :  { %9419 = vpow2.f32 %v8119_v8 }
 0x67a   :  { %9421 = vtanh.f32 %v3979_v33 }
 0x682   :  { %v9418_v20 = vpop.eup %9417 }
 0x683   :  { %v9420_v38 = vpop.eup %9419  ;;  %v3984_v16 = vadd.f32 1.0, %v9418_v20 }
 0x684   :  { %v3990_v54 = vadd.f32 1.0, %v9420_v38  ;;  %v9422_v12 = vpop.eup %9421 }
 0x685   :  { %9423 = vrcp.f32 %v3984_v16 }
 0x686   :  { %9425 = vrcp.f32 %v3990_v54 }
 0x68f   :  { %v9424_v0 = vpop.eup %9423 }
 0x690   :  { %v9426_v60 = vpop.eup %9425  ;;  %v4001_v62 = vmul.f32 %v9424_v0, %v9422_v12 }
 0x691   :  { %v4000_v59 = vmul.f32 %v9426_v60, %v10710_v43  ;;  %v4236_v40 = vpop.f32.mrb[48].mxu0  ;;  %v4277_v35 = vpop.f32.mrb[80].mxu1 }
 0x692   :  { %v4284_v37 = vadd.f32 %v4236_v40, %v11985_v51  ;;  %v4286_v18 = vadd.f32 %v4277_v35, %v11986_v53  ;;  %v4238_v6 = vpop.f32.mrb[49].mxu0  ;;  %v4279_v1 = vpop.f32.mrb[81].mxu1 }
 0x693   :  { %v10940_v22 = vadd.f32 %v4001_v62, %v4000_v59  ;;  %v4285_v27 = vadd.f32 %v4238_v6, %v11987_v48  ;;  %v4287_v52 = vadd.f32 %v4279_v1, %v11988_v57  ;;  %v4240_v8 = vpop.f32.mrb[50].mxu0  ;;  %v4281_v33 = vpop.f32.mrb[82].mxu1  ;;  %v3980_v48 = vadd.f32 %v3969_v46, %v10718_v13  ;;  %v10963_v13 = vld [vmem:[#allocation9 + $0x20] ss:$16 sps:$4 sm:$0xff]   ;;  %v10965_v46 = vld [vmem:[#allocation9 + $0x28] ss:$16 sps:$4 sm:$0xff]  }
 0x694   :  { %v8153_v20 = vmul.f32 -1.442695, %v4284_v37  ;;  %v4241_v38 = vpop.f32.mrb[51].mxu0  ;;  %v4282_v16 = vpop.f32.mrb[83].mxu1  ;;  %v10949_v8 = vld [vmem:[#allocation9] ss:$16 sps:$4 sm:$0xff]  }
 0x695   :  { %v8154_v43 = vmul.f32 -1.442695, %v4285_v27  ;;  %v8155_v54 = vmul.f32 -1.442695, %v4287_v52  ;;  %v10951_v33 = vld [vmem:[#allocation9 + $0x8] ss:$16 sps:$4 sm:$0xff]  }
 0x696   :  { %9427 = vpow2.f32 %v8153_v20  ;;  %v10955_v38 = vld [vmem:[#allocation9 + $0x24] ss:$16 sps:$4 sm:$0xff]  }
 0x697   :  { %9429 = vpow2.f32 %v8154_v43  ;;  %v10969_v16 = vld [vmem:[#allocation9 + $0x44] ss:$16 sps:$4 sm:$0xff]   ;;  %v10971_v43 = vld [vmem:[#allocation9 + $0x4c] ss:$16 sps:$4 sm:$0xff]  }
 0x698   :  { %9431 = vpow2.f32 %v8155_v54  ;;  %v10977_v54 = vld [vmem:[#allocation9 + $0x40] ss:$16 sps:$4 sm:$0xff]  }
 0x699   :  { %9433 = vtanh.f32 %v4286_v18  ;;  %v8120_v18 = vmul.f32 -1.442695, %v3980_v48  ;;  %v11008_v48 = vld [vmem:[#allocation9 + $0xa4] ss:$16 sps:$4 sm:$0xff]  }
 0x69a   :  { %11993 = vst [vmem:[#allocation30_spill] sm:$0xff] %v11008_v48 }
 0x6a0   :  { %v9428_v12 = vpop.eup %9427 }
 0x6a1   :  { %v9430_v0 = vpop.eup %9429  ;;  %v4291_v60 = vadd.f32 1.0, %v9428_v12  ;;  %v10979_v12 = vld [vmem:[#allocation9 + $0x48] ss:$16 sps:$4 sm:$0xff]  }
 0x6a2   :  { %v4297_v62 = vadd.f32 1.0, %v9430_v0  ;;  %v9432_v59 = vpop.eup %9431  ;;  %v10983_v0 = vld [vmem:[#allocation9 + $0x64] ss:$16 sps:$4 sm:$0xff]  }
 0x6a3   :  { %9435 = vrcp.f32 %v4291_v60  ;;  %v9434_v40 = vpop.eup %9433  ;;  %v4304_v37 = vadd.f32 1.0, %v9432_v59  ;;  %v10985_v60 = vld [vmem:[#allocation9 + $0x6c] ss:$16 sps:$4 sm:$0xff]   ;;  %v10989_v59 = vld [vmem:[#allocation9 + $0x60] ss:$16 sps:$4 sm:$0xff]  }
 0x6a4   :  { %9437 = vrcp.f32 %v4297_v62 }
 0x6a5   :  { %9439 = vrcp.f32 %v4304_v37  ;;  %v11001_v37 = vld [vmem:[#allocation9 + $0x80] ss:$16 sps:$4 sm:$0xff]  }
 0x6a6   :  { %11991 = vst [vmem:[#allocation29_spill] sm:$0xff] %v11001_v37 }
 0x6ad   :  { %v9436_v35 = vpop.eup %9435 }
 0x6ae   :  { %v9438_v51 = vpop.eup %9437  ;;  %v4308_v53 = vmul.f32 %v9436_v35, %v9434_v40  ;;  %v10991_v40 = vld [vmem:[#allocation9 + $0x68] ss:$16 sps:$4 sm:$0xff]   ;;  %v10995_v35 = vld [vmem:[#allocation9 + $0x84] ss:$16 sps:$4 sm:$0xff]  }
 0x6af   :  { %v4307_v6 = vmul.f32 %v9438_v51, %v10715_v45  ;;  %v9440_v27 = vpop.eup %9439  ;;  %v10957_v45 = vld [vmem:[#allocation9 + $0x2c] ss:$16 sps:$4 sm:$0xff]   ;;  %11989 = vst [vmem:[#allocation54_spill] sm:$0xff] %v10995_v35 }
 0x6b0   :  { %v10997_v51 = vld [vmem:[#allocation9 + $0x8c] ss:$16 sps:$4 sm:$0xff]  }
 0x6b1   :  { %v10945_v1 = vadd.f32 %v4308_v53, %v4307_v6  ;;  %11990 = vst [vmem:[#allocation17_spill] sm:$0xff] %v10997_v51  ;;  %v11003_v6 = vld [vmem:[#allocation9 + $0x88] ss:$16 sps:$4 sm:$0xff]  }
 0x6b2   :  { %11992 = vst [vmem:[#allocation18_spill] sm:$0xff] %v11003_v6 }
 0x6b3   :  { %9441 = vtanh.f32 %v10945_v1 }
 0x6b4   :  { %9443 = vpow2.f32 %v8120_v18  ;;  %v11014_v18 = vld [vmem:[#allocation9 + $0xa0] ss:$16 sps:$4 sm:$0xff]  }
 0x6b5   :  { %9445 = vtanh.f32 %v10940_v22  ;;  %11995 = vst [vmem:[#allocation56_spill] sm:$0xff] %v11014_v18 }
 0x6bd   :  { %v9442_v57 = vpop.eup %9441 }
 0x6be   :  { %v4311_v52 = vmul.f32 %v9442_v57, %v9440_v27  ;;  %v9444_v62 = vpop.eup %9443  ;;  %v11010_v27 = vld [vmem:[#allocation9 + $0xac] ss:$16 sps:$4 sm:$0xff]   ;;  %v11016_v57 = vld [vmem:[#allocation9 + $0xa8] ss:$16 sps:$4 sm:$0xff]  }
 0x6bf   :  { %v3997_v53 = vadd.f32 1.0, %v9444_v62  ;;  %11994 = vst [vmem:[#allocation55_spill] sm:$0xff] %v11010_v27  ;;  %11996 = vst [vmem:[#allocation57_spill] sm:$0xff] %v11016_v57  ;;  %v11022_v62 = vld [vmem:[#allocation9 + $0xcc] ss:$16 sps:$4 sm:$0xff]  }
 0x6c0   :  { %v10953_v20 = vpack.c.bf16 %v4311_v52, %v4311_v52  ;;  %v11020_v52 = vld [vmem:[#allocation9 + $0xc4] ss:$16 sps:$4 sm:$0xff]   ;;  %11998 = vst [vmem:[#allocation59_spill] sm:$0xff] %v11022_v62 }
 0x6c1   :  { %9447 = vrcp.f32 %v3997_v53  ;;  %11997 = vst [vmem:[#allocation58_spill] sm:$0xff] %v11020_v52  ;;  %v11026_v53 = vld [vmem:[#allocation9 + $0xc0] ss:$16 sps:$4 sm:$0xff]  }
 0x6c2   :  { %4571 = vmatmul.mubr.bf16.vlgmr.msra.gmra.mrb[52].mxu0 %v10953_v20  ;;  %4612 = vmatmul.mubr.bf16.vlgmr.msra.gmra.mrb[84].mxu1 %v10953_v20 }
 0x6c3   :  { %4781 = vmatpush1.bf16.msra.mxu0 %v10949_v8  ;;  %4822 = vmatpush1.bf16.msra.mxu1 %v10951_v33 }
 0x6c4   :  { %4782 = vmatprep.subr.bf16.mxu0 %v10955_v38  ;;  %4823 = vmatprep.subr.bf16.mxu1 %v10957_v45 }
 0x6c5   :  { %4812 = vmatprep.mubr.bf16.mxu0 %v11850_v63  ;;  %4853 = vmatprep.mubr.bf16.mxu1 %v11850_v63 }
 0x6c7   :  { %4783 = vmatpush1.bf16.msra.mxu0 %v10963_v13  ;;  %4824 = vmatpush1.bf16.msra.mxu1 %v10965_v46 }
 0x6c8   :  { %4784 = vmatprep.subr.bf16.mxu0 %v10969_v16  ;;  %4825 = vmatprep.subr.bf16.mxu1 %v10971_v43 }
 0x6cb   :  { %4785 = vmatpush1.bf16.msra.mxu0 %v10977_v54  ;;  %4826 = vmatpush1.bf16.msra.mxu1 %v10979_v12 }
 0x6cc   :  { %4786 = vmatprep.subr.bf16.mxu0 %v10983_v0  ;;  %4827 = vmatprep.subr.bf16.mxu1 %v10985_v60 }
 0x6cf   :  { %4787 = vmatpush1.bf16.msra.mxu0 %v10989_v59  ;;  %4828 = vmatpush1.bf16.msra.mxu1 %v10991_v40 }
 0x6d0   :  { %4788 = vmatprep.subr.bf16.mxu0 %v10995_v35  ;;  %4829 = vmatprep.subr.bf16.mxu1 %v10997_v51  ;;  %v11050_v35 = vld [vmem:[#allocation6] ss:$16 sps:$4 sm:$0xff]  }
 0x6d3   :  { %4789 = vmatpush1.bf16.msra.mxu0 %v11001_v37  ;;  %4830 = vmatpush1.bf16.msra.mxu1 %v11003_v6  ;;  %v11028_v37 = vld [vmem:[#allocation9 + $0xc8] ss:$16 sps:$4 sm:$0xff]   ;;  %v11032_v6 = vld [vmem:[#allocation9 + $0xe4] ss:$16 sps:$4 sm:$0xff]  }
 0x6d4   :  { %4790 = vmatprep.subr.bf16.mxu0 %v11008_v48  ;;  %4831 = vmatprep.subr.bf16.mxu1 %v11010_v27  ;;  %11999 = vst [vmem:[#allocation60_spill] sm:$0xff] %v11028_v37  ;;  %12000 = vst [vmem:[#allocation61_spill] sm:$0xff] %v11032_v6  ;;  %v11034_v48 = vld [vmem:[#allocation9 + $0xec] ss:$16 sps:$4 sm:$0xff]   ;;  %v9446_v27 = vpop.eup %9445 }
 0x6d5   :  { %v9448_v51 = vpop.eup %9447 }
 0x6d7   :  { %4791 = vmatpush1.bf16.msra.mxu0 %v11014_v18  ;;  %4832 = vmatpush1.bf16.msra.mxu1 %v11016_v57  ;;  %v11038_v18 = vld [vmem:[#allocation9 + $0xe0] ss:$16 sps:$4 sm:$0xff]   ;;  %v11040_v57 = vld [vmem:[#allocation9 + $0xe8] ss:$16 sps:$4 sm:$0xff]  }
 0x6d8   :  { %4792 = vmatprep.subr.bf16.mxu0 %v11020_v52  ;;  %4833 = vmatprep.subr.bf16.mxu1 %v11022_v62  ;;  %v11044_v52 = vmul.f32 %v9448_v51, %v9446_v27  ;;  %v11046_v62 = vld [vmem:[#allocation6 + $0x4] ss:$16 sps:$4 sm:$0xff]   ;;  %v11060_v51 = vld [vmem:[#allocation6 + $0x20] ss:$16 sps:$4 sm:$0xff]  }
 0x6d9   :  { %v11064_v27 = vld [vmem:[#allocation6 + $0x44] ss:$16 sps:$4 sm:$0xff]  }
 0x6da   :  { %12001 = vst [vmem:[#allocation62_spill] sm:$0xff] %v11044_v52 }
 0x6db   :  { %4793 = vmatpush1.bf16.msra.mxu0 %v11026_v53  ;;  %4834 = vmatpush1.bf16.msra.mxu1 %v11028_v37  ;;  %v4312_v37 = vpack.c.bf16 %v11044_v52, %v11044_v52 }
 0x6dc   :  { %4794 = vmatprep.subr.bf16.mxu0 %v11032_v6  ;;  %4835 = vmatprep.subr.bf16.mxu1 %v11034_v48  ;;  %v11056_v6 = vld [vmem:[#allocation6 + $0x24] ss:$16 sps:$4 sm:$0xff]  }
 0x6df   :  { %4795 = vmatpush1.bf16.msra.mxu0 %v11038_v18  ;;  %4836 = vmatpush1.bf16.msra.mxu1 %v11040_v57 }
 0x6e0   :  { %5091 = vmatprep.subr.bf16.mxu0 %v11046_v62  ;;  %5132 = vmatprep.subr.bf16.mxu1 %v10758_v28  ;;  %v11070_v28 = vld [vmem:[#allocation6 + $0x40] ss:$16 sps:$4 sm:$0xff]  }
 0x6e2   :  { %4813 = vmatmul.mubr.bf16.vlgmr.msra.gmra.mrb[56].mxu0 %v4312_v37  ;;  %4854 = vmatmul.mubr.bf16.vlgmr.msra.gmra.mrb[88].mxu1 %v4312_v37  ;;  %v11082_v37 = vld [vmem:[#allocation6 + $0x84] ss:$16 sps:$4 sm:$0xff]  }
 0x6e3   :  { %5092 = vmatpush1.bf16.msra.mxu0 %v11050_v35  ;;  %5133 = vmatpush1.bf16.msra.mxu1 %v10762_v50  ;;  %v11074_v50 = vld [vmem:[#allocation6 + $0x64] ss:$16 sps:$4 sm:$0xff]  }
 0x6e4   :  { %5093 = vmatprep.subr.bf16.mxu0 %v11056_v6  ;;  %5134 = vmatprep.subr.bf16.mxu1 %v10768_v23  ;;  %v11078_v23 = vld [vmem:[#allocation6 + $0x60] ss:$16 sps:$4 sm:$0xff]  }
 0x6e5   :  { %5123 = vmatprep.mubr.bf16.mxu0 %v11850_v63  ;;  %5164 = vmatprep.mubr.bf16.mxu1 %v11850_v63 }
 0x6e7   :  { %5094 = vmatpush1.bf16.msra.mxu0 %v11060_v51  ;;  %5135 = vmatpush1.bf16.msra.mxu1 %v10772_v29  ;;  %v11086_v29 = vld [vmem:[#allocation6 + $0x80] ss:$16 sps:$4 sm:$0xff]  }
 0x6e8   :  { %5095 = vmatprep.subr.bf16.mxu0 %v11064_v27  ;;  %5136 = vmatprep.subr.bf16.mxu1 %v10776_v25  ;;  %v11090_v25 = vld [vmem:[#allocation6 + $0xa4] ss:$16 sps:$4 sm:$0xff]  }
 0x6eb   :  { %5096 = vmatpush1.bf16.msra.mxu0 %v11070_v28  ;;  %5137 = vmatpush1.bf16.msra.mxu1 %v10782_v32  ;;  %v11094_v32 = vld [vmem:[#allocation6 + $0xa0] ss:$16 sps:$4 sm:$0xff]  }
 0x6ec   :  { %5097 = vmatprep.subr.bf16.mxu0 %v11074_v50  ;;  %5138 = vmatprep.subr.bf16.mxu1 %v10786_v30  ;;  %v11098_v30 = vld [vmem:[#allocation6 + $0xc4] ss:$16 sps:$4 sm:$0xff]  }
 0x6ef   :  { %5098 = vmatpush1.bf16.msra.mxu0 %v11078_v23  ;;  %5139 = vmatpush1.bf16.msra.mxu1 %v10790_v39  ;;  %v11102_v39 = vld [vmem:[#allocation6 + $0xc0] ss:$16 sps:$4 sm:$0xff]  }
 0x6f0   :  { %5099 = vmatprep.subr.bf16.mxu0 %v11082_v37  ;;  %5140 = vmatprep.subr.bf16.mxu1 %v10794_v10  ;;  %v11106_v10 = vld [vmem:[#allocation6 + $0xe4] ss:$16 sps:$4 sm:$0xff]  }
 0x6f3   :  { %5100 = vmatpush1.bf16.msra.mxu0 %v11086_v29  ;;  %5141 = vmatpush1.bf16.msra.mxu1 %v10798_v49  ;;  %v11110_v49 = vld [vmem:[#allocation6 + $0xe0] ss:$16 sps:$4 sm:$0xff]  }
 0x6f4   :  { %5101 = vmatprep.subr.bf16.mxu0 %v11090_v25  ;;  %5142 = vmatprep.subr.bf16.mxu1 %v10802_v31  ;;  %v12002_v31 = vld [vmem:[#allocation28_spill] sm:$0xff] }
 0x6f7   :  { %5102 = vmatpush1.bf16.msra.mxu0 %v11094_v32  ;;  %5143 = vmatpush1.bf16.msra.mxu1 %v10806_v9  ;;  %v12003_v9 = vld [vmem:[#allocation40_spill] sm:$0xff] }
 0x6f8   :  { %5103 = vmatprep.subr.bf16.mxu0 %v11098_v30  ;;  %5144 = vmatprep.subr.bf16.mxu1 %v10810_v14  ;;  %v12004_v14 = vld [vmem:[#allocation41_spill] sm:$0xff] }
 0x6fb   :  { %5104 = vmatpush1.bf16.msra.mxu0 %v11102_v39  ;;  %5145 = vmatpush1.bf16.msra.mxu1 %v10814_v17  ;;  %v12005_v17 = vld [vmem:[#allocation42_spill] sm:$0xff] }
 0x6fc   :  { %5105 = vmatprep.subr.bf16.mxu0 %v11106_v10  ;;  %5146 = vmatprep.subr.bf16.mxu1 %v10818_v7  ;;  %v12006_v7 = vld [vmem:[#allocation43_spill] sm:$0xff] }
 0x6ff   :  { %5106 = vmatpush1.bf16.msra.mxu0 %v11110_v49  ;;  %5147 = vmatpush1.bf16.msra.mxu1 %v10822_v19  ;;  %v12007_v19 = vld [vmem:[#allocation44_spill] sm:$0xff] }
 0x700   :  { %5427 = vmatprep.subr.bf16.mxu0 %v10832_v21  ;;  %5468 = vmatprep.subr.bf16.mxu1 %v10834_v24  ;;  %v12008_v21 = vld [vmem:[#allocation45_spill] sm:$0xff]  ;;  %v12009_v24 = vld [vmem:[#allocation46_spill] sm:$0xff] }
 0x702   :  { %5124 = vmatmul.mubr.bf16.vlgmr.msra.gmra.mrb[60].mxu0 %v10953_v20  ;;  %5165 = vmatmul.mubr.bf16.vlgmr.msra.gmra.mrb[92].mxu1 %v10953_v20 }
 0x703   :  { %5428 = vmatpush1.bf16.msra.mxu0 %v10836_v26  ;;  %5469 = vmatpush1.bf16.msra.mxu1 %v10838_v3  ;;  %v12010_v26 = vld [vmem:[#allocation47_spill] sm:$0xff]  ;;  %v12011_v3 = vld [vmem:[#allocation48_spill] sm:$0xff] }
 0x704   :  { %5429 = vmatprep.subr.bf16.mxu0 %v10844_v58  ;;  %5470 = vmatprep.subr.bf16.mxu1 %v10846_v5  ;;  %v12012_v58 = vld [vmem:[#allocation49_spill] sm:$0xff]  ;;  %v12013_v5 = vld [vmem:[#allocation50_spill] sm:$0xff] }
 0x705   :  { %5459 = vmatprep.mubr.bf16.mxu0 %v11850_v63  ;;  %5500 = vmatprep.mubr.bf16.mxu1 %v11850_v63 }
 0x707   :  { %5430 = vmatpush1.bf16.msra.mxu0 %v10848_v36  ;;  %5471 = vmatpush1.bf16.msra.mxu1 %v10850_v41  ;;  %v12014_v36 = vld [vmem:[#allocation51_spill] sm:$0xff]  ;;  %v12015_v41 = vld [vmem:[#allocation52_spill] sm:$0xff] }
 0x708   :  { %5431 = vmatprep.subr.bf16.mxu0 %v10856_v15  ;;  %5472 = vmatprep.subr.bf16.mxu1 %v10858_v61  ;;  %v12016_v15 = vld [vmem:[#allocation53_spill] sm:$0xff] }
 0x70b   :  { %5432 = vmatpush1.bf16.msra.mxu0 %v10860_v42  ;;  %5473 = vmatpush1.bf16.msra.mxu1 %v10862_v47 }
 0x70c   :  { %5433 = vmatprep.subr.bf16.mxu0 %v10868_v34  ;;  %5474 = vmatprep.subr.bf16.mxu1 %v10870_v2 }
 0x70f   :  { %5434 = vmatpush1.bf16.msra.mxu0 %v10872_v56  ;;  %5475 = vmatpush1.bf16.msra.mxu1 %v10874_v44 }
 0x710   :  { %5435 = vmatprep.subr.bf16.mxu0 %v10880_v4  ;;  %5476 = vmatprep.subr.bf16.mxu1 %v10882_v55 }
 0x713   :  { %5436 = vmatpush1.bf16.msra.mxu0 %v10884_v11  ;;  %5477 = vmatpush1.bf16.msra.mxu1 %v12002_v31  ;;  %v11154_v11 = vld [vmem:[#allocation11] sm:$0xff] }
 0x714   :  { %5437 = vmatprep.subr.bf16.mxu0 %v12003_v9  ;;  %5478 = vmatprep.subr.bf16.mxu1 %v12004_v14 }
 0x717   :  { %5438 = vmatpush1.bf16.msra.mxu0 %v12005_v17  ;;  %5479 = vmatpush1.bf16.msra.mxu1 %v12006_v7  ;;  %v11156_v17 = vld [vmem:[#allocation11 + $0x8] sm:$0xff] }
 0x718   :  { %5439 = vmatprep.subr.bf16.mxu0 %v12007_v19  ;;  %5480 = vmatprep.subr.bf16.mxu1 %v12008_v21 }
 0x71b   :  { %5440 = vmatpush1.bf16.msra.mxu0 %v12009_v24  ;;  %5481 = vmatpush1.bf16.msra.mxu1 %v12010_v26 }
 0x71c   :  { %5441 = vmatprep.subr.bf16.mxu0 %v12011_v3  ;;  %5482 = vmatprep.subr.bf16.mxu1 %v12012_v58 }
 0x71f   :  { %5442 = vmatpush1.bf16.msra.mxu0 %v12013_v5  ;;  %5483 = vmatpush1.bf16.msra.mxu1 %v12014_v36 }
 0x720   :  { %5669 = vmatprep.subr.bf16.mxu0 %v12015_v41  ;;  %5710 = vmatprep.subr.bf16.mxu1 %v12016_v15 }
 0x795   :  { %v4572_v61 = vpop.f32.mrb[52].mxu0  ;;  %v4613_v42 = vpop.f32.mrb[84].mxu1 }
 0x796   :  { %v4574_v47 = vpop.f32.mrb[53].mxu0  ;;  %v4615_v34 = vpop.f32.mrb[85].mxu1 }
 0x797   :  { %v4576_v2 = vpop.f32.mrb[54].mxu0  ;;  %v4617_v56 = vpop.f32.mrb[86].mxu1 }
 0x798   :  { %v4577_v44 = vpop.f32.mrb[55].mxu0  ;;  %v4618_v4 = vpop.f32.mrb[87].mxu1 }
 0x7b5   :  { %v4814_v55 = vpop.f32.mrb[56].mxu0  ;;  %v4855_v20 = vpop.f32.mrb[88].mxu1 }
 0x7b6   :  { %v4815_v31 = vadd.f32 %v4814_v55, %v4572_v61  ;;  %v4856_v9 = vadd.f32 %v4855_v20, %v4613_v42  ;;  %v4816_v14 = vpop.f32.mrb[57].mxu0  ;;  %v4857_v7 = vpop.f32.mrb[89].mxu1  ;;  %v11160_v61 = vld [vmem:[#allocation11 + $0x10] sm:$0xff] }
 0x7b7   :  { %v4817_v19 = vadd.f32 %v4816_v14, %v4574_v47  ;;  %v4858_v21 = vadd.f32 %v4857_v7, %v4615_v34  ;;  %v4818_v24 = vpop.f32.mrb[58].mxu0  ;;  %v4859_v26 = vpop.f32.mrb[90].mxu1 }
 0x7b8   :  { %v4866_v3 = vadd.f32 %v11154_v11, %v4815_v31  ;;  %v4819_v58 = vpop.f32.mrb[59].mxu0  ;;  %v4860_v5 = vpop.f32.mrb[91].mxu1  ;;  %v4868_v42 = vadd.f32 %v11160_v61, %v4856_v9  ;;  %v12018_v26 = vld [vmem:[#allocation33_spill] sm:$0xff] }
 0x7b9   :  { %v4867_v36 = vadd.f32 %v11156_v17, %v4817_v19  ;;  %v12017_v19 = vld [vmem:[#allocation21_spill] sm:$0xff] }
 0x7ba   :  { %v8220_v41 = vmul.f32 -1.442695, %v4866_v3 }
 0x7bb   :  { %v8221_v15 = vmul.f32 -1.442695, %v4867_v36  ;;  %v12019_v36 = vld [vmem:[#allocation22_spill] sm:$0xff] }
 0x7bc   :  { %9449 = vpow2.f32 %v8220_v41 }
 0x7bd   :  { %9451 = vpow2.f32 %v8221_v15  ;;  %v12020_v15 = vld [vmem:[#allocation34_spill] sm:$0xff] }
 0x7be   :  { %9453 = vtanh.f32 %v4868_v42 }
 0x7c6   :  { %v9450_v2 = vpop.eup %9449 }
 0x7c7   :  { %v9452_v56 = vpop.eup %9451  ;;  %v4873_v47 = vadd.f32 1.0, %v9450_v2 }
 0x7c8   :  { %v4879_v34 = vadd.f32 1.0, %v9452_v56  ;;  %v9454_v44 = vpop.eup %9453 }
 0x7c9   :  { %9455 = vrcp.f32 %v4873_v47 }
 0x7ca   :  { %9457 = vrcp.f32 %v4879_v34 }
 0x7d3   :  { %v9456_v4 = vpop.eup %9455 }
 0x7d4   :  { %v9458_v55 = vpop.eup %9457  ;;  %v4890_v20 = vmul.f32 %v9456_v4, %v9454_v44 }
 0x7d5   :  { %v4889_v31 = vmul.f32 %v9458_v55, %v10940_v22  ;;  %v5125_v14 = vpop.f32.mrb[60].mxu0  ;;  %v5166_v7 = vpop.f32.mrb[92].mxu1 }
 0x7d6   :  { %v5173_v24 = vadd.f32 %v5125_v14, %v12017_v19  ;;  %v5175_v3 = vadd.f32 %v5166_v7, %v12018_v26  ;;  %v5127_v9 = vpop.f32.mrb[61].mxu0  ;;  %v5168_v58 = vpop.f32.mrb[93].mxu1 }
 0x7d7   :  { %v11166_v5 = vadd.f32 %v4890_v20, %v4889_v31  ;;  %v5174_v41 = vadd.f32 %v5127_v9, %v12019_v36  ;;  %v5176_v42 = vadd.f32 %v5168_v58, %v12020_v15  ;;  %v5129_v2 = vpop.f32.mrb[62].mxu0  ;;  %v5170_v56 = vpop.f32.mrb[94].mxu1  ;;  %v11174_v15 = vld [vmem:[#allocation11 + $0x18] sm:$0xff] }
 0x7d8   :  { %v8255_v47 = vmul.f32 -1.442695, %v5173_v24  ;;  %v5130_v34 = vpop.f32.mrb[63].mxu0  ;;  %v5171_v44 = vpop.f32.mrb[95].mxu1 }
 0x7d9   :  { %v8256_v22 = vmul.f32 -1.442695, %v5174_v41  ;;  %v8257_v4 = vmul.f32 -1.442695, %v5176_v42 }
 0x7da   :  { %9459 = vpow2.f32 %v8255_v47 }
 0x7db   :  { %9461 = vpow2.f32 %v8256_v22  ;;  %v11214_v22 = vld [vmem:[#allocation6 + $0xc] ss:$16 sps:$4 sm:$0xff]  }
 0x7dc   :  { %9463 = vpow2.f32 %v8257_v4  ;;  %v11218_v4 = vld [vmem:[#allocation6 + $0x8] ss:$16 sps:$4 sm:$0xff]  }
 0x7dd   :  { %9465 = vtanh.f32 %v5175_v3  ;;  %v4869_v3 = vadd.f32 %v11174_v15, %v4858_v21  ;;  %v12032_v21 = vld [vmem:[#allocation61_spill] sm:$0xff] }
 0x7df   :  { %v8222_v2 = vmul.f32 -1.442695, %v4869_v3  ;;  %v11336_v3 = vld [vmem:[#allocation8 + $0x84] ss:$16 sps:$4 sm:$0xff]  }
 0x7e4   :  { %v9460_v55 = vpop.eup %9459 }
 0x7e5   :  { %v9462_v14 = vpop.eup %9461  ;;  %v5180_v7 = vadd.f32 1.0, %v9460_v55 }
 0x7e6   :  { %v5186_v20 = vadd.f32 1.0, %v9462_v14  ;;  %v9464_v31 = vpop.eup %9463  ;;  %v11304_v14 = vld [vmem:[#allocation8 + $0x20] ss:$16 sps:$4 sm:$0xff]  }
 0x7e7   :  { %9467 = vrcp.f32 %v5180_v7  ;;  %v9466_v19 = vpop.eup %9465  ;;  %v5193_v24 = vadd.f32 1.0, %v9464_v31  ;;  %v11306_v7 = vld [vmem:[#allocation8 + $0x28] ss:$16 sps:$4 sm:$0xff]   ;;  %v11314_v31 = vld [vmem:[#allocation8 + $0x4c] ss:$16 sps:$4 sm:$0xff]  }
 0x7e8   :  { %9469 = vrcp.f32 %v5186_v20  ;;  %v11312_v20 = vld [vmem:[#allocation8 + $0x44] ss:$16 sps:$4 sm:$0xff]  }
 0x7e9   :  { %9471 = vrcp.f32 %v5193_v24  ;;  %v11328_v24 = vld [vmem:[#allocation8 + $0x60] ss:$16 sps:$4 sm:$0xff]  }
 0x7f1   :  { %v9468_v26 = vpop.eup %9467 }
 0x7f2   :  { %v9470_v9 = vpop.eup %9469  ;;  %v5197_v58 = vmul.f32 %v9468_v26, %v9466_v19  ;;  %v11316_v19 = vld [vmem:[#allocation8 + $0x40] ss:$16 sps:$4 sm:$0xff]   ;;  %v11318_v26 = vld [vmem:[#allocation8 + $0x48] ss:$16 sps:$4 sm:$0xff]  }
 0x7f3   :  { %v5196_v36 = vmul.f32 %v9470_v9, %v10945_v1  ;;  %v9472_v42 = vpop.eup %9471  ;;  %v11324_v9 = vld [vmem:[#allocation8 + $0x64] ss:$16 sps:$4 sm:$0xff]  }
 0x7f5   :  { %v11171_v41 = vadd.f32 %v5197_v58, %v5196_v36  ;;  %v11326_v58 = vld [vmem:[#allocation8 + $0x6c] ss:$16 sps:$4 sm:$0xff]   ;;  %v11330_v36 = vld [vmem:[#allocation8 + $0x68] ss:$16 sps:$4 sm:$0xff]  }
 0x7f7   :  { %9473 = vtanh.f32 %v11171_v41 }
 0x7f8   :  { %9475 = vpow2.f32 %v8222_v2  ;;  %v11340_v2 = vld [vmem:[#allocation8 + $0x80] ss:$16 sps:$4 sm:$0xff]  }
 0x7f9   :  { %9477 = vtanh.f32 %v11166_v5 }
 0x801   :  { %v9474_v56 = vpop.eup %9473 }
 0x802   :  { %v5200_v47 = vmul.f32 %v9474_v56, %v9472_v42  ;;  %v9476_v1 = vpop.eup %9475  ;;  %v11338_v42 = vld [vmem:[#allocation8 + $0x8c] ss:$16 sps:$4 sm:$0xff]   ;;  %v11342_v56 = vld [vmem:[#allocation8 + $0x88] ss:$16 sps:$4 sm:$0xff]  }
 0x803   :  { %12034 = vst [vmem:[#allocation64_spill] sm:$0xff] %v11342_v56 }
 0x804   :  { %v11177_v34 = vpack.c.bf16 %v5200_v47, %v5200_v47  ;;  %v11346_v47 = vld [vmem:[#allocation8 + $0xa4] ss:$16 sps:$4 sm:$0xff]  }
 0x805   :  { %12035 = vst [vmem:[#allocation65_spill] sm:$0xff] %v11346_v47 }
 0x806   :  { %5460 = vmatmul.mubr.bf16.vlgmr.msra.gmra.mrb[64].mxu0 %v11177_v34  ;;  %5501 = vmatmul.mubr.bf16.vlgmr.msra.gmra.mrb[96].mxu1 %v11177_v34 }
 0x807   :  { %5670 = vmatpush1.bf16.msra.mxu0 %v10949_v8  ;;  %5711 = vmatpush1.bf16.msra.mxu1 %v10951_v33  ;;  %v4886_v8 = vadd.f32 1.0, %v9476_v1  ;;  %v12021_v33 = vld [vmem:[#allocation54_spill] sm:$0xff]  ;;  %v11352_v1 = vld [vmem:[#allocation8 + $0xa0] ss:$16 sps:$4 sm:$0xff]  }
 0x808   :  { %5671 = vmatprep.subr.bf16.mxu0 %v10955_v38  ;;  %5712 = vmatprep.subr.bf16.mxu1 %v10957_v45  ;;  %v12022_v38 = vld [vmem:[#allocation17_spill] sm:$0xff]  ;;  %12037 = vst [vmem:[#allocation19_spill] sm:$0xff] %v11352_v1 }
 0x809   :  { %5701 = vmatprep.mubr.bf16.mxu0 %v11850_v63  ;;  %5742 = vmatprep.mubr.bf16.mxu1 %v11850_v63  ;;  %9479 = vrcp.f32 %v4886_v8  ;;  %v12023_v45 = vld [vmem:[#allocation29_spill] sm:$0xff]  ;;  %v11354_v8 = vld [vmem:[#allocation8 + $0xa8] ss:$16 sps:$4 sm:$0xff]  }
 0x80a   :  { %12038 = vst [vmem:[#allocation31_spill] sm:$0xff] %v11354_v8 }
 0x80b   :  { %5672 = vmatpush1.bf16.msra.mxu0 %v10963_v13  ;;  %5713 = vmatpush1.bf16.msra.mxu1 %v10965_v46  ;;  %v12024_v13 = vld [vmem:[#allocation18_spill] sm:$0xff] }
 0x80c   :  { %5673 = vmatprep.subr.bf16.mxu0 %v10969_v16  ;;  %5714 = vmatprep.subr.bf16.mxu1 %v10971_v43  ;;  %v12025_v46 = vld [vmem:[#allocation30_spill] sm:$0xff]  ;;  %v12026_v16 = vld [vmem:[#allocation55_spill] sm:$0xff]  ;;  %v12027_v43 = vld [vmem:[#allocation56_spill] sm:$0xff] }
 0x80f   :  { %5674 = vmatpush1.bf16.msra.mxu0 %v10977_v54  ;;  %5715 = vmatpush1.bf16.msra.mxu1 %v10979_v12  ;;  %v12028_v54 = vld [vmem:[#allocation57_spill] sm:$0xff]  ;;  %v12029_v12 = vld [vmem:[#allocation58_spill] sm:$0xff] }
 0x810   :  { %5675 = vmatprep.subr.bf16.mxu0 %v10983_v0  ;;  %5716 = vmatprep.subr.bf16.mxu1 %v10985_v60  ;;  %v12030_v0 = vld [vmem:[#allocation59_spill] sm:$0xff]  ;;  %v9478_v60 = vpop.eup %9477 }
 0x813   :  { %5676 = vmatpush1.bf16.msra.mxu0 %v10989_v59  ;;  %5717 = vmatpush1.bf16.msra.mxu1 %v10991_v40  ;;  %v9480_v59 = vpop.eup %9479  ;;  %v12031_v40 = vld [vmem:[#allocation60_spill] sm:$0xff] }
 0x814   :  { %5677 = vmatprep.subr.bf16.mxu0 %v12021_v33  ;;  %5718 = vmatprep.subr.bf16.mxu1 %v12022_v38  ;;  %v11212_v44 = vmul.f32 %v9480_v59, %v9478_v60  ;;  %v11358_v33 = vld [vmem:[#allocation8 + $0xc4] ss:$16 sps:$4 sm:$0xff]   ;;  %v11360_v38 = vld [vmem:[#allocation8 + $0xcc] ss:$16 sps:$4 sm:$0xff]  }
 0x815   :  { %12039 = vst [vmem:[#allocation20_spill] sm:$0xff] %v11358_v33  ;;  %12040 = vst [vmem:[#allocation32_spill] sm:$0xff] %v11360_v38 }
 0x816   :  { %12033 = vst [vmem:[#allocation63_spill] sm:$0xff] %v11212_v44  ;;  %v5201_v55 = vpack.c.bf16 %v11212_v44, %v11212_v44 }
 0x817   :  { %5678 = vmatpush1.bf16.msra.mxu0 %v12023_v45  ;;  %5719 = vmatpush1.bf16.msra.mxu1 %v12024_v13  ;;  %v11364_v45 = vld [vmem:[#allocation8 + $0xc0] ss:$16 sps:$4 sm:$0xff]   ;;  %v11366_v13 = vld [vmem:[#allocation8 + $0xc8] ss:$16 sps:$4 sm:$0xff]  }
 0x818   :  { %5679 = vmatprep.subr.bf16.mxu0 %v12025_v46  ;;  %5720 = vmatprep.subr.bf16.mxu1 %v12026_v16  ;;  %12041 = vst [vmem:[#allocation28_spill] sm:$0xff] %v11364_v45  ;;  %12042 = vst [vmem:[#allocation40_spill] sm:$0xff] %v11366_v13  ;;  %v11370_v46 = vld [vmem:[#allocation8 + $0xe4] ss:$16 sps:$4 sm:$0xff]   ;;  %v11372_v16 = vld [vmem:[#allocation8 + $0xec] ss:$16 sps:$4 sm:$0xff]  }
 0x819   :  { %12043 = vst [vmem:[#allocation41_spill] sm:$0xff] %v11370_v46  ;;  %12044 = vst [vmem:[#allocation42_spill] sm:$0xff] %v11372_v16 }
 0x81b   :  { %5680 = vmatpush1.bf16.msra.mxu0 %v12027_v43  ;;  %5721 = vmatpush1.bf16.msra.mxu1 %v12028_v54  ;;  %v11376_v43 = vld [vmem:[#allocation8 + $0xe0] ss:$16 sps:$4 sm:$0xff]   ;;  %v11378_v54 = vld [vmem:[#allocation8 + $0xe8] ss:$16 sps:$4 sm:$0xff]  }
 0x81c   :  { %5681 = vmatprep.subr.bf16.mxu0 %v12029_v12  ;;  %5722 = vmatprep.subr.bf16.mxu1 %v12030_v0  ;;  %12045 = vst [vmem:[#allocation43_spill] sm:$0xff] %v11376_v43  ;;  %12046 = vst [vmem:[#allocation44_spill] sm:$0xff] %v11378_v54  ;;  %v11382_v12 = vld [vmem:[#allocation9 + $0x4] ss:$16 sps:$4 sm:$0xff]   ;;  %v11384_v0 = vld [vmem:[#allocation9 + $0xc] ss:$16 sps:$4 sm:$0xff]  }
 0x81d   :  { %12047 = vst [vmem:[#allocation45_spill] sm:$0xff] %v11382_v12  ;;  %12048 = vst [vmem:[#allocation46_spill] sm:$0xff] %v11384_v0 }
 0x81f   :  { %5682 = vmatpush1.bf16.msra.mxu0 %v11026_v53  ;;  %5723 = vmatpush1.bf16.msra.mxu1 %v12031_v40  ;;  %v11224_v53 = vld [vmem:[#allocation6 + $0x2c] ss:$16 sps:$4 sm:$0xff]  }
 0x820   :  { %5683 = vmatprep.subr.bf16.mxu0 %v12032_v21  ;;  %5724 = vmatprep.subr.bf16.mxu1 %v11034_v48  ;;  %v11228_v48 = vld [vmem:[#allocation6 + $0x28] ss:$16 sps:$4 sm:$0xff]  }
 0x823   :  { %5684 = vmatpush1.bf16.msra.mxu0 %v11038_v18  ;;  %5725 = vmatpush1.bf16.msra.mxu1 %v11040_v57  ;;  %v11232_v18 = vld [vmem:[#allocation6 + $0x4c] ss:$16 sps:$4 sm:$0xff]   ;;  %v11238_v57 = vld [vmem:[#allocation6 + $0x48] ss:$16 sps:$4 sm:$0xff]  }
 0x824   :  { %5980 = vmatprep.subr.bf16.mxu0 %v11046_v62  ;;  %6021 = vmatprep.subr.bf16.mxu1 %v11214_v22  ;;  %v11250_v62 = vld [vmem:[#allocation6 + $0x8c] ss:$16 sps:$4 sm:$0xff]  }
 0x826   :  { %5702 = vmatmul.mubr.bf16.vlgmr.msra.gmra.mrb[68].mxu0 %v5201_v55  ;;  %5743 = vmatmul.mubr.bf16.vlgmr.msra.gmra.mrb[100].mxu1 %v5201_v55 }
 0x827   :  { %5981 = vmatpush1.bf16.msra.mxu0 %v11050_v35  ;;  %6022 = vmatpush1.bf16.msra.mxu1 %v11218_v4  ;;  %v11242_v35 = vld [vmem:[#allocation6 + $0x6c] ss:$16 sps:$4 sm:$0xff]  }
 0x828   :  { %5982 = vmatprep.subr.bf16.mxu0 %v11056_v6  ;;  %6023 = vmatprep.subr.bf16.mxu1 %v11224_v53  ;;  %v11246_v6 = vld [vmem:[#allocation6 + $0x68] ss:$16 sps:$4 sm:$0xff]  }
 0x829   :  { %6012 = vmatprep.mubr.bf16.mxu0 %v11850_v63  ;;  %6053 = vmatprep.mubr.bf16.mxu1 %v11850_v63 }
 0x82b   :  { %5983 = vmatpush1.bf16.msra.mxu0 %v11060_v51  ;;  %6024 = vmatpush1.bf16.msra.mxu1 %v11228_v48  ;;  %v11254_v51 = vld [vmem:[#allocation6 + $0x88] ss:$16 sps:$4 sm:$0xff]  }
 0x82c   :  { %5984 = vmatprep.subr.bf16.mxu0 %v11064_v27  ;;  %6025 = vmatprep.subr.bf16.mxu1 %v11232_v18  ;;  %v11258_v27 = vld [vmem:[#allocation6 + $0xac] ss:$16 sps:$4 sm:$0xff]  }
 0x82f   :  { %5985 = vmatpush1.bf16.msra.mxu0 %v11070_v28  ;;  %6026 = vmatpush1.bf16.msra.mxu1 %v11238_v57  ;;  %v11262_v28 = vld [vmem:[#allocation6 + $0xa8] ss:$16 sps:$4 sm:$0xff]  }
 0x830   :  { %5986 = vmatprep.subr.bf16.mxu0 %v11074_v50  ;;  %6027 = vmatprep.subr.bf16.mxu1 %v11242_v35  ;;  %v11266_v50 = vld [vmem:[#allocation6 + $0xcc] ss:$16 sps:$4 sm:$0xff]  }
 0x833   :  { %5987 = vmatpush1.bf16.msra.mxu0 %v11078_v23  ;;  %6028 = vmatpush1.bf16.msra.mxu1 %v11246_v6  ;;  %v11270_v23 = vld [vmem:[#allocation6 + $0xc8] ss:$16 sps:$4 sm:$0xff]  }
 0x834   :  { %5988 = vmatprep.subr.bf16.mxu0 %v11082_v37  ;;  %6029 = vmatprep.subr.bf16.mxu1 %v11250_v62  ;;  %v11274_v37 = vld [vmem:[#allocation6 + $0xec] ss:$16 sps:$4 sm:$0xff]  }
 0x837   :  { %5989 = vmatpush1.bf16.msra.mxu0 %v11086_v29  ;;  %6030 = vmatpush1.bf16.msra.mxu1 %v11254_v51  ;;  %v11278_v29 = vld [vmem:[#allocation6 + $0xe8] ss:$16 sps:$4 sm:$0xff]  }
 0x838   :  { %5990 = vmatprep.subr.bf16.mxu0 %v11090_v25  ;;  %6031 = vmatprep.subr.bf16.mxu1 %v11258_v27  ;;  %v11288_v25 = vld [vmem:[#allocation8 + $0x4] ss:$16 sps:$4 sm:$0xff]  }
 0x83b   :  { %5991 = vmatpush1.bf16.msra.mxu0 %v11094_v32  ;;  %6032 = vmatpush1.bf16.msra.mxu1 %v11262_v28  ;;  %v11290_v32 = vld [vmem:[#allocation8 + $0xc] ss:$16 sps:$4 sm:$0xff]  }
 0x83c   :  { %5992 = vmatprep.subr.bf16.mxu0 %v11098_v30  ;;  %6033 = vmatprep.subr.bf16.mxu1 %v11266_v50  ;;  %v11292_v30 = vld [vmem:[#allocation8] ss:$16 sps:$4 sm:$0xff]  }
 0x83f   :  { %5993 = vmatpush1.bf16.msra.mxu0 %v11102_v39  ;;  %6034 = vmatpush1.bf16.msra.mxu1 %v11270_v23  ;;  %v11294_v39 = vld [vmem:[#allocation8 + $0x8] ss:$16 sps:$4 sm:$0xff]  }
 0x840   :  { %5994 = vmatprep.subr.bf16.mxu0 %v11106_v10  ;;  %6035 = vmatprep.subr.bf16.mxu1 %v11274_v37  ;;  %v11300_v10 = vld [vmem:[#allocation8 + $0x24] ss:$16 sps:$4 sm:$0xff]  }
 0x843   :  { %5995 = vmatpush1.bf16.msra.mxu0 %v11110_v49  ;;  %6036 = vmatpush1.bf16.msra.mxu1 %v11278_v29  ;;  %v11302_v49 = vld [vmem:[#allocation8 + $0x2c] ss:$16 sps:$4 sm:$0xff]  }
 0x844   :  { %6316 = vmatprep.subr.bf16.mxu0 %v11288_v25  ;;  %6357 = vmatprep.subr.bf16.mxu1 %v11290_v32 }
 0x846   :  { %6013 = vmatmul.mubr.bf16.vlgmr.msra.gmra.mrb[72].mxu0 %v11177_v34  ;;  %6054 = vmatmul.mubr.bf16.vlgmr.msra.gmra.mrb[104].mxu1 %v11177_v34  ;;  %v11348_v34 = vld [vmem:[#allocation8 + $0xac] ss:$16 sps:$4 sm:$0xff]  }
 0x847   :  { %6348 = vmatprep.mubr.bf16.mxu0 %v11850_v63  ;;  %6389 = vmatprep.mubr.bf16.mxu1 %v11850_v63  ;;  %12036 = vst [vmem:[#allocation15_spill] sm:$0xff] %v11348_v34 }
 0x848   :  { %6317 = vmatpush1.bf16.msra.mxu0 %v11292_v30  ;;  %6358 = vmatpush1.bf16.msra.mxu1 %v11294_v39 }
 0x849   :  { %6318 = vmatprep.subr.bf16.mxu0 %v11300_v10  ;;  %6359 = vmatprep.subr.bf16.mxu1 %v11302_v49 }
 0x84c   :  { %6319 = vmatpush1.bf16.msra.mxu0 %v11304_v14  ;;  %6360 = vmatpush1.bf16.msra.mxu1 %v11306_v7 }
 0x84d   :  { %6320 = vmatprep.subr.bf16.mxu0 %v11312_v20  ;;  %6361 = vmatprep.subr.bf16.mxu1 %v11314_v31 }
 0x850   :  { %6321 = vmatpush1.bf16.msra.mxu0 %v11316_v19  ;;  %6362 = vmatpush1.bf16.msra.mxu1 %v11318_v26 }
 0x851   :  { %6322 = vmatprep.subr.bf16.mxu0 %v11324_v9  ;;  %6363 = vmatprep.subr.bf16.mxu1 %v11326_v58 }
 0x854   :  { %6323 = vmatpush1.bf16.msra.mxu0 %v11328_v24  ;;  %6364 = vmatpush1.bf16.msra.mxu1 %v11330_v36 }
 0x855   :  { %6324 = vmatprep.subr.bf16.mxu0 %v11336_v3  ;;  %6365 = vmatprep.subr.bf16.mxu1 %v11338_v42 }
 0x858   :  { %6325 = vmatpush1.bf16.msra.mxu0 %v11340_v2  ;;  %6366 = vmatpush1.bf16.msra.mxu1 %v11342_v56 }
 0x859   :  { %6326 = vmatprep.subr.bf16.mxu0 %v11346_v47  ;;  %6367 = vmatprep.subr.bf16.mxu1 %v11348_v34 }
 0x85c   :  { %6327 = vmatpush1.bf16.msra.mxu0 %v11352_v1  ;;  %6368 = vmatpush1.bf16.msra.mxu1 %v11354_v8 }
 0x85d   :  { %6328 = vmatprep.subr.bf16.mxu0 %v11358_v33  ;;  %6369 = vmatprep.subr.bf16.mxu1 %v11360_v38 }
 0x860   :  { %6329 = vmatpush1.bf16.msra.mxu0 %v11364_v45  ;;  %6370 = vmatpush1.bf16.msra.mxu1 %v11366_v13 }
 0x861   :  { %6330 = vmatprep.subr.bf16.mxu0 %v11370_v46  ;;  %6371 = vmatprep.subr.bf16.mxu1 %v11372_v16 }
 0x864   :  { %6331 = vmatpush1.bf16.msra.mxu0 %v11376_v43  ;;  %6372 = vmatpush1.bf16.msra.mxu1 %v11378_v54 }
 0x865   :  { %6558 = vmatprep.subr.bf16.mxu0 %v11382_v12  ;;  %6599 = vmatprep.subr.bf16.mxu1 %v11384_v0 }
 0x8d9   :  { %v5461_v60 = vpop.f32.mrb[64].mxu0  ;;  %v5502_v59 = vpop.f32.mrb[96].mxu1 }
 0x8da   :  { %v5463_v40 = vpop.f32.mrb[65].mxu0  ;;  %v5504_v21 = vpop.f32.mrb[97].mxu1 }
 0x8db   :  { %v5465_v55 = vpop.f32.mrb[66].mxu0  ;;  %v5506_v44 = vpop.f32.mrb[98].mxu1 }
 0x8dc   :  { %v5466_v52 = vpop.f32.mrb[67].mxu0  ;;  %v5507_v16 = vpop.f32.mrb[99].mxu1 }
 0x8f9   :  { %v5703_v46 = vpop.f32.mrb[68].mxu0  ;;  %v5744_v13 = vpop.f32.mrb[100].mxu1 }
 0x8fa   :  { %v5704_v45 = vadd.f32 %v5703_v46, %v5461_v60  ;;  %v5745_v38 = vadd.f32 %v5744_v13, %v5502_v59  ;;  %v5705_v33 = vpop.f32.mrb[69].mxu0  ;;  %v5746_v43 = vpop.f32.mrb[101].mxu1  ;;  %v12051_v59 = vld [vmem:[#allocation24_spill] sm:$0xff] }
 0x8fb   :  { %v5706_v8 = vadd.f32 %v5705_v33, %v5463_v40  ;;  %v5747_v54 = vadd.f32 %v5746_v43, %v5504_v21  ;;  %v5707_v1 = vpop.f32.mrb[70].mxu0  ;;  %v5748_v12 = vpop.f32.mrb[102].mxu1  ;;  %v12052_v21 = vld [vmem:[#allocation36_spill] sm:$0xff] }
 0x8fc   :  { %v5755_v0 = vadd.f32 %v5704_v45, %v11154_v11  ;;  %v5708_v34 = vpop.f32.mrb[71].mxu0  ;;  %v5749_v47 = vpop.f32.mrb[103].mxu1  ;;  %v5757_v52 = vadd.f32 %v5745_v38, %v11160_v61  ;;  %v12050_v12 = vld [vmem:[#allocation35_spill] sm:$0xff] }
 0x8fd   :  { %v5756_v56 = vadd.f32 %v5706_v8, %v11156_v17 }
 0x8fe   :  { %v8322_v55 = vmul.f32 -1.442695, %v5755_v0 }
 0x8ff   :  { %v8323_v44 = vmul.f32 -1.442695, %v5756_v56  ;;  %v12049_v56 = vld [vmem:[#allocation23_spill] sm:$0xff] }
 0x900   :  { %9481 = vpow2.f32 %v8322_v55 }
 0x901   :  { %9483 = vpow2.f32 %v8323_v44 }
 0x902   :  { %9485 = vtanh.f32 %v5757_v52 }
 0x90a   :  { %v9482_v46 = vpop.eup %9481 }
 0x90b   :  { %v9484_v13 = vpop.eup %9483  ;;  %v5762_v16 = vadd.f32 1.0, %v9482_v46 }
 0x90c   :  { %v5768_v33 = vadd.f32 1.0, %v9484_v13  ;;  %v9486_v1 = vpop.eup %9485 }
 0x90d   :  { %9487 = vrcp.f32 %v5762_v16 }
 0x90e   :  { %9489 = vrcp.f32 %v5768_v33 }
 0x917   :  { %v9488_v43 = vpop.eup %9487 }
 0x918   :  { %v9490_v11 = vpop.eup %9489  ;;  %v5779_v34 = vmul.f32 %v9488_v43, %v9486_v1 }
 0x919   :  { %v5778_v47 = vmul.f32 %v9490_v11, %v11166_v5  ;;  %v6014_v17 = vpop.f32.mrb[72].mxu0  ;;  %v6055_v8 = vpop.f32.mrb[104].mxu1 }
 0x91a   :  { %v6062_v45 = vadd.f32 %v6014_v17, %v12049_v56  ;;  %v6064_v0 = vadd.f32 %v6055_v8, %v12050_v12  ;;  %v6016_v61 = vpop.f32.mrb[73].mxu0  ;;  %v6057_v38 = vpop.f32.mrb[105].mxu1 }
 0x91b   :  { %v11396_v60 = vadd.f32 %v5779_v34, %v5778_v47  ;;  %v6063_v40 = vadd.f32 %v6016_v61, %v12051_v59  ;;  %v6065_v55 = vadd.f32 %v6057_v38, %v12052_v21  ;;  %v6018_v44 = vpop.f32.mrb[74].mxu0  ;;  %v6059_v52 = vpop.f32.mrb[106].mxu1  ;;  %v5758_v59 = vadd.f32 %v5747_v54, %v11174_v15  ;;  %v11419_v15 = vld [vmem:[#allocation9 + $0x20] ss:$16 sps:$4 sm:$0xff]   ;;  %v11421_v54 = vld [vmem:[#allocation9 + $0x28] ss:$16 sps:$4 sm:$0xff]  }
 0x91c   :  { %v8357_v46 = vmul.f32 -1.442695, %v6062_v45  ;;  %v6019_v13 = vpop.f32.mrb[75].mxu0  ;;  %v6060_v16 = vpop.f32.mrb[107].mxu1  ;;  %v11405_v44 = vld [vmem:[#allocation9] ss:$16 sps:$4 sm:$0xff]  }
 0x91d   :  { %v8358_v5 = vmul.f32 -1.442695, %v6063_v40  ;;  %v8359_v33 = vmul.f32 -1.442695, %v6065_v55  ;;  %v11407_v52 = vld [vmem:[#allocation9 + $0x8] ss:$16 sps:$4 sm:$0xff]  }
 0x91e   :  { %9491 = vpow2.f32 %v8357_v46  ;;  %v11411_v13 = vld [vmem:[#allocation9 + $0x24] ss:$16 sps:$4 sm:$0xff]  }
 0x91f   :  { %9493 = vpow2.f32 %v8358_v5  ;;  %v11425_v16 = vld [vmem:[#allocation9 + $0x44] ss:$16 sps:$4 sm:$0xff]   ;;  %v11427_v5 = vld [vmem:[#allocation9 + $0x4c] ss:$16 sps:$4 sm:$0xff]  }
 0x920   :  { %9495 = vpow2.f32 %v8359_v33  ;;  %v11433_v33 = vld [vmem:[#allocation9 + $0x40] ss:$16 sps:$4 sm:$0xff]  }
 0x921   :  { %9497 = vtanh.f32 %v6064_v0  ;;  %v8324_v0 = vmul.f32 -1.442695, %v5758_v59  ;;  %v11464_v59 = vld [vmem:[#allocation9 + $0xa4] ss:$16 sps:$4 sm:$0xff]  }
 0x922   :  { %12057 = vst [vmem:[#allocation51_spill] sm:$0xff] %v11464_v59 }
 0x928   :  { %v9492_v1 = vpop.eup %9491 }
 0x929   :  { %v9494_v43 = vpop.eup %9493  ;;  %v6069_v11 = vadd.f32 1.0, %v9492_v1  ;;  %v11435_v1 = vld [vmem:[#allocation9 + $0x48] ss:$16 sps:$4 sm:$0xff]  }
 0x92a   :  { %v6075_v34 = vadd.f32 1.0, %v9494_v43  ;;  %v9496_v47 = vpop.eup %9495  ;;  %v11439_v43 = vld [vmem:[#allocation9 + $0x64] ss:$16 sps:$4 sm:$0xff]  }
 0x92b   :  { %9499 = vrcp.f32 %v6069_v11  ;;  %v9498_v17 = vpop.eup %9497  ;;  %v6082_v45 = vadd.f32 1.0, %v9496_v47  ;;  %v11441_v11 = vld [vmem:[#allocation9 + $0x6c] ss:$16 sps:$4 sm:$0xff]   ;;  %v11445_v47 = vld [vmem:[#allocation9 + $0x60] ss:$16 sps:$4 sm:$0xff]  }
 0x92c   :  { %9501 = vrcp.f32 %v6075_v34 }
 0x92d   :  { %9503 = vrcp.f32 %v6082_v45  ;;  %v11457_v45 = vld [vmem:[#allocation9 + $0x80] ss:$16 sps:$4 sm:$0xff]  }
 0x92e   :  { %12055 = vst [vmem:[#allocation49_spill] sm:$0xff] %v11457_v45 }
 0x935   :  { %v9500_v8 = vpop.eup %9499 }
 0x936   :  { %v9502_v56 = vpop.eup %9501  ;;  %v6086_v12 = vmul.f32 %v9500_v8, %v9498_v17  ;;  %v11447_v17 = vld [vmem:[#allocation9 + $0x68] ss:$16 sps:$4 sm:$0xff]   ;;  %v11451_v8 = vld [vmem:[#allocation9 + $0x84] ss:$16 sps:$4 sm:$0xff]  }
 0x937   :  { %v6085_v61 = vmul.f32 %v9502_v56, %v11171_v41  ;;  %v9504_v40 = vpop.eup %9503  ;;  %v11413_v41 = vld [vmem:[#allocation9 + $0x2c] ss:$16 sps:$4 sm:$0xff]   ;;  %12053 = vst [vmem:[#allocation47_spill] sm:$0xff] %v11451_v8 }
 0x938   :  { %v11453_v56 = vld [vmem:[#allocation9 + $0x8c] ss:$16 sps:$4 sm:$0xff]  }
 0x939   :  { %v11401_v38 = vadd.f32 %v6086_v12, %v6085_v61  ;;  %12054 = vst [vmem:[#allocation48_spill] sm:$0xff] %v11453_v56  ;;  %v11459_v61 = vld [vmem:[#allocation9 + $0x88] ss:$16 sps:$4 sm:$0xff]  }
 0x93a   :  { %12056 = vst [vmem:[#allocation50_spill] sm:$0xff] %v11459_v61 }
 0x93b   :  { %9505 = vtanh.f32 %v11401_v38 }
 0x93c   :  { %9507 = vpow2.f32 %v8324_v0  ;;  %v11470_v0 = vld [vmem:[#allocation9 + $0xa0] ss:$16 sps:$4 sm:$0xff]  }
 0x93d   :  { %9509 = vtanh.f32 %v11396_v60  ;;  %12059 = vst [vmem:[#allocation53_spill] sm:$0xff] %v11470_v0 }
 0x945   :  { %v9506_v21 = vpop.eup %9505 }
 0x946   :  { %v6089_v55 = vmul.f32 %v9506_v21, %v9504_v40  ;;  %v9508_v34 = vpop.eup %9507  ;;  %v11466_v40 = vld [vmem:[#allocation9 + $0xac] ss:$16 sps:$4 sm:$0xff]   ;;  %v11472_v21 = vld [vmem:[#allocation9 + $0xa8] ss:$16 sps:$4 sm:$0xff]  }
 0x947   :  { %v5775_v12 = vadd.f32 1.0, %v9508_v34  ;;  %12058 = vst [vmem:[#allocation52_spill] sm:$0xff] %v11466_v40  ;;  %12060 = vst [vmem:[#allocation21_spill] sm:$0xff] %v11472_v21  ;;  %v11478_v34 = vld [vmem:[#allocation9 + $0xcc] ss:$16 sps:$4 sm:$0xff]  }
 0x948   :  { %v11409_v46 = vpack.c.bf16 %v6089_v55, %v6089_v55  ;;  %v11476_v55 = vld [vmem:[#allocation9 + $0xc4] ss:$16 sps:$4 sm:$0xff]   ;;  %12062 = vst [vmem:[#allocation22_spill] sm:$0xff] %v11478_v34 }
 0x949   :  { %9511 = vrcp.f32 %v5775_v12  ;;  %12061 = vst [vmem:[#allocation33_spill] sm:$0xff] %v11476_v55  ;;  %v11482_v12 = vld [vmem:[#allocation9 + $0xc0] ss:$16 sps:$4 sm:$0xff]  }
 0x94a   :  { %6349 = vmatmul.mubr.bf16.vlgmr.msra.gmra.mrb[76].mxu0 %v11409_v46  ;;  %6390 = vmatmul.mubr.bf16.vlgmr.msra.gmra.mrb[108].mxu1 %v11409_v46  ;;  %12063 = vst [vmem:[#allocation34_spill] sm:$0xff] %v11482_v12 }
 0x94b   :  { %6559 = vmatpush1.bf16.msra.mxu0 %v11405_v44  ;;  %6600 = vmatpush1.bf16.msra.mxu1 %v11407_v52 }
 0x94c   :  { %6560 = vmatprep.subr.bf16.mxu0 %v11411_v13  ;;  %6601 = vmatprep.subr.bf16.mxu1 %v11413_v41 }
 0x94d   :  { %6590 = vmatprep.mubr.bf16.mxu0 %v11850_v63  ;;  %6631 = vmatprep.mubr.bf16.mxu1 %v11850_v63 }
 0x94f   :  { %6561 = vmatpush1.bf16.msra.mxu0 %v11419_v15  ;;  %6602 = vmatpush1.bf16.msra.mxu1 %v11421_v54 }
 0x950   :  { %6562 = vmatprep.subr.bf16.mxu0 %v11425_v16  ;;  %6603 = vmatprep.subr.bf16.mxu1 %v11427_v5 }
 0x953   :  { %6563 = vmatpush1.bf16.msra.mxu0 %v11433_v33  ;;  %6604 = vmatpush1.bf16.msra.mxu1 %v11435_v1 }
 0x954   :  { %6564 = vmatprep.subr.bf16.mxu0 %v11439_v43  ;;  %6605 = vmatprep.subr.bf16.mxu1 %v11441_v11 }
 0x957   :  { %6565 = vmatpush1.bf16.msra.mxu0 %v11445_v47  ;;  %6606 = vmatpush1.bf16.msra.mxu1 %v11447_v17 }
 0x958   :  { %6566 = vmatprep.subr.bf16.mxu0 %v11451_v8  ;;  %6607 = vmatprep.subr.bf16.mxu1 %v11453_v56  ;;  %v9281_v8 = vld [vmem:[#allocation6] ss:$16 sps:$4 sm:$0xff]  }
 0x95b   :  { %6567 = vmatpush1.bf16.msra.mxu0 %v11457_v45  ;;  %6608 = vmatpush1.bf16.msra.mxu1 %v11459_v61  ;;  %v11484_v45 = vld [vmem:[#allocation9 + $0xc8] ss:$16 sps:$4 sm:$0xff]   ;;  %v11488_v61 = vld [vmem:[#allocation9 + $0xe4] ss:$16 sps:$4 sm:$0xff]  }
 0x95c   :  { %6568 = vmatprep.subr.bf16.mxu0 %v11464_v59  ;;  %6609 = vmatprep.subr.bf16.mxu1 %v11466_v40  ;;  %12064 = vst [vmem:[#allocation54_spill] sm:$0xff] %v11484_v45  ;;  %v11490_v59 = vld [vmem:[#allocation9 + $0xec] ss:$16 sps:$4 sm:$0xff]   ;;  %v9510_v40 = vpop.eup %9509 }
 0x95d   :  { %v9512_v56 = vpop.eup %9511 }
 0x95f   :  { %6569 = vmatpush1.bf16.msra.mxu0 %v11470_v0  ;;  %6610 = vmatpush1.bf16.msra.mxu1 %v11472_v21  ;;  %v11494_v0 = vld [vmem:[#allocation9 + $0xe0] ss:$16 sps:$4 sm:$0xff]   ;;  %v11496_v21 = vld [vmem:[#allocation9 + $0xe8] ss:$16 sps:$4 sm:$0xff]  }
 0x960   :  { %6570 = vmatprep.subr.bf16.mxu0 %v11476_v55  ;;  %6611 = vmatprep.subr.bf16.mxu1 %v11478_v34  ;;  %v11500_v55 = vmul.f32 %v9512_v56, %v9510_v40  ;;  %v9283_v34 = vld [vmem:[#allocation6 + $0x4] ss:$16 sps:$4 sm:$0xff]   ;;  %v9284_v56 = vld [vmem:[#allocation6 + $0x20] ss:$16 sps:$4 sm:$0xff]  }
 0x961   :  { %v9289_v40 = vld [vmem:[#allocation6 + $0x44] ss:$16 sps:$4 sm:$0xff]  }
 0x963   :  { %6571 = vmatpush1.bf16.msra.mxu0 %v11482_v12  ;;  %6612 = vmatpush1.bf16.msra.mxu1 %v11484_v45  ;;  %v6090_v12 = vpack.c.bf16 %v11500_v55, %v11500_v55  ;;  %v9286_v45 = vld [vmem:[#allocation6 + $0x24] ss:$16 sps:$4 sm:$0xff]  }
 0x964   :  { %6572 = vmatprep.subr.bf16.mxu0 %v11488_v61  ;;  %6613 = vmatprep.subr.bf16.mxu1 %v11490_v59 }
 0x967   :  { %6573 = vmatpush1.bf16.msra.mxu0 %v11494_v0  ;;  %6614 = vmatpush1.bf16.msra.mxu1 %v11496_v21 }
 0x968   :  { %6869 = vmatprep.subr.bf16.mxu0 %v9283_v34  ;;  %6910 = vmatprep.subr.bf16.mxu1 %v11214_v22  ;;  %v9287_v34 = vld [vmem:[#allocation6 + $0x40] ss:$16 sps:$4 sm:$0xff]   ;;  %v9292_v22 = vld [vmem:[#allocation6 + $0x64] ss:$16 sps:$4 sm:$0xff]  }
 0x96a   :  { %6591 = vmatmul.mubr.bf16.vlgmr.msra.gmra.mrb[80].mxu0 %v6090_v12  ;;  %6632 = vmatmul.mubr.bf16.vlgmr.msra.gmra.mrb[112].mxu1 %v6090_v12 }
 0x96b   :  { %6870 = vmatpush1.bf16.msra.mxu0 %v9281_v8  ;;  %6911 = vmatpush1.bf16.msra.mxu1 %v11218_v4  ;;  %v9290_v4 = vld [vmem:[#allocation6 + $0x60] ss:$16 sps:$4 sm:$0xff]  }
 0x96c   :  { %6871 = vmatprep.subr.bf16.mxu0 %v9286_v45  ;;  %6912 = vmatprep.subr.bf16.mxu1 %v11224_v53  ;;  %v9295_v53 = vld [vmem:[#allocation6 + $0x84] ss:$16 sps:$4 sm:$0xff]   ;;  %v9293_v8 = vld [vmem:[#allocation6 + $0x80] ss:$16 sps:$4 sm:$0xff]  }
 0x96d   :  { %6901 = vmatprep.mubr.bf16.mxu0 %v11850_v63  ;;  %6942 = vmatprep.mubr.bf16.mxu1 %v11850_v63 }
 0x96f   :  { %6872 = vmatpush1.bf16.msra.mxu0 %v9284_v56  ;;  %6913 = vmatpush1.bf16.msra.mxu1 %v11228_v48  ;;  %v9298_v48 = vld [vmem:[#allocation6 + $0xa4] ss:$16 sps:$4 sm:$0xff]   ;;  %v11564_v56 = vld [vmem:[#allocation11 + $0x8] sm:$0xff] }
 0x970   :  { %6873 = vmatprep.subr.bf16.mxu0 %v9289_v40  ;;  %6914 = vmatprep.subr.bf16.mxu1 %v11232_v18  ;;  %v9296_v18 = vld [vmem:[#allocation6 + $0xa0] ss:$16 sps:$4 sm:$0xff]  }
 0x973   :  { %6874 = vmatpush1.bf16.msra.mxu0 %v9287_v34  ;;  %6915 = vmatpush1.bf16.msra.mxu1 %v11238_v57  ;;  %v9301_v57 = vld [vmem:[#allocation6 + $0xc4] ss:$16 sps:$4 sm:$0xff]  }
 0x974   :  { %6875 = vmatprep.subr.bf16.mxu0 %v9292_v22  ;;  %6916 = vmatprep.subr.bf16.mxu1 %v11242_v35  ;;  %v9299_v35 = vld [vmem:[#allocation6 + $0xc0] ss:$16 sps:$4 sm:$0xff]  }
 0x977   :  { %6876 = vmatpush1.bf16.msra.mxu0 %v9290_v4  ;;  %6917 = vmatpush1.bf16.msra.mxu1 %v11246_v6  ;;  %v9304_v6 = vld [vmem:[#allocation6 + $0xe4] ss:$16 sps:$4 sm:$0xff]  }
 0x978   :  { %6877 = vmatprep.subr.bf16.mxu0 %v9295_v53  ;;  %6918 = vmatprep.subr.bf16.mxu1 %v11250_v62  ;;  %v9302_v62 = vld [vmem:[#allocation6 + $0xe0] ss:$16 sps:$4 sm:$0xff]  }
 0x97b   :  { %6878 = vmatpush1.bf16.msra.mxu0 %v9293_v8  ;;  %6919 = vmatpush1.bf16.msra.mxu1 %v11254_v51  ;;  %v12065_v51 = vld [vmem:[#allocation64_spill] sm:$0xff] }
 0x97c   :  { %6879 = vmatprep.subr.bf16.mxu0 %v9298_v48  ;;  %6920 = vmatprep.subr.bf16.mxu1 %v11258_v27  ;;  %v12066_v27 = vld [vmem:[#allocation65_spill] sm:$0xff] }
 0x97f   :  { %6880 = vmatpush1.bf16.msra.mxu0 %v9296_v18  ;;  %6921 = vmatpush1.bf16.msra.mxu1 %v11262_v28  ;;  %v12067_v28 = vld [vmem:[#allocation15_spill] sm:$0xff] }
 0x980   :  { %6881 = vmatprep.subr.bf16.mxu0 %v9301_v57  ;;  %6922 = vmatprep.subr.bf16.mxu1 %v11266_v50  ;;  %v12068_v50 = vld [vmem:[#allocation19_spill] sm:$0xff] }
 0x983   :  { %6882 = vmatpush1.bf16.msra.mxu0 %v9299_v35  ;;  %6923 = vmatpush1.bf16.msra.mxu1 %v11270_v23  ;;  %v12069_v23 = vld [vmem:[#allocation31_spill] sm:$0xff] }
 0x984   :  { %6883 = vmatprep.subr.bf16.mxu0 %v9304_v6  ;;  %6924 = vmatprep.subr.bf16.mxu1 %v11274_v37  ;;  %v12070_v37 = vld [vmem:[#allocation20_spill] sm:$0xff] }
 0x987   :  { %6884 = vmatpush1.bf16.msra.mxu0 %v9302_v62  ;;  %6925 = vmatpush1.bf16.msra.mxu1 %v11278_v29  ;;  %v12071_v29 = vld [vmem:[#allocation32_spill] sm:$0xff]  ;;  %v11568_v62 = vld [vmem:[#allocation11 + $0x10] sm:$0xff] }
 0x988   :  { %7205 = vmatprep.subr.bf16.mxu0 %v11288_v25  ;;  %7246 = vmatprep.subr.bf16.mxu1 %v11290_v32  ;;  %v12072_v25 = vld [vmem:[#allocation28_spill] sm:$0xff] }
 0x989   :  { %v12073_v32 = vld [vmem:[#allocation40_spill] sm:$0xff] }
 0x98a   :  { %6902 = vmatmul.mubr.bf16.vlgmr.msra.gmra.mrb[84].mxu0 %v11409_v46  ;;  %6943 = vmatmul.mubr.bf16.vlgmr.msra.gmra.mrb[116].mxu1 %v11409_v46 }
 0x98b   :  { %7206 = vmatpush1.bf16.msra.mxu0 %v11292_v30  ;;  %7247 = vmatpush1.bf16.msra.mxu1 %v11294_v39  ;;  %v12074_v30 = vld [vmem:[#allocation41_spill] sm:$0xff]  ;;  %v12075_v39 = vld [vmem:[#allocation42_spill] sm:$0xff] }
 0x98c   :  { %7207 = vmatprep.subr.bf16.mxu0 %v11300_v10  ;;  %7248 = vmatprep.subr.bf16.mxu1 %v11302_v49  ;;  %v12076_v10 = vld [vmem:[#allocation43_spill] sm:$0xff]  ;;  %v12077_v49 = vld [vmem:[#allocation44_spill] sm:$0xff] }
 0x98d   :  { %7237 = vmatprep.mubr.bf16.mxu0 %v11850_v63  ;;  %7278 = vmatprep.mubr.bf16.mxu1 %v11850_v63 }
 0x98f   :  { %7208 = vmatpush1.bf16.msra.mxu0 %v11304_v14  ;;  %7249 = vmatpush1.bf16.msra.mxu1 %v11306_v7  ;;  %v12078_v14 = vld [vmem:[#allocation45_spill] sm:$0xff]  ;;  %v12079_v7 = vld [vmem:[#allocation46_spill] sm:$0xff] }
 0x990   :  { %7209 = vmatprep.subr.bf16.mxu0 %v11312_v20  ;;  %7250 = vmatprep.subr.bf16.mxu1 %v11314_v31 }
 0x993   :  { %7210 = vmatpush1.bf16.msra.mxu0 %v11316_v19  ;;  %7251 = vmatpush1.bf16.msra.mxu1 %v11318_v26 }
 0x994   :  { %7211 = vmatprep.subr.bf16.mxu0 %v11324_v9  ;;  %7252 = vmatprep.subr.bf16.mxu1 %v11326_v58 }
 0x997   :  { %7212 = vmatpush1.bf16.msra.mxu0 %v11328_v24  ;;  %7253 = vmatpush1.bf16.msra.mxu1 %v11330_v36 }
 0x998   :  { %7213 = vmatprep.subr.bf16.mxu0 %v11336_v3  ;;  %7254 = vmatprep.subr.bf16.mxu1 %v11338_v42  ;;  %v11562_v42 = vld [vmem:[#allocation11] sm:$0xff] }
 0x99b   :  { %7214 = vmatpush1.bf16.msra.mxu0 %v11340_v2  ;;  %7255 = vmatpush1.bf16.msra.mxu1 %v12065_v51 }
 0x99c   :  { %7215 = vmatprep.subr.bf16.mxu0 %v12066_v27  ;;  %7256 = vmatprep.subr.bf16.mxu1 %v12067_v28 }
 0x99f   :  { %7216 = vmatpush1.bf16.msra.mxu0 %v12068_v50  ;;  %7257 = vmatpush1.bf16.msra.mxu1 %v12069_v23 }
 0x9a0   :  { %7217 = vmatprep.subr.bf16.mxu0 %v12070_v37  ;;  %7258 = vmatprep.subr.bf16.mxu1 %v12071_v29 }
 0x9a3   :  { %7218 = vmatpush1.bf16.msra.mxu0 %v12072_v25  ;;  %7259 = vmatpush1.bf16.msra.mxu1 %v12073_v32 }
 0x9a4   :  { %7219 = vmatprep.subr.bf16.mxu0 %v12074_v30  ;;  %7260 = vmatprep.subr.bf16.mxu1 %v12075_v39 }
 0x9a7   :  { %7220 = vmatpush1.bf16.msra.mxu0 %v12076_v10  ;;  %7261 = vmatpush1.bf16.msra.mxu1 %v12077_v49  ;;  %v12080_v49 = vld [vmem:[#allocation25_spill] sm:$0xff] }
 0x9a8   :  { %7447 = vmatprep.subr.bf16.mxu0 %v12078_v14  ;;  %7488 = vmatprep.subr.bf16.mxu1 %v12079_v7  ;;  %v12081_v7 = vld [vmem:[#allocation37_spill] sm:$0xff] }
 0xa1d   :  { %v6350_v20 = vpop.f32.mrb[76].mxu0  ;;  %v6391_v31 = vpop.f32.mrb[108].mxu1 }
 0xa1e   :  { %v6352_v19 = vpop.f32.mrb[77].mxu0  ;;  %v6393_v26 = vpop.f32.mrb[109].mxu1 }
 0xa1f   :  { %v6354_v9 = vpop.f32.mrb[78].mxu0  ;;  %v6395_v58 = vpop.f32.mrb[110].mxu1 }
 0xa20   :  { %v6355_v24 = vpop.f32.mrb[79].mxu0  ;;  %v6396_v36 = vpop.f32.mrb[111].mxu1  ;;  %v12082_v9 = vld [vmem:[#allocation26_spill] sm:$0xff] }
 0xa21   :  { %v12083_v24 = vld [vmem:[#allocation38_spill] sm:$0xff] }
 0xa3d   :  { %v6592_v3 = vpop.f32.mrb[80].mxu0  ;;  %v6633_v2 = vpop.f32.mrb[112].mxu1 }
 0xa3e   :  { %v6593_v46 = vadd.f32 %v6592_v3, %v6350_v20  ;;  %v6634_v45 = vadd.f32 %v6633_v2, %v6391_v31  ;;  %v6594_v12 = vpop.f32.mrb[81].mxu0  ;;  %v6635_v40 = vpop.f32.mrb[113].mxu1 }
 0xa3f   :  { %v6595_v34 = vadd.f32 %v6594_v12, %v6352_v19  ;;  %v6636_v22 = vadd.f32 %v6635_v40, %v6393_v26  ;;  %v6596_v4 = vpop.f32.mrb[82].mxu0  ;;  %v6637_v53 = vpop.f32.mrb[114].mxu1 }
 0xa40   :  { %v6644_v8 = vadd.f32 %v11562_v42, %v6593_v46  ;;  %v6597_v48 = vpop.f32.mrb[83].mxu0  ;;  %v6638_v18 = vpop.f32.mrb[115].mxu1  ;;  %v6646_v51 = vadd.f32 %v11568_v62, %v6634_v45 }
 0xa41   :  { %v6645_v57 = vadd.f32 %v11564_v56, %v6595_v34 }
 0xa42   :  { %v8424_v35 = vmul.f32 -1.442695, %v6644_v8 }
 0xa43   :  { %v8425_v6 = vmul.f32 -1.442695, %v6645_v57 }
 0xa44   :  { %9513 = vpow2.f32 %v8424_v35 }
 0xa45   :  { %9515 = vpow2.f32 %v8425_v6 }
 0xa46   :  { %9517 = vtanh.f32 %v6646_v51 }
 0xa4e   :  { %v9514_v27 = vpop.eup %9513 }
 0xa4f   :  { %v9516_v28 = vpop.eup %9515  ;;  %v6651_v50 = vadd.f32 1.0, %v9514_v27 }
 0xa50   :  { %v6657_v23 = vadd.f32 1.0, %v9516_v28  ;;  %v9518_v37 = vpop.eup %9517 }
 0xa51   :  { %9519 = vrcp.f32 %v6651_v50  ;;  %v11579_v50 = vld [vmem:[#allocation11 + $0x18] sm:$0xff] }
 0xa52   :  { %9521 = vrcp.f32 %v6657_v23  ;;  %v6647_v23 = vadd.f32 %v11579_v50, %v6636_v22  ;;  %v12094_v22 = vld [vmem:[#allocation34_spill] sm:$0xff] }
 0xa5b   :  { %v9520_v29 = vpop.eup %9519 }
 0xa5c   :  { %v9522_v25 = vpop.eup %9521  ;;  %v6668_v32 = vmul.f32 %v9520_v29, %v9518_v37  ;;  %v8426_v29 = vmul.f32 -1.442695, %v6647_v23 }
 0xa5d   :  { %v6667_v30 = vmul.f32 %v9522_v25, %v11396_v60  ;;  %v6903_v39 = vpop.f32.mrb[84].mxu0  ;;  %v6944_v10 = vpop.f32.mrb[116].mxu1 }
 0xa5e   :  { %v6951_v14 = vadd.f32 %v6903_v39, %v12080_v49  ;;  %v6953_v20 = vadd.f32 %v6944_v10, %v12081_v7  ;;  %v6905_v31 = vpop.f32.mrb[85].mxu0  ;;  %v6946_v19 = vpop.f32.mrb[117].mxu1  ;;  %v12095_v39 = vld [vmem:[#allocation54_spill] sm:$0xff] }
 0xa5f   :  { %v11574_v26 = vadd.f32 %v6668_v32, %v6667_v30  ;;  %v6952_v58 = vadd.f32 %v6905_v31, %v12082_v9  ;;  %v6954_v36 = vadd.f32 %v6946_v19, %v12083_v24  ;;  %v6907_v3 = vpop.f32.mrb[86].mxu0  ;;  %v6948_v2 = vpop.f32.mrb[118].mxu1  ;;  %v7573_v7 = vld [vmem:[%s11708_s7 + $0x18] sm:$0xff]  ;;  %v12096_v19 = vld [vmem:[#allocation39_spill] sm:$0xff] }
 0xa60   :  { %v8459_v46 = vmul.f32 -1.442695, %v6951_v14  ;;  %v6908_v45 = vpop.f32.mrb[87].mxu0  ;;  %v6949_v12 = vpop.f32.mrb[119].mxu1  ;;  %v7572_v14 = vld [vmem:[%s11708_s7 + $0x10] sm:$0xff]  ;;  %v7577_v9 = vld [vmem:[%s11708_s7 + $0x38] sm:$0xff] }
 0xa61   :  { %v8460_v60 = vmul.f32 -1.442695, %v6952_v58  ;;  %v8461_v40 = vmul.f32 -1.442695, %v6954_v36  ;;  %v8666_v31 = vpack.c.bf16 %v7573_v7, %v7572_v14  ;;  %v7578_v24 = vld [vmem:[%s11708_s7 + $0x40] sm:$0xff]  ;;  %v7579_v36 = vld [vmem:[%s11708_s7 + $0x48] sm:$0xff] }
 0xa62   :  { %9523 = vpow2.f32 %v8459_v46  ;;  %v8678_v3 = vpack.c.bf16 %v7579_v36, %v7578_v24  ;;  %v7580_v2 = vld [vmem:[%s11708_s7 + $0x50] sm:$0xff]  ;;  %v7581_v46 = vld [vmem:[%s11708_s7 + $0x58] sm:$0xff]  ;;  %v7582_v12 = vld [vmem:[%s11708_s7 + $0x60] sm:$0xff] }
 0xa63   :  { %9525 = vpow2.f32 %v8460_v60  ;;  %v8682_v45 = vpack.c.bf16 %v7581_v46, %v7580_v2  ;;  %v7583_v60 = vld [vmem:[%s11708_s7 + $0x68] sm:$0xff]  ;;  %v8529_v14 = vld [vmem:[%s11709_s8] ss:$0 sm:$0xff] }
 0xa64   :  { %9527 = vpow2.f32 %v8461_v40  ;;  %v8686_v40 = vpack.c.bf16 %v7583_v60, %v7582_v12 }
 0xa65   :  { %9529 = vtanh.f32 %v6953_v20 }
 0xa6c   :  { %v9524_v34 = vpop.eup %9523 }
 0xa6d   :  { %v9526_v4 = vpop.eup %9525  ;;  %v6958_v53 = vadd.f32 1.0, %v9524_v34  ;;  %v7584_v34 = vld [vmem:[%s11708_s7 + $0x70] sm:$0xff] }
 0xa6e   :  { %v6964_v8 = vadd.f32 1.0, %v9526_v4  ;;  %v9528_v48 = vpop.eup %9527  ;;  %v7585_v4 = vld [vmem:[%s11708_s7 + $0x78] sm:$0xff] }
 0xa6f   :  { %9531 = vrcp.f32 %v6958_v53  ;;  %v9530_v18 = vpop.eup %9529  ;;  %v6971_v51 = vadd.f32 1.0, %v9528_v48  ;;  %v8690_v53 = vpack.c.bf16 %v7585_v4, %v7584_v34  ;;  %v12098_v48 = vld [vmem:[#allocation16_spill] sm:$0xff] }
 0xa70   :  { %9533 = vrcp.f32 %v6964_v8  ;;  %v12097_v8 = vld [vmem:[#allocation27_spill] sm:$0xff] }
 0xa71   :  { %9535 = vrcp.f32 %v6971_v51 }
 0xa79   :  { %v9532_v57 = vpop.eup %9531 }
 0xa7a   :  { %v9534_v35 = vpop.eup %9533  ;;  %v6975_v6 = vmul.f32 %v9532_v57, %v9530_v18  ;;  %v12099_v18 = vld [vmem:[#allocation62_spill] sm:$0xff]  ;;  %v12100_v57 = vld [vmem:[#allocation63_spill] sm:$0xff] }
 0xa7b   :  { %v6974_v27 = vmul.f32 %v9534_v35, %v11401_v38  ;;  %v9536_v37 = vpop.eup %9535 }
 0xa7d   :  { %v6976_v28 = vadd.f32 %v6975_v6, %v6974_v27 }
 0xa7f   :  { %9537 = vtanh.f32 %v6976_v28 }
 0xa80   :  { %9539 = vpow2.f32 %v8426_v29 }
 0xa81   :  { %9541 = vtanh.f32 %v11574_v26 }
 0xa89   :  { %v9538_v25 = vpop.eup %9537 }
 0xa8a   :  { %v6978_v32 = vmul.f32 %v9538_v25, %v9536_v37  ;;  %v9540_v38 = vpop.eup %9539 }
 0xa8c   :  { %v7012_v30 = vpack.c.bf16 %v6978_v32, %v6978_v32 }
 0xa8e   :  { %7238 = vmatmul.mubr.bf16.vlgmr.msra.gmra.mrb[88].mxu0 %v7012_v30  ;;  %7279 = vmatmul.mubr.bf16.vlgmr.msra.gmra.mrb[120].mxu1 %v7012_v30 }
 0xa8f   :  { %7448 = vmatpush1.bf16.msra.mxu0 %v11405_v44  ;;  %7489 = vmatpush1.bf16.msra.mxu1 %v11407_v52  ;;  %v6664_v44 = vadd.f32 1.0, %v9540_v38  ;;  %v12085_v52 = vld [vmem:[#allocation48_spill] sm:$0xff] }
 0xa90   :  { %7449 = vmatprep.subr.bf16.mxu0 %v11411_v13  ;;  %7490 = vmatprep.subr.bf16.mxu1 %v11413_v41  ;;  %v12086_v13 = vld [vmem:[#allocation49_spill] sm:$0xff]  ;;  %v12087_v41 = vld [vmem:[#allocation50_spill] sm:$0xff] }
 0xa91   :  { %7479 = vmatprep.mubr.bf16.mxu0 %v11850_v63  ;;  %7520 = vmatprep.mubr.bf16.mxu1 %v11850_v63  ;;  %v12084_v63 = vld [vmem:[#allocation47_spill] sm:$0xff]  ;;  %9543 = vrcp.f32 %v6664_v44 }
 0xa93   :  { %7450 = vmatpush1.bf16.msra.mxu0 %v11419_v15  ;;  %7491 = vmatpush1.bf16.msra.mxu1 %v11421_v54  ;;  %v12088_v15 = vld [vmem:[#allocation51_spill] sm:$0xff]  ;;  %v12089_v54 = vld [vmem:[#allocation52_spill] sm:$0xff] }
 0xa94   :  { %7451 = vmatprep.subr.bf16.mxu0 %v11425_v16  ;;  %7492 = vmatprep.subr.bf16.mxu1 %v11427_v5  ;;  %v12090_v16 = vld [vmem:[#allocation53_spill] sm:$0xff] }
 0xa95   :  { %v12091_v5 = vld [vmem:[#allocation21_spill] sm:$0xff] }
 0xa97   :  { %7452 = vmatpush1.bf16.msra.mxu0 %v11433_v33  ;;  %7493 = vmatpush1.bf16.msra.mxu1 %v11435_v1  ;;  %v12092_v33 = vld [vmem:[#allocation33_spill] sm:$0xff]  ;;  %v12093_v1 = vld [vmem:[#allocation22_spill] sm:$0xff] }
 0xa98   :  { %7453 = vmatprep.subr.bf16.mxu0 %v11439_v43  ;;  %7494 = vmatprep.subr.bf16.mxu1 %v11441_v11  ;;  %v9542_v43 = vpop.eup %9541  ;;  %v7570_v11 = vld [vmem:[%s11708_s7] sm:$0xff] }
 0xa9b   :  { %7454 = vmatpush1.bf16.msra.mxu0 %v11445_v47  ;;  %7495 = vmatpush1.bf16.msra.mxu1 %v11447_v17  ;;  %v7571_v47 = vld [vmem:[%s11708_s7 + $0x8] sm:$0xff]  ;;  %v9544_v17 = vpop.eup %9543 }
 0xa9c   :  { %7455 = vmatprep.subr.bf16.mxu0 %v12084_v63  ;;  %7496 = vmatprep.subr.bf16.mxu1 %v12085_v52  ;;  %v6671_v10 = vmul.f32 %v9544_v17, %v9542_v43  ;;  %v8662_v49 = vpack.c.bf16 %v7571_v47, %v7570_v11 }
 0xa9e   :  { %v6979_v20 = vpack.c.bf16 %v6671_v10, %v6671_v10 }
 0xa9f   :  { %7456 = vmatpush1.bf16.msra.mxu0 %v12086_v13  ;;  %7497 = vmatpush1.bf16.msra.mxu1 %v12087_v41 }
 0xaa0   :  { %7457 = vmatprep.subr.bf16.mxu0 %v12088_v15  ;;  %7498 = vmatprep.subr.bf16.mxu1 %v12089_v54 }
 0xaa3   :  { %7458 = vmatpush1.bf16.msra.mxu0 %v12090_v16  ;;  %7499 = vmatpush1.bf16.msra.mxu1 %v12091_v5 }
 0xaa4   :  { %7459 = vmatprep.subr.bf16.mxu0 %v12092_v33  ;;  %7500 = vmatprep.subr.bf16.mxu1 %v12093_v1 }
 0xaa7   :  { %7460 = vmatpush1.bf16.msra.mxu0 %v12094_v22  ;;  %7501 = vmatpush1.bf16.msra.mxu1 %v12095_v39 }
 0xaa8   :  { %7461 = vmatprep.subr.bf16.mxu0 %v11488_v61  ;;  %7502 = vmatprep.subr.bf16.mxu1 %v11490_v59  ;;  %v7574_v61 = vld [vmem:[%s11708_s7 + $0x20] sm:$0xff]  ;;  %v7575_v59 = vld [vmem:[%s11708_s7 + $0x28] sm:$0xff] }
 0xaab   :  { %7462 = vmatpush1.bf16.msra.mxu0 %v11494_v0  ;;  %7503 = vmatpush1.bf16.msra.mxu1 %v11496_v21  ;;  %v8670_v0 = vpack.c.bf16 %v7575_v59, %v7574_v61  ;;  %v7576_v21 = vld [vmem:[%s11708_s7 + $0x30] sm:$0xff] }
 0xaac   :  { %8663 = vmatprep.subr.bf16.mxu0 %v8662_v49  ;;  %v8674_v58 = vpack.c.bf16 %v7577_v9, %v7576_v21 }
 0xaae   :  { %7480 = vmatmul.mubr.bf16.vlgmr.msra.gmra.mrb[92].mxu0 %v6979_v20  ;;  %7521 = vmatmul.mubr.bf16.vlgmr.msra.gmra.mrb[124].mxu1 %v6979_v20 }
 0xaaf   :  { %8665 = vmatpush3.bf16.msra.mxu0 %v8662_v49  ;;  %8586 = vmatprep.mubr.f32.mxu0 %v12096_v19 }
 0xab0   :  { %8667 = vmatprep.subr.bf16.mxu0 %v8666_v31 }
 0xab3   :  { %8669 = vmatpush3.bf16.msra.mxu0 %v8666_v31 }
 0xab4   :  { %8671 = vmatprep.subr.bf16.mxu0 %v8670_v0 }
 0xab7   :  { %8673 = vmatpush3.bf16.msra.mxu0 %v8670_v0 }
 0xab8   :  { %8675 = vmatprep.subr.bf16.mxu0 %v8674_v58 }
 0xabb   :  { %8677 = vmatpush3.bf16.msra.mxu0 %v8674_v58 }
 0xabc   :  { %8679 = vmatprep.subr.bf16.mxu0 %v8678_v3 }
 0xabf   :  { %8681 = vmatpush3.bf16.msra.mxu0 %v8678_v3 }
 0xac0   :  { %8683 = vmatprep.subr.bf16.mxu0 %v8682_v45 }
 0xac3   :  { %8685 = vmatpush3.bf16.msra.mxu0 %v8682_v45 }
 0xac4   :  { %8687 = vmatprep.subr.bf16.mxu0 %v8686_v40 }
 0xac7   :  { %8689 = vmatpush3.bf16.msra.mxu0 %v8686_v40 }
 0xac8   :  { %8691 = vmatprep.subr.bf16.mxu0 %v8690_v53 }
 0xacb   :  { %8693 = vmatpush3.bf16.msra.mxu0 %v8690_v53 }
 0xace   :  { %8587 = vmatmul.mubr.f32.vlgmr.msra.gmra.mrb[96].mxu0 %v12097_v8 }
 0xacf   :  { %8589 = vmatprep.mubr.f32.mxu0 %v12098_v48 }
 0xad2   :  { %8590 = vmatmul.mubr.f32.gmra.mrb[98].mxu0 %v12099_v18 }
 0xad3   :  { %8592 = vmatprep.mubr.f32.mxu0 %v12100_v57 }
 0xad6   :  { %8593 = vmatmul.mubr.f32.gmra.mrb[100].mxu0 %v11500_v55 }
 0xad7   :  { %8595 = vmatprep.mubr.f32.mxu0 %v6671_v10 }
 0xb61   :  { %v7239_v35 = vpop.f32.mrb[88].mxu0  ;;  %v7280_v6 = vpop.f32.mrb[120].mxu1 }
 0xb62   :  { %v7241_v51 = vpop.f32.mrb[89].mxu0  ;;  %v7282_v27 = vpop.f32.mrb[121].mxu1 }
 0xb63   :  { %v7243_v28 = vpop.f32.mrb[90].mxu0  ;;  %v7284_v23 = vpop.f32.mrb[122].mxu1 }
 0xb64   :  { %v7244_v37 = vpop.f32.mrb[91].mxu0  ;;  %v7285_v29 = vpop.f32.mrb[123].mxu1 }
 0xb81   :  { %v7481_v25 = vpop.f32.mrb[92].mxu0  ;;  %v7522_v32 = vpop.f32.mrb[124].mxu1 }
 0xb82   :  { %v7482_v30 = vadd.f32 %v7481_v25, %v7239_v35  ;;  %v7523_v38 = vadd.f32 %v7522_v32, %v7280_v6  ;;  %v7483_v44 = vpop.f32.mrb[93].mxu0  ;;  %v7524_v63 = vpop.f32.mrb[125].mxu1 }
 0xb83   :  { %v7484_v52 = vadd.f32 %v7483_v44, %v7241_v51  ;;  %v7525_v13 = vadd.f32 %v7524_v63, %v7282_v27  ;;  %v7485_v41 = vpop.f32.mrb[94].mxu0  ;;  %v7526_v15 = vpop.f32.mrb[126].mxu1 }
 0xb84   :  { %v7533_v55 = vadd.f32 %v7482_v30, %v11562_v42  ;;  %v7486_v54 = vpop.f32.mrb[95].mxu0  ;;  %v7527_v16 = vpop.f32.mrb[127].mxu1  ;;  %v7535_v47 = vadd.f32 %v7523_v38, %v11568_v62 }
 0xb85   :  { %v7534_v5 = vadd.f32 %v7484_v52, %v11564_v56  ;;  %v7536_v43 = vadd.f32 %v7525_v13, %v11579_v50 }
 0xb86   :  { %v8526_v33 = vmul.f32 -1.442695, %v7533_v55 }
 0xb87   :  { %v8527_v1 = vmul.f32 -1.442695, %v7534_v5  ;;  %v8528_v11 = vmul.f32 -1.442695, %v7536_v43 }
 0xb88   :  { %9545 = vpow2.f32 %v8526_v33 }
 0xb89   :  { %9547 = vpow2.f32 %v8527_v1 }
 0xb8a   :  { %9549 = vpow2.f32 %v8528_v11 }
 0xb8b   :  { %9551 = vtanh.f32 %v7535_v47 }
 0xb92   :  { %v9546_v17 = vpop.eup %9545 }
 0xb93   :  { %v9548_v22 = vpop.eup %9547  ;;  %v7540_v39 = vadd.f32 1.0, %v9546_v17 }
 0xb94   :  { %v7546_v10 = vadd.f32 1.0, %v9548_v22  ;;  %v9550_v42 = vpop.eup %9549 }
 0xb95   :  { %9553 = vrcp.f32 %v7540_v39  ;;  %v9552_v49 = vpop.eup %9551  ;;  %v7553_v20 = vadd.f32 1.0, %v9550_v42 }
 0xb96   :  { %9555 = vrcp.f32 %v7546_v10 }
 0xb97   :  { %9557 = vrcp.f32 %v7553_v20 }
 0xb9f   :  { %v9554_v56 = vpop.eup %9553 }
 0xba0   :  { %v9556_v7 = vpop.eup %9555  ;;  %v7557_v50 = vmul.f32 %v9554_v56, %v9552_v49 }
 0xba1   :  { %v8588_v31 = vpop.f32.mrb[96].mxu0  ;;  %v7556_v62 = vmul.f32 %v9556_v7, %v11574_v26  ;;  %v9558_v46 = vpop.eup %9557 }
 0xba2   :  { %v7665_v61 = vadd.f32 %v8588_v31, %v8529_v14  ;;  %v7659_v59 = vpop.f32.mrb[97].mxu0 }
 0xba3   :  { %v7660_v19 = vadd.f32 %v8529_v14, %v7659_v59  ;;  %v7558_v0 = vadd.f32 %v7557_v50, %v7556_v62 }
 0xba4   :  { %7699 = vst [vmem:[%s11710_s9 + $0x8] sm:$0xff] %v7665_v61 }
 0xba5   :  { %7698 = vst [vmem:[%s11710_s9] sm:$0xff] %v7660_v19  ;;  %v8591_v21 = vpop.f32.mrb[98].mxu0  ;;  %9559 = vtanh.f32 %v7558_v0 }
 0xba6   :  { %v7675_v9 = vadd.f32 %v8591_v21, %v8529_v14  ;;  %v7669_v58 = vpop.f32.mrb[99].mxu0 }
 0xba7   :  { %v7670_v24 = vadd.f32 %v8529_v14, %v7669_v58 }
 0xba8   :  { %7701 = vst [vmem:[%s11710_s9 + $0x18] sm:$0xff] %v7675_v9 }
 0xba9   :  { %7700 = vst [vmem:[%s11710_s9 + $0x10] sm:$0xff] %v7670_v24  ;;  %v8594_v26 = vpop.f32.mrb[100].mxu0 }
 0xbaa   :  { %v7685_v36 = vadd.f32 %v8594_v26, %v8529_v14  ;;  %v7679_v3 = vpop.f32.mrb[101].mxu0 }
 0xbab   :  { %v7680_v2 = vadd.f32 %v8529_v14, %v7679_v3 }
 0xbac   :  { %7703 = vst [vmem:[%s11710_s9 + $0x28] sm:$0xff] %v7685_v36 }
 0xbad   :  { %7702 = vst [vmem:[%s11710_s9 + $0x20] sm:$0xff] %v7680_v2 }
 0xbaf   :  { %v9560_v45 = vpop.eup %9559 }
 0xbb0   :  { %v7560_v12 = vmul.f32 %v9560_v45, %v9558_v46 }
 0xbb2   :  { %8596 = vmatmul.mubr.f32.gmra.mrb[102].mxu0 %v7560_v12 }
 0xc85   :  { %v8597_v60 = vpop.f32.mrb[102].mxu0 }
 0xc86   :  { %v7695_v40 = vadd.f32 %v8597_v60, %v8529_v14  ;;  %v7689_v34 = vpop.f32.mrb[103].mxu0 }
 0xc87   :  { %v7690_v4 = vadd.f32 %v8529_v14, %v7689_v34 }
 0xc88   :  { %7705 = vst [vmem:[%s11710_s9 + $0x38] sm:$0xff] %v7695_v40 }
 0xc89   :  { %7704 = vst [vmem:[%s11710_s9 + $0x30] sm:$0xff] %v7690_v4 }
 0xc8a   :  { %7710 = vsyncpa [#allocation5], 1 }
 0xc8b   :  { %7711 = vsyncpa [#allocation7], 1 }
 0xc8c   :  { %7712 = vsyncpa [#allocation10], 1 }

</bundles_post_ra>
